<compile_context>
chip_gen: v7x
topology: tpu7x:2x2x1
jax: 0.10.0
libtpu: 0.0.40
codegen_flags: <defaults>
</compile_context>

<pallas_src>
import jax
import jax.numpy as jnp
from jax import lax
from jax.experimental import pallas as pl
from jax.experimental.pallas import tpu as pltpu


def _sigmoid(x):
    return 1.0 / (1.0 + jnp.exp(-x))


def arnn_kernel(hist_ref, valid_ref, w_ih_ref, w_hh_ref, b_lstm_ref,
                w2_ref, b2_ref, v_ref, out_ref, gx_ref, h_all_ref):
    # Block shapes:
    #   hist_ref : (BB, H, D)  history embeddings (batch-major, as stored in HBM)
    #   valid_ref: (BB, H)     prefix-validity mask: valid[b,i] = (i < n_b)
    #   w_ih_ref : (D, 4D)     LSTM input weights, transposed, gate order i,f,g,o
    #   w_hh_ref : (D, 4D)     LSTM recurrent weights, transposed (always f32)
    #   b_lstm   : (1, 4D)     b_ih + b_hh
    #   w2_ref   : (D, A)      W2^T   (the W1 branch cancels out of alpha = e/s)
    #   b2_ref   : (1, A)
    #   v_ref    : (1, A)
    #   out_ref  : (BB, D)     user representation (lane-sparse but tiny; OK)
    #   gx_ref   : (H, BB, 4D) scratch: time-major LSTM input pre-activations
    #   h_all_ref: (H, BB, D)  scratch: LSTM hidden states for every step
    BB, H, D = hist_ref.shape
    D4 = w_ih_ref.shape[1]
    A = w2_ref.shape[1]

    # ---- 1) Batch-major -> time-major once (static slices, all in-VMEM), then
    #         one MXU pass for the LSTM input projection of all timesteps.
    x_bh = hist_ref[...]                                           # (BB, H, D)
    x_tm = jnp.stack([x_bh[:, t, :] for t in range(H)], axis=0)    # (H, BB, D)
    x_flat = x_tm.reshape(H * BB, D).astype(w_ih_ref.dtype)
    gx = jnp.dot(x_flat, w_ih_ref[...],
                 preferred_element_type=jnp.float32) + b_lstm_ref[...]
    gx_ref[...] = gx.reshape(H, BB, D4)

    # ---- 2) Sequential LSTM recurrence (f32; the only serial part).
    w_hh = w_hh_ref[...]                                           # (D, 4D)

    def lstm_step(t, carry):
        h_prev, c_prev = carry                                     # (BB, D) each
        gates = gx_ref[t] + jnp.dot(h_prev, w_hh,
                                    preferred_element_type=jnp.float32)
        i_g = _sigmoid(gates[:, 0 * D:1 * D])
        f_g = _sigmoid(gates[:, 1 * D:2 * D])
        g_g = jnp.tanh(gates[:, 2 * D:3 * D])
        o_g = _sigmoid(gates[:, 3 * D:4 * D])
        c_t = f_g * c_prev + i_g * g_g
        h_t = o_g * jnp.tanh(c_t)
        h_all_ref[t] = h_t
        return (h_t, c_t)

    zeros = jnp.zeros((BB, D), jnp.float32)
    # TODO(synk): with much larger batch blocks, reduce unroll (2-4) if the
    # bundle dump shows register spilling.
    lax.fori_loop(0, H, lstm_step, (zeros, zeros), unroll=True)

    # ---- 3) Attention logits: only the W2 branch matters (v·h1 cancels in e/s).
    h_all = h_all_ref[...]                                         # (H, BB, D)
    h_flat = h_all.reshape(H * BB, D).astype(w2_ref.dtype)
    h2 = jnp.tanh(jnp.dot(h_flat, w2_ref[...],
                          preferred_element_type=jnp.float32) + b2_ref[...])
    v_row = v_ref[...][None]                                       # (1, 1, A)
    u2 = jnp.sum(h2.reshape(H, BB, A) * v_row, axis=-1)            # (H, BB) = v·h2

    # ---- 4) a[i,b] = exp(u2[i,b]) / cumsum_i exp(u2[i,b]).  The ratio is
    #         shift-invariant, so subtract the per-column max for stability.
    u2 = u2 - jnp.max(u2, axis=0, keepdims=True)
    ex = jnp.exp(u2)                                               # (H, BB)
    r = lax.broadcasted_iota(jnp.int32, (H, H), 0)
    c = lax.broadcasted_iota(jnp.int32, (H, H), 1)
    l_tri = (c <= r).astype(jnp.float32)                           # inclusive lower tri
    s = jnp.dot(l_tri, ex, preferred_element_type=jnp.float32)     # cumsum over i
    a = ex / s                                                     # tiny; exact divide

    # ---- 5) Column sums of alpha:
    #         w_col[j,b] = sum_i a[i,b] * [i < n_b] * [1 <= j <= i]
    valid_hb = valid_ref[...].T                                    # (H, BB): i < n_b
    a_m = a * valid_hb
    suffix = ((r >= 1) & (r <= c)).astype(jnp.float32)             # [j,i]: 1 <= j <= i
    w_col = jnp.dot(suffix, a_m, preferred_element_type=jnp.float32)   # (H, BB)

    # ---- 6) user[b] = sum_j w_col[j,b] * h[j,b,:]
    out_ref[...] = jnp.sum(w_col[:, :, None] * h_all, axis=0)      # (BB, D)


def arnn_forward(candidate_news, history_embedding, user_history_mask,
                 w_ih, w_hh, b_ih, b_hh, w1, b1, w2, b2, v,
                 *, batch_block=None, matmul_dtype=jnp.float32):
    """candidate_news: (B, N, D) (only N is used, per the module);
       history_embedding: (B, H, D); user_history_mask: (B, H);
       LSTM params w_ih/w_hh: (4D, D), b_ih/b_hh: (4D,);
       w1/w2: (A, D), b1/b2: (A,); v: (1, A).

       w1/b1 provably do not affect the module output (exp(v·h1[j]) cancels in
       e/s), so they are accepted for interface parity but unused.

       matmul_dtype: operand dtype for the two non-recurrent matmuls; bf16 is a
       ~2-3x MXU-throughput win at production sizes but must be re-validated
       against tolerance (LSTM state error compounds), so the default is f32."""
    del w1, b1  # cancel exactly in alpha = e / s
    B, N, D = candidate_news.shape
    _, H, _ = history_embedding.shape
    A = w2.shape[0]
    f32 = jnp.float32

    # Grid sizing (perf review): single-TC v5e/v6e -> one grid step (bb = B) so
    # the serial LSTM recurrence and per-step overhead are amortized over the
    # whole batch.  On v7x pass batch_block = B // 2 (one grid step per TC) and
    # budget VMEM (64 MiB part): per step ~ bb*H*(2*D + 4D + D)*4 bytes of
    # blocks/scratch plus the (small) weights.
    if batch_block is None:
        batch_block = B
    bb = batch_block
    assert B % bb == 0 and (bb == B or bb % 8 == 0)

    # No host-side transpose of the history tensor (saves an HBM pass); lengths
    # are reduced to a prefix-valid mask once on the host.
    hist = history_embedding.astype(f32)                                  # (B, H, D)
    n = jnp.sum(user_history_mask.astype(f32), axis=1, keepdims=True)     # (B, 1)
    valid = (jnp.arange(H, dtype=f32)[None, :] < n).astype(f32)           # (B, H)

    w_ih_t = jnp.asarray(w_ih, f32).T.astype(matmul_dtype)                # (D, 4D)
    w_hh_t = jnp.asarray(w_hh, f32).T                                     # (D, 4D) f32
    b_lstm = (jnp.asarray(b_ih, f32) + jnp.asarray(b_hh, f32)).reshape(1, 4 * D)
    w2_t = jnp.asarray(w2, f32).T.astype(matmul_dtype)                    # (D, A)
    b2_r = jnp.asarray(b2, f32).reshape(1, A)
    v_row = jnp.asarray(v, f32).reshape(1, A)

    user = pl.pallas_call(
        arnn_kernel,
        out_shape=jax.ShapeDtypeStruct((B, D), f32),
        grid=(B // bb,),
        in_specs=[
            pl.BlockSpec((bb, H, D), lambda g: (g, 0, 0)),
            pl.BlockSpec((bb, H), lambda g: (g, 0)),
            pl.BlockSpec((D, 4 * D), lambda g: (0, 0)),
            pl.BlockSpec((D, 4 * D), lambda g: (0, 0)),
            pl.BlockSpec((1, 4 * D), lambda g: (0, 0)),
            pl.BlockSpec((D, A), lambda g: (0, 0)),
            pl.BlockSpec((1, A), lambda g: (0, 0)),
            pl.BlockSpec((1, A), lambda g: (0, 0)),
        ],
        out_specs=pl.BlockSpec((bb, D), lambda g: (g, 0)),
        scratch_shapes=[
            pltpu.VMEM((H, bb, 4 * D), f32),   # time-major LSTM gate pre-activations
            pltpu.VMEM((H, bb, D), f32),       # LSTM hidden states for all steps
        ],
        compiler_params=pltpu.CompilerParams(
            dimension_semantics=("parallel",)),
    )(hist, valid, w_ih_t, w_hh_t, b_lstm, w2_t, b2_r, v_row)

    # .sum(dim=1, keepdim=True).repeat(1, news_num, 1) — a free broadcast.
    return jnp.broadcast_to(user[:, None, :], (B, N, D))


def arnn_reference(history_embedding, user_history_mask, news_num,
                   w_ih, w_hh, b_ih, b_hh, w1, b1, w2, b2, v):
    """Pure-JAX reference implementing the full (unsimplified) module math."""
    B, H, D = history_embedding.shape

    def cell(carry, x_t):
        h_prev, c_prev = carry
        gates = x_t @ w_ih.T + b_ih + h_prev @ w_hh.T + b_hh
        i_g = _sigmoid(gates[:, :D])
        f_g = _sigmoid(gates[:, D:2 * D])
        g_g = jnp.tanh(gates[:, 2 * D:3 * D])
        o_g = _sigmoid(gates[:, 3 * D:])
        c_t = f_g * c_prev + i_g * g_g
        h_t = o_g * jnp.tanh(c_t)
        return (h_t, c_t), h_t

    xs = jnp.swapaxes(history_embedding, 0, 1)                    # (H, B, D)
    init = (jnp.zeros((B, D), jnp.float32), jnp.zeros((B, D), jnp.float32))
    _, hs = jax.lax.scan(cell, init, xs)
    h = jnp.swapaxes(hs, 0, 1)                                    # (B, H, D)

    h1 = jnp.tanh(h @ w1.T + b1)
    h2 = jnp.tanh(h @ w2.T + b2)
    vh1 = jnp.squeeze(h1 @ v.T, -1)                               # (B, H)
    vh2 = jnp.squeeze(h2 @ v.T, -1)                               # (B, H)
    e = jnp.exp(vh2[:, :, None] + vh1[:, None, :])                # (B, H, H)
    s = jnp.cumsum(e, axis=1)
    n = jnp.sum(user_history_mask, axis=1).astype(jnp.int32)      # (B,)
    i_idx = jnp.arange(H)[None, :, None]
    j_idx = jnp.arange(H)[None, None, :]
    tri = ((i_idx < n[:, None, None]) & (j_idx >= 1)
           & (j_idx <= i_idx)).astype(jnp.float32)
    alpha = e / s * tri
    user = jnp.einsum('bij,bjd->bd', alpha, h)
    return jnp.broadcast_to(user[:, None, :], (B, news_num, D))


if __name__ == "__main__":
    # batch, news_num, max_history_num, news_embedding_dim, attention_dim
    B, N, H, D, A = 16, 8, 16, 32, 64

    key = jax.random.PRNGKey(0)
    ks = jax.random.split(key, 8)

    candidate_news = jax.random.normal(ks[0], (B, N, D), jnp.float32)
    history_embedding = jax.random.normal(ks[1], (B, H, D), jnp.float32)
    user_history_mask = (jax.random.uniform(ks[2], (B, H)) > 0.3).astype(jnp.float32)

    # Deterministic parameter init (orthogonal-ish LSTM ~ scaled normal,
    # xavier-uniform with gain('tanh') for w1/w2, zero biases).
    w_ih = 0.3 * jax.random.normal(ks[3], (4 * D, D), jnp.float32)
    w_hh = 0.3 * jax.random.normal(ks[4], (4 * D, D), jnp.float32)
    b_ih = jnp.zeros((4 * D,), jnp.float32)
    b_hh = jnp.zeros((4 * D,), jnp.float32)

    lim1 = (6.0 / (D + A)) ** 0.5 * (5.0 / 3.0)
    w1 = jax.random.uniform(ks[5], (A, D), jnp.float32, -lim1, lim1)
    b1 = jnp.zeros((A,), jnp.float32)
    w2 = jax.random.uniform(ks[6], (A, D), jnp.float32, -lim1, lim1)
    b2 = jnp.zeros((A,), jnp.float32)
    v = 0.2 * jax.random.normal(ks[7], (1, A), jnp.float32)

    out = arnn_forward(candidate_news, history_embedding, user_history_mask,
                       w_ih, w_hh, b_ih, b_hh, w1, b1, w2, b2, v)
    out = jax.block_until_ready(out)

    ref = arnn_reference(history_embedding, user_history_mask, N,
                         w_ih, w_hh, b_ih, b_hh, w1, b1, w2, b2, v)
    assert out.shape == (B, N, D)
    assert jnp.allclose(out, ref, atol=2e-3, rtol=2e-3), "mismatch vs reference"

    print("KERNEL_OK")
</pallas_src>

<mosaic_0001>
module attributes {stable_mosaic.version = 11 : i64} {
  func.func @arnn_kernel(%arg0: i32, %arg1: memref<16x16x32xf32, #tpu.memory_space<vmem>>, %arg2: memref<16x16xf32, #tpu.memory_space<vmem>>, %arg3: memref<32x128xf32, #tpu.memory_space<vmem>>, %arg4: memref<32x128xf32, #tpu.memory_space<vmem>>, %arg5: memref<1x128xf32, #tpu.memory_space<vmem>>, %arg6: memref<32x64xf32, #tpu.memory_space<vmem>>, %arg7: memref<1x64xf32, #tpu.memory_space<vmem>>, %arg8: memref<1x64xf32, #tpu.memory_space<vmem>>, %arg9: memref<16x32xf32, #tpu.memory_space<vmem>>, %arg10: memref<16x16x128xf32, #tpu.memory_space<vmem>>, %arg11: memref<16x16x32xf32, #tpu.memory_space<vmem>>) attributes {dimension_semantics = [#tpu.dimension_semantics<parallel>], iteration_bounds = array<i64: 1>, scalar_prefetch = 0 : i64, scratch_operands = 2 : i64, tpu.core_type = #tpu.core_type<tc>, window_params = [{transform_indices = @transform_0, window_bounds = array<i64: 16, 16, 32>}, {transform_indices = @transform_1, window_bounds = array<i64: 16, 16>}, {pipeline_mode = #tpu.pipeline_mode<synchronous>, transform_indices = @transform_2, window_bounds = array<i64: 32, 128>}, {pipeline_mode = #tpu.pipeline_mode<synchronous>, transform_indices = @transform_3, window_bounds = array<i64: 32, 128>}, {pipeline_mode = #tpu.pipeline_mode<synchronous>, transform_indices = @transform_4, window_bounds = array<i64: 1, 128>}, {pipeline_mode = #tpu.pipeline_mode<synchronous>, transform_indices = @transform_5, window_bounds = array<i64: 32, 64>}, {pipeline_mode = #tpu.pipeline_mode<synchronous>, transform_indices = @transform_6, window_bounds = array<i64: 1, 64>}, {pipeline_mode = #tpu.pipeline_mode<synchronous>, transform_indices = @transform_7, window_bounds = array<i64: 1, 64>}, {transform_indices = @transform_8, window_bounds = array<i64: 16, 32>}]} {
    %c0 = arith.constant 0 : index
    %c0_0 = arith.constant 0 : index
    %c0_1 = arith.constant 0 : index
    %0 = vector.load %arg1[%c0, %c0_0, %c0_1] : memref<16x16x32xf32, #tpu.memory_space<vmem>>, vector<16x16x32xf32>
    %1 = vector.extract_strided_slice %0 {offsets = [0, 0, 0], sizes = [16, 1, 32], strides = [1, 1, 1]} : vector<16x16x32xf32> to vector<16x1x32xf32>
    %2 = vector.shape_cast %1 : vector<16x1x32xf32> to vector<16x32xf32>
    %3 = vector.extract_strided_slice %0 {offsets = [0, 1, 0], sizes = [16, 1, 32], strides = [1, 1, 1]} : vector<16x16x32xf32> to vector<16x1x32xf32>
    %4 = vector.shape_cast %3 : vector<16x1x32xf32> to vector<16x32xf32>
    %5 = vector.extract_strided_slice %0 {offsets = [0, 2, 0], sizes = [16, 1, 32], strides = [1, 1, 1]} : vector<16x16x32xf32> to vector<16x1x32xf32>
    %6 = vector.shape_cast %5 : vector<16x1x32xf32> to vector<16x32xf32>
    %7 = vector.extract_strided_slice %0 {offsets = [0, 3, 0], sizes = [16, 1, 32], strides = [1, 1, 1]} : vector<16x16x32xf32> to vector<16x1x32xf32>
    %8 = vector.shape_cast %7 : vector<16x1x32xf32> to vector<16x32xf32>
    %9 = vector.extract_strided_slice %0 {offsets = [0, 4, 0], sizes = [16, 1, 32], strides = [1, 1, 1]} : vector<16x16x32xf32> to vector<16x1x32xf32>
    %10 = vector.shape_cast %9 : vector<16x1x32xf32> to vector<16x32xf32>
    %11 = vector.extract_strided_slice %0 {offsets = [0, 5, 0], sizes = [16, 1, 32], strides = [1, 1, 1]} : vector<16x16x32xf32> to vector<16x1x32xf32>
    %12 = vector.shape_cast %11 : vector<16x1x32xf32> to vector<16x32xf32>
    %13 = vector.extract_strided_slice %0 {offsets = [0, 6, 0], sizes = [16, 1, 32], strides = [1, 1, 1]} : vector<16x16x32xf32> to vector<16x1x32xf32>
    %14 = vector.shape_cast %13 : vector<16x1x32xf32> to vector<16x32xf32>
    %15 = vector.extract_strided_slice %0 {offsets = [0, 7, 0], sizes = [16, 1, 32], strides = [1, 1, 1]} : vector<16x16x32xf32> to vector<16x1x32xf32>
    %16 = vector.shape_cast %15 : vector<16x1x32xf32> to vector<16x32xf32>
    %17 = vector.extract_strided_slice %0 {offsets = [0, 8, 0], sizes = [16, 1, 32], strides = [1, 1, 1]} : vector<16x16x32xf32> to vector<16x1x32xf32>
    %18 = vector.shape_cast %17 : vector<16x1x32xf32> to vector<16x32xf32>
    %19 = vector.extract_strided_slice %0 {offsets = [0, 9, 0], sizes = [16, 1, 32], strides = [1, 1, 1]} : vector<16x16x32xf32> to vector<16x1x32xf32>
    %20 = vector.shape_cast %19 : vector<16x1x32xf32> to vector<16x32xf32>
    %21 = vector.extract_strided_slice %0 {offsets = [0, 10, 0], sizes = [16, 1, 32], strides = [1, 1, 1]} : vector<16x16x32xf32> to vector<16x1x32xf32>
    %22 = vector.shape_cast %21 : vector<16x1x32xf32> to vector<16x32xf32>
    %23 = vector.extract_strided_slice %0 {offsets = [0, 11, 0], sizes = [16, 1, 32], strides = [1, 1, 1]} : vector<16x16x32xf32> to vector<16x1x32xf32>
    %24 = vector.shape_cast %23 : vector<16x1x32xf32> to vector<16x32xf32>
    %25 = vector.extract_strided_slice %0 {offsets = [0, 12, 0], sizes = [16, 1, 32], strides = [1, 1, 1]} : vector<16x16x32xf32> to vector<16x1x32xf32>
    %26 = vector.shape_cast %25 : vector<16x1x32xf32> to vector<16x32xf32>
    %27 = vector.extract_strided_slice %0 {offsets = [0, 13, 0], sizes = [16, 1, 32], strides = [1, 1, 1]} : vector<16x16x32xf32> to vector<16x1x32xf32>
    %28 = vector.shape_cast %27 : vector<16x1x32xf32> to vector<16x32xf32>
    %29 = vector.extract_strided_slice %0 {offsets = [0, 14, 0], sizes = [16, 1, 32], strides = [1, 1, 1]} : vector<16x16x32xf32> to vector<16x1x32xf32>
    %30 = vector.shape_cast %29 : vector<16x1x32xf32> to vector<16x32xf32>
    %31 = vector.extract_strided_slice %0 {offsets = [0, 15, 0], sizes = [16, 1, 32], strides = [1, 1, 1]} : vector<16x16x32xf32> to vector<16x1x32xf32>
    %32 = vector.shape_cast %31 : vector<16x1x32xf32> to vector<16x32xf32>
    %33 = vector.shape_cast %2 : vector<16x32xf32> to vector<1x16x32xf32>
    %34 = vector.shape_cast %4 : vector<16x32xf32> to vector<1x16x32xf32>
    %35 = vector.shape_cast %6 : vector<16x32xf32> to vector<1x16x32xf32>
    %36 = vector.shape_cast %8 : vector<16x32xf32> to vector<1x16x32xf32>
    %37 = vector.shape_cast %10 : vector<16x32xf32> to vector<1x16x32xf32>
    %38 = vector.shape_cast %12 : vector<16x32xf32> to vector<1x16x32xf32>
    %39 = vector.shape_cast %14 : vector<16x32xf32> to vector<1x16x32xf32>
    %40 = vector.shape_cast %16 : vector<16x32xf32> to vector<1x16x32xf32>
    %41 = vector.shape_cast %18 : vector<16x32xf32> to vector<1x16x32xf32>
    %42 = vector.shape_cast %20 : vector<16x32xf32> to vector<1x16x32xf32>
    %43 = vector.shape_cast %22 : vector<16x32xf32> to vector<1x16x32xf32>
    %44 = vector.shape_cast %24 : vector<16x32xf32> to vector<1x16x32xf32>
    %45 = vector.shape_cast %26 : vector<16x32xf32> to vector<1x16x32xf32>
    %46 = vector.shape_cast %28 : vector<16x32xf32> to vector<1x16x32xf32>
    %47 = vector.shape_cast %30 : vector<16x32xf32> to vector<1x16x32xf32>
    %48 = vector.shape_cast %32 : vector<16x32xf32> to vector<1x16x32xf32>
    %49 = tpu.concatenate %33, %34, %35, %36, %37, %38, %39, %40, %41, %42, %43, %44, %45, %46, %47, %48 in 0 : vector<1x16x32xf32>, vector<1x16x32xf32>, vector<1x16x32xf32>, vector<1x16x32xf32>, vector<1x16x32xf32>, vector<1x16x32xf32>, vector<1x16x32xf32>, vector<1x16x32xf32>, vector<1x16x32xf32>, vector<1x16x32xf32>, vector<1x16x32xf32>, vector<1x16x32xf32>, vector<1x16x32xf32>, vector<1x16x32xf32>, vector<1x16x32xf32>, vector<1x16x32xf32> -> vector<16x16x32xf32>
    %50 = vector.shape_cast %49 : vector<16x16x32xf32> to vector<256x32xf32>
    %c0_2 = arith.constant 0 : index
    %c0_3 = arith.constant 0 : index
    %51 = vector.load %arg3[%c0_2, %c0_3] : memref<32x128xf32, #tpu.memory_space<vmem>>, vector<32x128xf32>
    %cst = arith.constant dense<0.000000e+00> : vector<256x128xf32>
    %52 = tpu.matmul %50, %51, %cst {dimension_numbers = #tpu.dot_dimension_numbers<[1], [0], [0], [1], [0, 0, 1, 1], [], []>} : vector<256x32xf32>, vector<32x128xf32>, vector<256x128xf32> -> vector<256x128xf32>
    %c0_4 = arith.constant 0 : index
    %c0_5 = arith.constant 0 : index
    %53 = vector.load %arg5[%c0_4, %c0_5] : memref<1x128xf32, #tpu.memory_space<vmem>>, vector<1x128xf32>
    %54 = vector.broadcast %53 : vector<1x128xf32> to vector<256x128xf32>
    %55 = arith.addf %52, %54 : vector<256x128xf32>
    %56 = vector.shape_cast %55 : vector<256x128xf32> to vector<16x16x128xf32>
    %c0_6 = arith.constant 0 : index
    %c0_7 = arith.constant 0 : index
    %c0_8 = arith.constant 0 : index
    %57 = vector.load %arg10[%c0_6, %c0_7, %c0_8] : memref<16x16x128xf32, #tpu.memory_space<vmem>>, vector<16x16x128xf32>
    tpu.vector_store %arg10[%c0_6, %c0_7, %c0_8], %56 {strides = array<i32>} : memref<16x16x128xf32, #tpu.memory_space<vmem>>, vector<16x16x128xf32>,
    %c0_9 = arith.constant 0 : index
    %c0_10 = arith.constant 0 : index
    %58 = vector.load %arg4[%c0_9, %c0_10] : memref<32x128xf32, #tpu.memory_space<vmem>>, vector<32x128xf32>
    %cst_11 = arith.constant 0.000000e+00 : f32
    %59 = vector.broadcast %cst_11 : f32 to vector<16x32xf32>
    %c0_i32 = arith.constant 0 : i32
    %60 = arith.index_cast %c0_i32 : i32 to index
    %c0_12 = arith.constant 0 : index
    %c0_13 = arith.constant 0 : index
    %61 = vector.load %arg10[%60, %c0_12, %c0_13] : memref<16x16x128xf32, #tpu.memory_space<vmem>>, vector<1x16x128xf32>
    %62 = vector.shape_cast %61 : vector<1x16x128xf32> to vector<16x128xf32>
    %cst_14 = arith.constant dense<0.000000e+00> : vector<16x128xf32>
    %63 = tpu.matmul %59, %58, %cst_14 {dimension_numbers = #tpu.dot_dimension_numbers<[1], [0], [0], [1], [0, 0, 1, 1], [], []>} : vector<16x32xf32>, vector<32x128xf32>, vector<16x128xf32> -> vector<16x128xf32>
    %64 = arith.addf %62, %63 : vector<16x128xf32>
    %65 = vector.extract_strided_slice %64 {offsets = [0, 0], sizes = [16, 32], strides = [1, 1]} : vector<16x128xf32> to vector<16x32xf32>
    %cst_15 = arith.constant 0.000000e+00 : f32
    %66 = vector.broadcast %cst_15 : f32 to vector<16x32xf32>
    %67 = arith.subf %66, %65 : vector<16x32xf32>
    %68 = math.exp %67 : vector<16x32xf32>
    %cst_16 = arith.constant 1.000000e+00 : f32
    %69 = vector.broadcast %cst_16 : f32 to vector<16x32xf32>
    %70 = arith.addf %69, %68 : vector<16x32xf32>
    %cst_17 = arith.constant 1.000000e+00 : f32
    %71 = vector.broadcast %cst_17 : f32 to vector<16x32xf32>
    %72 = arith.divf %71, %70 : vector<16x32xf32>
    %73 = vector.extract_strided_slice %64 {offsets = [0, 32], sizes = [16, 32], strides = [1, 1]} : vector<16x128xf32> to vector<16x32xf32>
    %cst_18 = arith.constant 0.000000e+00 : f32
    %74 = vector.broadcast %cst_18 : f32 to vector<16x32xf32>
    %75 = arith.subf %74, %73 : vector<16x32xf32>
    %76 = math.exp %75 : vector<16x32xf32>
    %cst_19 = arith.constant 1.000000e+00 : f32
    %77 = vector.broadcast %cst_19 : f32 to vector<16x32xf32>
    %78 = arith.addf %77, %76 : vector<16x32xf32>
    %cst_20 = arith.constant 1.000000e+00 : f32
    %79 = vector.broadcast %cst_20 : f32 to vector<16x32xf32>
    %80 = arith.divf %79, %78 : vector<16x32xf32>
    %81 = vector.extract_strided_slice %64 {offsets = [0, 64], sizes = [16, 32], strides = [1, 1]} : vector<16x128xf32> to vector<16x32xf32>
    %82 = math.tanh %81 : vector<16x32xf32>
    %83 = vector.extract_strided_slice %64 {offsets = [0, 96], sizes = [16, 32], strides = [1, 1]} : vector<16x128xf32> to vector<16x32xf32>
    %cst_21 = arith.constant 0.000000e+00 : f32
    %84 = vector.broadcast %cst_21 : f32 to vector<16x32xf32>
    %85 = arith.subf %84, %83 : vector<16x32xf32>
    %86 = math.exp %85 : vector<16x32xf32>
    %cst_22 = arith.constant 1.000000e+00 : f32
    %87 = vector.broadcast %cst_22 : f32 to vector<16x32xf32>
    %88 = arith.addf %87, %86 : vector<16x32xf32>
    %cst_23 = arith.constant 1.000000e+00 : f32
    %89 = vector.broadcast %cst_23 : f32 to vector<16x32xf32>
    %90 = arith.divf %89, %88 : vector<16x32xf32>
    %91 = arith.mulf %80, %59 : vector<16x32xf32>
    %92 = arith.mulf %72, %82 : vector<16x32xf32>
    %93 = arith.addf %91, %92 : vector<16x32xf32>
    %94 = math.tanh %93 : vector<16x32xf32>
    %95 = arith.mulf %90, %94 : vector<16x32xf32>
    %96 = arith.index_cast %c0_i32 : i32 to index
    %c0_24 = arith.constant 0 : index
    %c0_25 = arith.constant 0 : index
    %97 = vector.load %arg11[%96, %c0_24, %c0_25] : memref<16x16x32xf32, #tpu.memory_space<vmem>>, vector<1x16x32xf32>
    %98 = vector.shape_cast %97 : vector<1x16x32xf32> to vector<16x32xf32>
    %99 = vector.shape_cast %95 : vector<16x32xf32> to vector<1x16x32xf32>
    tpu.vector_store %arg11[%96, %c0_24, %c0_25], %99 {strides = array<i32>} : memref<16x16x32xf32, #tpu.memory_space<vmem>>, vector<1x16x32xf32>,
    %c1_i32 = arith.constant 1 : i32
    %100 = arith.index_cast %c1_i32 : i32 to index
    %c0_26 = arith.constant 0 : index
    %c0_27 = arith.constant 0 : index
    %101 = vector.load %arg10[%100, %c0_26, %c0_27] : memref<16x16x128xf32, #tpu.memory_space<vmem>>, vector<1x16x128xf32>
    %102 = vector.shape_cast %101 : vector<1x16x128xf32> to vector<16x128xf32>
    %cst_28 = arith.constant dense<0.000000e+00> : vector<16x128xf32>
    %103 = tpu.matmul %95, %58, %cst_28 {dimension_numbers = #tpu.dot_dimension_numbers<[1], [0], [0], [1], [0, 0, 1, 1], [], []>} : vector<16x32xf32>, vector<32x128xf32>, vector<16x128xf32> -> vector<16x128xf32>
    %104 = arith.addf %102, %103 : vector<16x128xf32>
    %105 = vector.extract_strided_slice %104 {offsets = [0, 0], sizes = [16, 32], strides = [1, 1]} : vector<16x128xf32> to vector<16x32xf32>
    %cst_29 = arith.constant 0.000000e+00 : f32
    %106 = vector.broadcast %cst_29 : f32 to vector<16x32xf32>
    %107 = arith.subf %106, %105 : vector<16x32xf32>
    %108 = math.exp %107 : vector<16x32xf32>
    %cst_30 = arith.constant 1.000000e+00 : f32
    %109 = vector.broadcast %cst_30 : f32 to vector<16x32xf32>
    %110 = arith.addf %109, %108 : vector<16x32xf32>
    %cst_31 = arith.constant 1.000000e+00 : f32
    %111 = vector.broadcast %cst_31 : f32 to vector<16x32xf32>
    %112 = arith.divf %111, %110 : vector<16x32xf32>
    %113 = vector.extract_strided_slice %104 {offsets = [0, 32], sizes = [16, 32], strides = [1, 1]} : vector<16x128xf32> to vector<16x32xf32>
    %cst_32 = arith.constant 0.000000e+00 : f32
    %114 = vector.broadcast %cst_32 : f32 to vector<16x32xf32>
    %115 = arith.subf %114, %113 : vector<16x32xf32>
    %116 = math.exp %115 : vector<16x32xf32>
    %cst_33 = arith.constant 1.000000e+00 : f32
    %117 = vector.broadcast %cst_33 : f32 to vector<16x32xf32>
    %118 = arith.addf %117, %116 : vector<16x32xf32>
    %cst_34 = arith.constant 1.000000e+00 : f32
    %119 = vector.broadcast %cst_34 : f32 to vector<16x32xf32>
    %120 = arith.divf %119, %118 : vector<16x32xf32>
    %121 = vector.extract_strided_slice %104 {offsets = [0, 64], sizes = [16, 32], strides = [1, 1]} : vector<16x128xf32> to vector<16x32xf32>
    %122 = math.tanh %121 : vector<16x32xf32>
    %123 = vector.extract_strided_slice %104 {offsets = [0, 96], sizes = [16, 32], strides = [1, 1]} : vector<16x128xf32> to vector<16x32xf32>
    %cst_35 = arith.constant 0.000000e+00 : f32
    %124 = vector.broadcast %cst_35 : f32 to vector<16x32xf32>
    %125 = arith.subf %124, %123 : vector<16x32xf32>
    %126 = math.exp %125 : vector<16x32xf32>
    %cst_36 = arith.constant 1.000000e+00 : f32
    %127 = vector.broadcast %cst_36 : f32 to vector<16x32xf32>
    %128 = arith.addf %127, %126 : vector<16x32xf32>
    %cst_37 = arith.constant 1.000000e+00 : f32
    %129 = vector.broadcast %cst_37 : f32 to vector<16x32xf32>
    %130 = arith.divf %129, %128 : vector<16x32xf32>
    %131 = arith.mulf %120, %93 : vector<16x32xf32>
    %132 = arith.mulf %112, %122 : vector<16x32xf32>
    %133 = arith.addf %131, %132 : vector<16x32xf32>
    %134 = math.tanh %133 : vector<16x32xf32>
    %135 = arith.mulf %130, %134 : vector<16x32xf32>
    %136 = arith.index_cast %c1_i32 : i32 to index
    %c0_38 = arith.constant 0 : index
    %c0_39 = arith.constant 0 : index
    %137 = vector.load %arg11[%136, %c0_38, %c0_39] : memref<16x16x32xf32, #tpu.memory_space<vmem>>, vector<1x16x32xf32>
    %138 = vector.shape_cast %137 : vector<1x16x32xf32> to vector<16x32xf32>
    %139 = vector.shape_cast %135 : vector<16x32xf32> to vector<1x16x32xf32>
    tpu.vector_store %arg11[%136, %c0_38, %c0_39], %139 {strides = array<i32>} : memref<16x16x32xf32, #tpu.memory_space<vmem>>, vector<1x16x32xf32>,
    %c2_i32 = arith.constant 2 : i32
    %140 = arith.index_cast %c2_i32 : i32 to index
    %c0_40 = arith.constant 0 : index
    %c0_41 = arith.constant 0 : index
    %141 = vector.load %arg10[%140, %c0_40, %c0_41] : memref<16x16x128xf32, #tpu.memory_space<vmem>>, vector<1x16x128xf32>
    %142 = vector.shape_cast %141 : vector<1x16x128xf32> to vector<16x128xf32>
    %cst_42 = arith.constant dense<0.000000e+00> : vector<16x128xf32>
    %143 = tpu.matmul %135, %58, %cst_42 {dimension_numbers = #tpu.dot_dimension_numbers<[1], [0], [0], [1], [0, 0, 1, 1], [], []>} : vector<16x32xf32>, vector<32x128xf32>, vector<16x128xf32> -> vector<16x128xf32>
    %144 = arith.addf %142, %143 : vector<16x128xf32>
    %145 = vector.extract_strided_slice %144 {offsets = [0, 0], sizes = [16, 32], strides = [1, 1]} : vector<16x128xf32> to vector<16x32xf32>
    %cst_43 = arith.constant 0.000000e+00 : f32
    %146 = vector.broadcast %cst_43 : f32 to vector<16x32xf32>
    %147 = arith.subf %146, %145 : vector<16x32xf32>
    %148 = math.exp %147 : vector<16x32xf32>
    %cst_44 = arith.constant 1.000000e+00 : f32
    %149 = vector.broadcast %cst_44 : f32 to vector<16x32xf32>
    %150 = arith.addf %149, %148 : vector<16x32xf32>
    %cst_45 = arith.constant 1.000000e+00 : f32
    %151 = vector.broadcast %cst_45 : f32 to vector<16x32xf32>
    %152 = arith.divf %151, %150 : vector<16x32xf32>
    %153 = vector.extract_strided_slice %144 {offsets = [0, 32], sizes = [16, 32], strides = [1, 1]} : vector<16x128xf32> to vector<16x32xf32>
    %cst_46 = arith.constant 0.000000e+00 : f32
    %154 = vector.broadcast %cst_46 : f32 to vector<16x32xf32>
    %155 = arith.subf %154, %153 : vector<16x32xf32>
    %156 = math.exp %155 : vector<16x32xf32>
    %cst_47 = arith.constant 1.000000e+00 : f32
    %157 = vector.broadcast %cst_47 : f32 to vector<16x32xf32>
    %158 = arith.addf %157, %156 : vector<16x32xf32>
    %cst_48 = arith.constant 1.000000e+00 : f32
    %159 = vector.broadcast %cst_48 : f32 to vector<16x32xf32>
    %160 = arith.divf %159, %158 : vector<16x32xf32>
    %161 = vector.extract_strided_slice %144 {offsets = [0, 64], sizes = [16, 32], strides = [1, 1]} : vector<16x128xf32> to vector<16x32xf32>
    %162 = math.tanh %161 : vector<16x32xf32>
    %163 = vector.extract_strided_slice %144 {offsets = [0, 96], sizes = [16, 32], strides = [1, 1]} : vector<16x128xf32> to vector<16x32xf32>
    %cst_49 = arith.constant 0.000000e+00 : f32
    %164 = vector.broadcast %cst_49 : f32 to vector<16x32xf32>
    %165 = arith.subf %164, %163 : vector<16x32xf32>
    %166 = math.exp %165 : vector<16x32xf32>
    %cst_50 = arith.constant 1.000000e+00 : f32
    %167 = vector.broadcast %cst_50 : f32 to vector<16x32xf32>
    %168 = arith.addf %167, %166 : vector<16x32xf32>
    %cst_51 = arith.constant 1.000000e+00 : f32
    %169 = vector.broadcast %cst_51 : f32 to vector<16x32xf32>
    %170 = arith.divf %169, %168 : vector<16x32xf32>
    %171 = arith.mulf %160, %133 : vector<16x32xf32>
    %172 = arith.mulf %152, %162 : vector<16x32xf32>
    %173 = arith.addf %171, %172 : vector<16x32xf32>
    %174 = math.tanh %173 : vector<16x32xf32>
    %175 = arith.mulf %170, %174 : vector<16x32xf32>
    %176 = arith.index_cast %c2_i32 : i32 to index
    %c0_52 = arith.constant 0 : index
    %c0_53 = arith.constant 0 : index
    %177 = vector.load %arg11[%176, %c0_52, %c0_53] : memref<16x16x32xf32, #tpu.memory_space<vmem>>, vector<1x16x32xf32>
    %178 = vector.shape_cast %177 : vector<1x16x32xf32> to vector<16x32xf32>
    %179 = vector.shape_cast %175 : vector<16x32xf32> to vector<1x16x32xf32>
    tpu.vector_store %arg11[%176, %c0_52, %c0_53], %179 {strides = array<i32>} : memref<16x16x32xf32, #tpu.memory_space<vmem>>, vector<1x16x32xf32>,
    %c3_i32 = arith.constant 3 : i32
    %180 = arith.index_cast %c3_i32 : i32 to index
    %c0_54 = arith.constant 0 : index
    %c0_55 = arith.constant 0 : index
    %181 = vector.load %arg10[%180, %c0_54, %c0_55] : memref<16x16x128xf32, #tpu.memory_space<vmem>>, vector<1x16x128xf32>
    %182 = vector.shape_cast %181 : vector<1x16x128xf32> to vector<16x128xf32>
    %cst_56 = arith.constant dense<0.000000e+00> : vector<16x128xf32>
    %183 = tpu.matmul %175, %58, %cst_56 {dimension_numbers = #tpu.dot_dimension_numbers<[1], [0], [0], [1], [0, 0, 1, 1], [], []>} : vector<16x32xf32>, vector<32x128xf32>, vector<16x128xf32> -> vector<16x128xf32>
    %184 = arith.addf %182, %183 : vector<16x128xf32>
    %185 = vector.extract_strided_slice %184 {offsets = [0, 0], sizes = [16, 32], strides = [1, 1]} : vector<16x128xf32> to vector<16x32xf32>
    %cst_57 = arith.constant 0.000000e+00 : f32
    %186 = vector.broadcast %cst_57 : f32 to vector<16x32xf32>
    %187 = arith.subf %186, %185 : vector<16x32xf32>
    %188 = math.exp %187 : vector<16x32xf32>
    %cst_58 = arith.constant 1.000000e+00 : f32
    %189 = vector.broadcast %cst_58 : f32 to vector<16x32xf32>
    %190 = arith.addf %189, %188 : vector<16x32xf32>
    %cst_59 = arith.constant 1.000000e+00 : f32
    %191 = vector.broadcast %cst_59 : f32 to vector<16x32xf32>
    %192 = arith.divf %191, %190 : vector<16x32xf32>
    %193 = vector.extract_strided_slice %184 {offsets = [0, 32], sizes = [16, 32], strides = [1, 1]} : vector<16x128xf32> to vector<16x32xf32>
    %cst_60 = arith.constant 0.000000e+00 : f32
    %194 = vector.broadcast %cst_60 : f32 to vector<16x32xf32>
    %195 = arith.subf %194, %193 : vector<16x32xf32>
    %196 = math.exp %195 : vector<16x32xf32>
    %cst_61 = arith.constant 1.000000e+00 : f32
    %197 = vector.broadcast %cst_61 : f32 to vector<16x32xf32>
    %198 = arith.addf %197, %196 : vector<16x32xf32>
    %cst_62 = arith.constant 1.000000e+00 : f32
    %199 = vector.broadcast %cst_62 : f32 to vector<16x32xf32>
    %200 = arith.divf %199, %198 : vector<16x32xf32>
    %201 = vector.extract_strided_slice %184 {offsets = [0, 64], sizes = [16, 32], strides = [1, 1]} : vector<16x128xf32> to vector<16x32xf32>
    %202 = math.tanh %201 : vector<16x32xf32>
    %203 = vector.extract_strided_slice %184 {offsets = [0, 96], sizes = [16, 32], strides = [1, 1]} : vector<16x128xf32> to vector<16x32xf32>
    %cst_63 = arith.constant 0.000000e+00 : f32
    %204 = vector.broadcast %cst_63 : f32 to vector<16x32xf32>
    %205 = arith.subf %204, %203 : vector<16x32xf32>
    %206 = math.exp %205 : vector<16x32xf32>
    %cst_64 = arith.constant 1.000000e+00 : f32
    %207 = vector.broadcast %cst_64 : f32 to vector<16x32xf32>
    %208 = arith.addf %207, %206 : vector<16x32xf32>
    %cst_65 = arith.constant 1.000000e+00 : f32
    %209 = vector.broadcast %cst_65 : f32 to vector<16x32xf32>
    %210 = arith.divf %209, %208 : vector<16x32xf32>
    %211 = arith.mulf %200, %173 : vector<16x32xf32>
    %212 = arith.mulf %192, %202 : vector<16x32xf32>
    %213 = arith.addf %211, %212 : vector<16x32xf32>
    %214 = math.tanh %213 : vector<16x32xf32>
    %215 = arith.mulf %210, %214 : vector<16x32xf32>
    %216 = arith.index_cast %c3_i32 : i32 to index
    %c0_66 = arith.constant 0 : index
    %c0_67 = arith.constant 0 : index
    %217 = vector.load %arg11[%216, %c0_66, %c0_67] : memref<16x16x32xf32, #tpu.memory_space<vmem>>, vector<1x16x32xf32>
    %218 = vector.shape_cast %217 : vector<1x16x32xf32> to vector<16x32xf32>
    %219 = vector.shape_cast %215 : vector<16x32xf32> to vector<1x16x32xf32>
    tpu.vector_store %arg11[%216, %c0_66, %c0_67], %219 {strides = array<i32>} : memref<16x16x32xf32, #tpu.memory_space<vmem>>, vector<1x16x32xf32>,
    %c4_i32 = arith.constant 4 : i32
    %220 = arith.index_cast %c4_i32 : i32 to index
    %c0_68 = arith.constant 0 : index
    %c0_69 = arith.constant 0 : index
    %221 = vector.load %arg10[%220, %c0_68, %c0_69] : memref<16x16x128xf32, #tpu.memory_space<vmem>>, vector<1x16x128xf32>
    %222 = vector.shape_cast %221 : vector<1x16x128xf32> to vector<16x128xf32>
    %cst_70 = arith.constant dense<0.000000e+00> : vector<16x128xf32>
    %223 = tpu.matmul %215, %58, %cst_70 {dimension_numbers = #tpu.dot_dimension_numbers<[1], [0], [0], [1], [0, 0, 1, 1], [], []>} : vector<16x32xf32>, vector<32x128xf32>, vector<16x128xf32> -> vector<16x128xf32>
    %224 = arith.addf %222, %223 : vector<16x128xf32>
    %225 = vector.extract_strided_slice %224 {offsets = [0, 0], sizes = [16, 32], strides = [1, 1]} : vector<16x128xf32> to vector<16x32xf32>
    %cst_71 = arith.constant 0.000000e+00 : f32
    %226 = vector.broadcast %cst_71 : f32 to vector<16x32xf32>
    %227 = arith.subf %226, %225 : vector<16x32xf32>
    %228 = math.exp %227 : vector<16x32xf32>
    %cst_72 = arith.constant 1.000000e+00 : f32
    %229 = vector.broadcast %cst_72 : f32 to vector<16x32xf32>
    %230 = arith.addf %229, %228 : vector<16x32xf32>
    %cst_73 = arith.constant 1.000000e+00 : f32
    %231 = vector.broadcast %cst_73 : f32 to vector<16x32xf32>
    %232 = arith.divf %231, %230 : vector<16x32xf32>
    %233 = vector.extract_strided_slice %224 {offsets = [0, 32], sizes = [16, 32], strides = [1, 1]} : vector<16x128xf32> to vector<16x32xf32>
    %cst_74 = arith.constant 0.000000e+00 : f32
    %234 = vector.broadcast %cst_74 : f32 to vector<16x32xf32>
    %235 = arith.subf %234, %233 : vector<16x32xf32>
    %236 = math.exp %235 : vector<16x32xf32>
    %cst_75 = arith.constant 1.000000e+00 : f32
    %237 = vector.broadcast %cst_75 : f32 to vector<16x32xf32>
    %238 = arith.addf %237, %236 : vector<16x32xf32>
    %cst_76 = arith.constant 1.000000e+00 : f32
    %239 = vector.broadcast %cst_76 : f32 to vector<16x32xf32>
    %240 = arith.divf %239, %238 : vector<16x32xf32>
    %241 = vector.extract_strided_slice %224 {offsets = [0, 64], sizes = [16, 32], strides = [1, 1]} : vector<16x128xf32> to vector<16x32xf32>
    %242 = math.tanh %241 : vector<16x32xf32>
    %243 = vector.extract_strided_slice %224 {offsets = [0, 96], sizes = [16, 32], strides = [1, 1]} : vector<16x128xf32> to vector<16x32xf32>
    %cst_77 = arith.constant 0.000000e+00 : f32
    %244 = vector.broadcast %cst_77 : f32 to vector<16x32xf32>
    %245 = arith.subf %244, %243 : vector<16x32xf32>
    %246 = math.exp %245 : vector<16x32xf32>
    %cst_78 = arith.constant 1.000000e+00 : f32
    %247 = vector.broadcast %cst_78 : f32 to vector<16x32xf32>
    %248 = arith.addf %247, %246 : vector<16x32xf32>
    %cst_79 = arith.constant 1.000000e+00 : f32
    %249 = vector.broadcast %cst_79 : f32 to vector<16x32xf32>
    %250 = arith.divf %249, %248 : vector<16x32xf32>
    %251 = arith.mulf %240, %213 : vector<16x32xf32>
    %252 = arith.mulf %232, %242 : vector<16x32xf32>
    %253 = arith.addf %251, %252 : vector<16x32xf32>
    %254 = math.tanh %253 : vector<16x32xf32>
    %255 = arith.mulf %250, %254 : vector<16x32xf32>
    %256 = arith.index_cast %c4_i32 : i32 to index
    %c0_80 = arith.constant 0 : index
    %c0_81 = arith.constant 0 : index
    %257 = vector.load %arg11[%256, %c0_80, %c0_81] : memref<16x16x32xf32, #tpu.memory_space<vmem>>, vector<1x16x32xf32>
    %258 = vector.shape_cast %257 : vector<1x16x32xf32> to vector<16x32xf32>
    %259 = vector.shape_cast %255 : vector<16x32xf32> to vector<1x16x32xf32>
    tpu.vector_store %arg11[%256, %c0_80, %c0_81], %259 {strides = array<i32>} : memref<16x16x32xf32, #tpu.memory_space<vmem>>, vector<1x16x32xf32>,
    %c5_i32 = arith.constant 5 : i32
    %260 = arith.index_cast %c5_i32 : i32 to index
    %c0_82 = arith.constant 0 : index
    %c0_83 = arith.constant 0 : index
    %261 = vector.load %arg10[%260, %c0_82, %c0_83] : memref<16x16x128xf32, #tpu.memory_space<vmem>>, vector<1x16x128xf32>
    %262 = vector.shape_cast %261 : vector<1x16x128xf32> to vector<16x128xf32>
    %cst_84 = arith.constant dense<0.000000e+00> : vector<16x128xf32>
    %263 = tpu.matmul %255, %58, %cst_84 {dimension_numbers = #tpu.dot_dimension_numbers<[1], [0], [0], [1], [0, 0, 1, 1], [], []>} : vector<16x32xf32>, vector<32x128xf32>, vector<16x128xf32> -> vector<16x128xf32>
    %264 = arith.addf %262, %263 : vector<16x128xf32>
    %265 = vector.extract_strided_slice %264 {offsets = [0, 0], sizes = [16, 32], strides = [1, 1]} : vector<16x128xf32> to vector<16x32xf32>
    %cst_85 = arith.constant 0.000000e+00 : f32
    %266 = vector.broadcast %cst_85 : f32 to vector<16x32xf32>
    %267 = arith.subf %266, %265 : vector<16x32xf32>
    %268 = math.exp %267 : vector<16x32xf32>
    %cst_86 = arith.constant 1.000000e+00 : f32
    %269 = vector.broadcast %cst_86 : f32 to vector<16x32xf32>
    %270 = arith.addf %269, %268 : vector<16x32xf32>
    %cst_87 = arith.constant 1.000000e+00 : f32
    %271 = vector.broadcast %cst_87 : f32 to vector<16x32xf32>
    %272 = arith.divf %271, %270 : vector<16x32xf32>
    %273 = vector.extract_strided_slice %264 {offsets = [0, 32], sizes = [16, 32], strides = [1, 1]} : vector<16x128xf32> to vector<16x32xf32>
    %cst_88 = arith.constant 0.000000e+00 : f32
    %274 = vector.broadcast %cst_88 : f32 to vector<16x32xf32>
    %275 = arith.subf %274, %273 : vector<16x32xf32>
    %276 = math.exp %275 : vector<16x32xf32>
    %cst_89 = arith.constant 1.000000e+00 : f32
    %277 = vector.broadcast %cst_89 : f32 to vector<16x32xf32>
    %278 = arith.addf %277, %276 : vector<16x32xf32>
    %cst_90 = arith.constant 1.000000e+00 : f32
    %279 = vector.broadcast %cst_90 : f32 to vector<16x32xf32>
    %280 = arith.divf %279, %278 : vector<16x32xf32>
    %281 = vector.extract_strided_slice %264 {offsets = [0, 64], sizes = [16, 32], strides = [1, 1]} : vector<16x128xf32> to vector<16x32xf32>
    %282 = math.tanh %281 : vector<16x32xf32>
    %283 = vector.extract_strided_slice %264 {offsets = [0, 96], sizes = [16, 32], strides = [1, 1]} : vector<16x128xf32> to vector<16x32xf32>
    %cst_91 = arith.constant 0.000000e+00 : f32
    %284 = vector.broadcast %cst_91 : f32 to vector<16x32xf32>
    %285 = arith.subf %284, %283 : vector<16x32xf32>
    %286 = math.exp %285 : vector<16x32xf32>
    %cst_92 = arith.constant 1.000000e+00 : f32
    %287 = vector.broadcast %cst_92 : f32 to vector<16x32xf32>
    %288 = arith.addf %287, %286 : vector<16x32xf32>
    %cst_93 = arith.constant 1.000000e+00 : f32
    %289 = vector.broadcast %cst_93 : f32 to vector<16x32xf32>
    %290 = arith.divf %289, %288 : vector<16x32xf32>
    %291 = arith.mulf %280, %253 : vector<16x32xf32>
    %292 = arith.mulf %272, %282 : vector<16x32xf32>
    %293 = arith.addf %291, %292 : vector<16x32xf32>
    %294 = math.tanh %293 : vector<16x32xf32>
    %295 = arith.mulf %290, %294 : vector<16x32xf32>
    %296 = arith.index_cast %c5_i32 : i32 to index
    %c0_94 = arith.constant 0 : index
    %c0_95 = arith.constant 0 : index
    %297 = vector.load %arg11[%296, %c0_94, %c0_95] : memref<16x16x32xf32, #tpu.memory_space<vmem>>, vector<1x16x32xf32>
    %298 = vector.shape_cast %297 : vector<1x16x32xf32> to vector<16x32xf32>
    %299 = vector.shape_cast %295 : vector<16x32xf32> to vector<1x16x32xf32>
    tpu.vector_store %arg11[%296, %c0_94, %c0_95], %299 {strides = array<i32>} : memref<16x16x32xf32, #tpu.memory_space<vmem>>, vector<1x16x32xf32>,
    %c6_i32 = arith.constant 6 : i32
    %300 = arith.index_cast %c6_i32 : i32 to index
    %c0_96 = arith.constant 0 : index
    %c0_97 = arith.constant 0 : index
    %301 = vector.load %arg10[%300, %c0_96, %c0_97] : memref<16x16x128xf32, #tpu.memory_space<vmem>>, vector<1x16x128xf32>
    %302 = vector.shape_cast %301 : vector<1x16x128xf32> to vector<16x128xf32>
    %cst_98 = arith.constant dense<0.000000e+00> : vector<16x128xf32>
    %303 = tpu.matmul %295, %58, %cst_98 {dimension_numbers = #tpu.dot_dimension_numbers<[1], [0], [0], [1], [0, 0, 1, 1], [], []>} : vector<16x32xf32>, vector<32x128xf32>, vector<16x128xf32> -> vector<16x128xf32>
    %304 = arith.addf %302, %303 : vector<16x128xf32>
    %305 = vector.extract_strided_slice %304 {offsets = [0, 0], sizes = [16, 32], strides = [1, 1]} : vector<16x128xf32> to vector<16x32xf32>
    %cst_99 = arith.constant 0.000000e+00 : f32
    %306 = vector.broadcast %cst_99 : f32 to vector<16x32xf32>
    %307 = arith.subf %306, %305 : vector<16x32xf32>
    %308 = math.exp %307 : vector<16x32xf32>
    %cst_100 = arith.constant 1.000000e+00 : f32
    %309 = vector.broadcast %cst_100 : f32 to vector<16x32xf32>
    %310 = arith.addf %309, %308 : vector<16x32xf32>
    %cst_101 = arith.constant 1.000000e+00 : f32
    %311 = vector.broadcast %cst_101 : f32 to vector<16x32xf32>
    %312 = arith.divf %311, %310 : vector<16x32xf32>
    %313 = vector.extract_strided_slice %304 {offsets = [0, 32], sizes = [16, 32], strides = [1, 1]} : vector<16x128xf32> to vector<16x32xf32>
    %cst_102 = arith.constant 0.000000e+00 : f32
    %314 = vector.broadcast %cst_102 : f32 to vector<16x32xf32>
    %315 = arith.subf %314, %313 : vector<16x32xf32>
    %316 = math.exp %315 : vector<16x32xf32>
    %cst_103 = arith.constant 1.000000e+00 : f32
    %317 = vector.broadcast %cst_103 : f32 to vector<16x32xf32>
    %318 = arith.addf %317, %316 : vector<16x32xf32>
    %cst_104 = arith.constant 1.000000e+00 : f32
    %319 = vector.broadcast %cst_104 : f32 to vector<16x32xf32>
    %320 = arith.divf %319, %318 : vector<16x32xf32>
    %321 = vector.extract_strided_slice %304 {offsets = [0, 64], sizes = [16, 32], strides = [1, 1]} : vector<16x128xf32> to vector<16x32xf32>
    %322 = math.tanh %321 : vector<16x32xf32>
    %323 = vector.extract_strided_slice %304 {offsets = [0, 96], sizes = [16, 32], strides = [1, 1]} : vector<16x128xf32> to vector<16x32xf32>
    %cst_105 = arith.constant 0.000000e+00 : f32
    %324 = vector.broadcast %cst_105 : f32 to vector<16x32xf32>
    %325 = arith.subf %324, %323 : vector<16x32xf32>
    %326 = math.exp %325 : vector<16x32xf32>
    %cst_106 = arith.constant 1.000000e+00 : f32
    %327 = vector.broadcast %cst_106 : f32 to vector<16x32xf32>
    %328 = arith.addf %327, %326 : vector<16x32xf32>
    %cst_107 = arith.constant 1.000000e+00 : f32
    %329 = vector.broadcast %cst_107 : f32 to vector<16x32xf32>
    %330 = arith.divf %329, %328 : vector<16x32xf32>
    %331 = arith.mulf %320, %293 : vector<16x32xf32>
    %332 = arith.mulf %312, %322 : vector<16x32xf32>
    %333 = arith.addf %331, %332 : vector<16x32xf32>
    %334 = math.tanh %333 : vector<16x32xf32>
    %335 = arith.mulf %330, %334 : vector<16x32xf32>
    %336 = arith.index_cast %c6_i32 : i32 to index
    %c0_108 = arith.constant 0 : index
    %c0_109 = arith.constant 0 : index
    %337 = vector.load %arg11[%336, %c0_108, %c0_109] : memref<16x16x32xf32, #tpu.memory_space<vmem>>, vector<1x16x32xf32>
    %338 = vector.shape_cast %337 : vector<1x16x32xf32> to vector<16x32xf32>
    %339 = vector.shape_cast %335 : vector<16x32xf32> to vector<1x16x32xf32>
    tpu.vector_store %arg11[%336, %c0_108, %c0_109], %339 {strides = array<i32>} : memref<16x16x32xf32, #tpu.memory_space<vmem>>, vector<1x16x32xf32>,
    %c7_i32 = arith.constant 7 : i32
    %340 = arith.index_cast %c7_i32 : i32 to index
    %c0_110 = arith.constant 0 : index
    %c0_111 = arith.constant 0 : index
    %341 = vector.load %arg10[%340, %c0_110, %c0_111] : memref<16x16x128xf32, #tpu.memory_space<vmem>>, vector<1x16x128xf32>
    %342 = vector.shape_cast %341 : vector<1x16x128xf32> to vector<16x128xf32>
    %cst_112 = arith.constant dense<0.000000e+00> : vector<16x128xf32>
    %343 = tpu.matmul %335, %58, %cst_112 {dimension_numbers = #tpu.dot_dimension_numbers<[1], [0], [0], [1], [0, 0, 1, 1], [], []>} : vector<16x32xf32>, vector<32x128xf32>, vector<16x128xf32> -> vector<16x128xf32>
    %344 = arith.addf %342, %343 : vector<16x128xf32>
    %345 = vector.extract_strided_slice %344 {offsets = [0, 0], sizes = [16, 32], strides = [1, 1]} : vector<16x128xf32> to vector<16x32xf32>
    %cst_113 = arith.constant 0.000000e+00 : f32
    %346 = vector.broadcast %cst_113 : f32 to vector<16x32xf32>
    %347 = arith.subf %346, %345 : vector<16x32xf32>
    %348 = math.exp %347 : vector<16x32xf32>
    %cst_114 = arith.constant 1.000000e+00 : f32
    %349 = vector.broadcast %cst_114 : f32 to vector<16x32xf32>
    %350 = arith.addf %349, %348 : vector<16x32xf32>
    %cst_115 = arith.constant 1.000000e+00 : f32
    %351 = vector.broadcast %cst_115 : f32 to vector<16x32xf32>
    %352 = arith.divf %351, %350 : vector<16x32xf32>
    %353 = vector.extract_strided_slice %344 {offsets = [0, 32], sizes = [16, 32], strides = [1, 1]} : vector<16x128xf32> to vector<16x32xf32>
    %cst_116 = arith.constant 0.000000e+00 : f32
    %354 = vector.broadcast %cst_116 : f32 to vector<16x32xf32>
    %355 = arith.subf %354, %353 : vector<16x32xf32>
    %356 = math.exp %355 : vector<16x32xf32>
    %cst_117 = arith.constant 1.000000e+00 : f32
    %357 = vector.broadcast %cst_117 : f32 to vector<16x32xf32>
    %358 = arith.addf %357, %356 : vector<16x32xf32>
    %cst_118 = arith.constant 1.000000e+00 : f32
    %359 = vector.broadcast %cst_118 : f32 to vector<16x32xf32>
    %360 = arith.divf %359, %358 : vector<16x32xf32>
    %361 = vector.extract_strided_slice %344 {offsets = [0, 64], sizes = [16, 32], strides = [1, 1]} : vector<16x128xf32> to vector<16x32xf32>
    %362 = math.tanh %361 : vector<16x32xf32>
    %363 = vector.extract_strided_slice %344 {offsets = [0, 96], sizes = [16, 32], strides = [1, 1]} : vector<16x128xf32> to vector<16x32xf32>
    %cst_119 = arith.constant 0.000000e+00 : f32
    %364 = vector.broadcast %cst_119 : f32 to vector<16x32xf32>
    %365 = arith.subf %364, %363 : vector<16x32xf32>
    %366 = math.exp %365 : vector<16x32xf32>
    %cst_120 = arith.constant 1.000000e+00 : f32
    %367 = vector.broadcast %cst_120 : f32 to vector<16x32xf32>
    %368 = arith.addf %367, %366 : vector<16x32xf32>
    %cst_121 = arith.constant 1.000000e+00 : f32
    %369 = vector.broadcast %cst_121 : f32 to vector<16x32xf32>
    %370 = arith.divf %369, %368 : vector<16x32xf32>
    %371 = arith.mulf %360, %333 : vector<16x32xf32>
    %372 = arith.mulf %352, %362 : vector<16x32xf32>
    %373 = arith.addf %371, %372 : vector<16x32xf32>
    %374 = math.tanh %373 : vector<16x32xf32>
    %375 = arith.mulf %370, %374 : vector<16x32xf32>
    %376 = arith.index_cast %c7_i32 : i32 to index
    %c0_122 = arith.constant 0 : index
    %c0_123 = arith.constant 0 : index
    %377 = vector.load %arg11[%376, %c0_122, %c0_123] : memref<16x16x32xf32, #tpu.memory_space<vmem>>, vector<1x16x32xf32>
    %378 = vector.shape_cast %377 : vector<1x16x32xf32> to vector<16x32xf32>
    %379 = vector.shape_cast %375 : vector<16x32xf32> to vector<1x16x32xf32>
    tpu.vector_store %arg11[%376, %c0_122, %c0_123], %379 {strides = array<i32>} : memref<16x16x32xf32, #tpu.memory_space<vmem>>, vector<1x16x32xf32>,
    %c8_i32 = arith.constant 8 : i32
    %380 = arith.index_cast %c8_i32 : i32 to index
    %c0_124 = arith.constant 0 : index
    %c0_125 = arith.constant 0 : index
    %381 = vector.load %arg10[%380, %c0_124, %c0_125] : memref<16x16x128xf32, #tpu.memory_space<vmem>>, vector<1x16x128xf32>
    %382 = vector.shape_cast %381 : vector<1x16x128xf32> to vector<16x128xf32>
    %cst_126 = arith.constant dense<0.000000e+00> : vector<16x128xf32>
    %383 = tpu.matmul %375, %58, %cst_126 {dimension_numbers = #tpu.dot_dimension_numbers<[1], [0], [0], [1], [0, 0, 1, 1], [], []>} : vector<16x32xf32>, vector<32x128xf32>, vector<16x128xf32> -> vector<16x128xf32>
    %384 = arith.addf %382, %383 : vector<16x128xf32>
    %385 = vector.extract_strided_slice %384 {offsets = [0, 0], sizes = [16, 32], strides = [1, 1]} : vector<16x128xf32> to vector<16x32xf32>
    %cst_127 = arith.constant 0.000000e+00 : f32
    %386 = vector.broadcast %cst_127 : f32 to vector<16x32xf32>
    %387 = arith.subf %386, %385 : vector<16x32xf32>
    %388 = math.exp %387 : vector<16x32xf32>
    %cst_128 = arith.constant 1.000000e+00 : f32
    %389 = vector.broadcast %cst_128 : f32 to vector<16x32xf32>
    %390 = arith.addf %389, %388 : vector<16x32xf32>
    %cst_129 = arith.constant 1.000000e+00 : f32
    %391 = vector.broadcast %cst_129 : f32 to vector<16x32xf32>
    %392 = arith.divf %391, %390 : vector<16x32xf32>
    %393 = vector.extract_strided_slice %384 {offsets = [0, 32], sizes = [16, 32], strides = [1, 1]} : vector<16x128xf32> to vector<16x32xf32>
    %cst_130 = arith.constant 0.000000e+00 : f32
    %394 = vector.broadcast %cst_130 : f32 to vector<16x32xf32>
    %395 = arith.subf %394, %393 : vector<16x32xf32>
    %396 = math.exp %395 : vector<16x32xf32>
    %cst_131 = arith.constant 1.000000e+00 : f32
    %397 = vector.broadcast %cst_131 : f32 to vector<16x32xf32>
    %398 = arith.addf %397, %396 : vector<16x32xf32>
    %cst_132 = arith.constant 1.000000e+00 : f32
    %399 = vector.broadcast %cst_132 : f32 to vector<16x32xf32>
    %400 = arith.divf %399, %398 : vector<16x32xf32>
    %401 = vector.extract_strided_slice %384 {offsets = [0, 64], sizes = [16, 32], strides = [1, 1]} : vector<16x128xf32> to vector<16x32xf32>
    %402 = math.tanh %401 : vector<16x32xf32>
    %403 = vector.extract_strided_slice %384 {offsets = [0, 96], sizes = [16, 32], strides = [1, 1]} : vector<16x128xf32> to vector<16x32xf32>
    %cst_133 = arith.constant 0.000000e+00 : f32
    %404 = vector.broadcast %cst_133 : f32 to vector<16x32xf32>
    %405 = arith.subf %404, %403 : vector<16x32xf32>
    %406 = math.exp %405 : vector<16x32xf32>
    %cst_134 = arith.constant 1.000000e+00 : f32
    %407 = vector.broadcast %cst_134 : f32 to vector<16x32xf32>
    %408 = arith.addf %407, %406 : vector<16x32xf32>
    %cst_135 = arith.constant 1.000000e+00 : f32
    %409 = vector.broadcast %cst_135 : f32 to vector<16x32xf32>
    %410 = arith.divf %409, %408 : vector<16x32xf32>
    %411 = arith.mulf %400, %373 : vector<16x32xf32>
    %412 = arith.mulf %392, %402 : vector<16x32xf32>
    %413 = arith.addf %411, %412 : vector<16x32xf32>
    %414 = math.tanh %413 : vector<16x32xf32>
    %415 = arith.mulf %410, %414 : vector<16x32xf32>
    %416 = arith.index_cast %c8_i32 : i32 to index
    %c0_136 = arith.constant 0 : index
    %c0_137 = arith.constant 0 : index
    %417 = vector.load %arg11[%416, %c0_136, %c0_137] : memref<16x16x32xf32, #tpu.memory_space<vmem>>, vector<1x16x32xf32>
    %418 = vector.shape_cast %417 : vector<1x16x32xf32> to vector<16x32xf32>
    %419 = vector.shape_cast %415 : vector<16x32xf32> to vector<1x16x32xf32>
    tpu.vector_store %arg11[%416, %c0_136, %c0_137], %419 {strides = array<i32>} : memref<16x16x32xf32, #tpu.memory_space<vmem>>, vector<1x16x32xf32>,
    %c9_i32 = arith.constant 9 : i32
    %420 = arith.index_cast %c9_i32 : i32 to index
    %c0_138 = arith.constant 0 : index
    %c0_139 = arith.constant 0 : index
    %421 = vector.load %arg10[%420, %c0_138, %c0_139] : memref<16x16x128xf32, #tpu.memory_space<vmem>>, vector<1x16x128xf32>
    %422 = vector.shape_cast %421 : vector<1x16x128xf32> to vector<16x128xf32>
    %cst_140 = arith.constant dense<0.000000e+00> : vector<16x128xf32>
    %423 = tpu.matmul %415, %58, %cst_140 {dimension_numbers = #tpu.dot_dimension_numbers<[1], [0], [0], [1], [0, 0, 1, 1], [], []>} : vector<16x32xf32>, vector<32x128xf32>, vector<16x128xf32> -> vector<16x128xf32>
    %424 = arith.addf %422, %423 : vector<16x128xf32>
    %425 = vector.extract_strided_slice %424 {offsets = [0, 0], sizes = [16, 32], strides = [1, 1]} : vector<16x128xf32> to vector<16x32xf32>
    %cst_141 = arith.constant 0.000000e+00 : f32
    %426 = vector.broadcast %cst_141 : f32 to vector<16x32xf32>
    %427 = arith.subf %426, %425 : vector<16x32xf32>
    %428 = math.exp %427 : vector<16x32xf32>
    %cst_142 = arith.constant 1.000000e+00 : f32
    %429 = vector.broadcast %cst_142 : f32 to vector<16x32xf32>
    %430 = arith.addf %429, %428 : vector<16x32xf32>
    %cst_143 = arith.constant 1.000000e+00 : f32
    %431 = vector.broadcast %cst_143 : f32 to vector<16x32xf32>
    %432 = arith.divf %431, %430 : vector<16x32xf32>
    %433 = vector.extract_strided_slice %424 {offsets = [0, 32], sizes = [16, 32], strides = [1, 1]} : vector<16x128xf32> to vector<16x32xf32>
    %cst_144 = arith.constant 0.000000e+00 : f32
    %434 = vector.broadcast %cst_144 : f32 to vector<16x32xf32>
    %435 = arith.subf %434, %433 : vector<16x32xf32>
    %436 = math.exp %435 : vector<16x32xf32>
    %cst_145 = arith.constant 1.000000e+00 : f32
    %437 = vector.broadcast %cst_145 : f32 to vector<16x32xf32>
    %438 = arith.addf %437, %436 : vector<16x32xf32>
    %cst_146 = arith.constant 1.000000e+00 : f32
    %439 = vector.broadcast %cst_146 : f32 to vector<16x32xf32>
    %440 = arith.divf %439, %438 : vector<16x32xf32>
    %441 = vector.extract_strided_slice %424 {offsets = [0, 64], sizes = [16, 32], strides = [1, 1]} : vector<16x128xf32> to vector<16x32xf32>
    %442 = math.tanh %441 : vector<16x32xf32>
    %443 = vector.extract_strided_slice %424 {offsets = [0, 96], sizes = [16, 32], strides = [1, 1]} : vector<16x128xf32> to vector<16x32xf32>
    %cst_147 = arith.constant 0.000000e+00 : f32
    %444 = vector.broadcast %cst_147 : f32 to vector<16x32xf32>
    %445 = arith.subf %444, %443 : vector<16x32xf32>
    %446 = math.exp %445 : vector<16x32xf32>
    %cst_148 = arith.constant 1.000000e+00 : f32
    %447 = vector.broadcast %cst_148 : f32 to vector<16x32xf32>
    %448 = arith.addf %447, %446 : vector<16x32xf32>
    %cst_149 = arith.constant 1.000000e+00 : f32
    %449 = vector.broadcast %cst_149 : f32 to vector<16x32xf32>
    %450 = arith.divf %449, %448 : vector<16x32xf32>
    %451 = arith.mulf %440, %413 : vector<16x32xf32>
    %452 = arith.mulf %432, %442 : vector<16x32xf32>
    %453 = arith.addf %451, %452 : vector<16x32xf32>
    %454 = math.tanh %453 : vector<16x32xf32>
    %455 = arith.mulf %450, %454 : vector<16x32xf32>
    %456 = arith.index_cast %c9_i32 : i32 to index
    %c0_150 = arith.constant 0 : index
    %c0_151 = arith.constant 0 : index
    %457 = vector.load %arg11[%456, %c0_150, %c0_151] : memref<16x16x32xf32, #tpu.memory_space<vmem>>, vector<1x16x32xf32>
    %458 = vector.shape_cast %457 : vector<1x16x32xf32> to vector<16x32xf32>
    %459 = vector.shape_cast %455 : vector<16x32xf32> to vector<1x16x32xf32>
    tpu.vector_store %arg11[%456, %c0_150, %c0_151], %459 {strides = array<i32>} : memref<16x16x32xf32, #tpu.memory_space<vmem>>, vector<1x16x32xf32>,
    %c10_i32 = arith.constant 10 : i32
    %460 = arith.index_cast %c10_i32 : i32 to index
    %c0_152 = arith.constant 0 : index
    %c0_153 = arith.constant 0 : index
    %461 = vector.load %arg10[%460, %c0_152, %c0_153] : memref<16x16x128xf32, #tpu.memory_space<vmem>>, vector<1x16x128xf32>
    %462 = vector.shape_cast %461 : vector<1x16x128xf32> to vector<16x128xf32>
    %cst_154 = arith.constant dense<0.000000e+00> : vector<16x128xf32>
    %463 = tpu.matmul %455, %58, %cst_154 {dimension_numbers = #tpu.dot_dimension_numbers<[1], [0], [0], [1], [0, 0, 1, 1], [], []>} : vector<16x32xf32>, vector<32x128xf32>, vector<16x128xf32> -> vector<16x128xf32>
    %464 = arith.addf %462, %463 : vector<16x128xf32>
    %465 = vector.extract_strided_slice %464 {offsets = [0, 0], sizes = [16, 32], strides = [1, 1]} : vector<16x128xf32> to vector<16x32xf32>
    %cst_155 = arith.constant 0.000000e+00 : f32
    %466 = vector.broadcast %cst_155 : f32 to vector<16x32xf32>
    %467 = arith.subf %466, %465 : vector<16x32xf32>
    %468 = math.exp %467 : vector<16x32xf32>
    %cst_156 = arith.constant 1.000000e+00 : f32
    %469 = vector.broadcast %cst_156 : f32 to vector<16x32xf32>
    %470 = arith.addf %469, %468 : vector<16x32xf32>
    %cst_157 = arith.constant 1.000000e+00 : f32
    %471 = vector.broadcast %cst_157 : f32 to vector<16x32xf32>
    %472 = arith.divf %471, %470 : vector<16x32xf32>
    %473 = vector.extract_strided_slice %464 {offsets = [0, 32], sizes = [16, 32], strides = [1, 1]} : vector<16x128xf32> to vector<16x32xf32>
    %cst_158 = arith.constant 0.000000e+00 : f32
    %474 = vector.broadcast %cst_158 : f32 to vector<16x32xf32>
    %475 = arith.subf %474, %473 : vector<16x32xf32>
    %476 = math.exp %475 : vector<16x32xf32>
    %cst_159 = arith.constant 1.000000e+00 : f32
    %477 = vector.broadcast %cst_159 : f32 to vector<16x32xf32>
    %478 = arith.addf %477, %476 : vector<16x32xf32>
    %cst_160 = arith.constant 1.000000e+00 : f32
    %479 = vector.broadcast %cst_160 : f32 to vector<16x32xf32>
    %480 = arith.divf %479, %478 : vector<16x32xf32>
    %481 = vector.extract_strided_slice %464 {offsets = [0, 64], sizes = [16, 32], strides = [1, 1]} : vector<16x128xf32> to vector<16x32xf32>
    %482 = math.tanh %481 : vector<16x32xf32>
    %483 = vector.extract_strided_slice %464 {offsets = [0, 96], sizes = [16, 32], strides = [1, 1]} : vector<16x128xf32> to vector<16x32xf32>
    %cst_161 = arith.constant 0.000000e+00 : f32
    %484 = vector.broadcast %cst_161 : f32 to vector<16x32xf32>
    %485 = arith.subf %484, %483 : vector<16x32xf32>
    %486 = math.exp %485 : vector<16x32xf32>
    %cst_162 = arith.constant 1.000000e+00 : f32
    %487 = vector.broadcast %cst_162 : f32 to vector<16x32xf32>
    %488 = arith.addf %487, %486 : vector<16x32xf32>
    %cst_163 = arith.constant 1.000000e+00 : f32
    %489 = vector.broadcast %cst_163 : f32 to vector<16x32xf32>
    %490 = arith.divf %489, %488 : vector<16x32xf32>
    %491 = arith.mulf %480, %453 : vector<16x32xf32>
    %492 = arith.mulf %472, %482 : vector<16x32xf32>
    %493 = arith.addf %491, %492 : vector<16x32xf32>
    %494 = math.tanh %493 : vector<16x32xf32>
    %495 = arith.mulf %490, %494 : vector<16x32xf32>
    %496 = arith.index_cast %c10_i32 : i32 to index
    %c0_164 = arith.constant 0 : index
    %c0_165 = arith.constant 0 : index
    %497 = vector.load %arg11[%496, %c0_164, %c0_165] : memref<16x16x32xf32, #tpu.memory_space<vmem>>, vector<1x16x32xf32>
    %498 = vector.shape_cast %497 : vector<1x16x32xf32> to vector<16x32xf32>
    %499 = vector.shape_cast %495 : vector<16x32xf32> to vector<1x16x32xf32>
    tpu.vector_store %arg11[%496, %c0_164, %c0_165], %499 {strides = array<i32>} : memref<16x16x32xf32, #tpu.memory_space<vmem>>, vector<1x16x32xf32>,
    %c11_i32 = arith.constant 11 : i32
    %500 = arith.index_cast %c11_i32 : i32 to index
    %c0_166 = arith.constant 0 : index
    %c0_167 = arith.constant 0 : index
    %501 = vector.load %arg10[%500, %c0_166, %c0_167] : memref<16x16x128xf32, #tpu.memory_space<vmem>>, vector<1x16x128xf32>
    %502 = vector.shape_cast %501 : vector<1x16x128xf32> to vector<16x128xf32>
    %cst_168 = arith.constant dense<0.000000e+00> : vector<16x128xf32>
    %503 = tpu.matmul %495, %58, %cst_168 {dimension_numbers = #tpu.dot_dimension_numbers<[1], [0], [0], [1], [0, 0, 1, 1], [], []>} : vector<16x32xf32>, vector<32x128xf32>, vector<16x128xf32> -> vector<16x128xf32>
    %504 = arith.addf %502, %503 : vector<16x128xf32>
    %505 = vector.extract_strided_slice %504 {offsets = [0, 0], sizes = [16, 32], strides = [1, 1]} : vector<16x128xf32> to vector<16x32xf32>
    %cst_169 = arith.constant 0.000000e+00 : f32
    %506 = vector.broadcast %cst_169 : f32 to vector<16x32xf32>
    %507 = arith.subf %506, %505 : vector<16x32xf32>
    %508 = math.exp %507 : vector<16x32xf32>
    %cst_170 = arith.constant 1.000000e+00 : f32
    %509 = vector.broadcast %cst_170 : f32 to vector<16x32xf32>
    %510 = arith.addf %509, %508 : vector<16x32xf32>
    %cst_171 = arith.constant 1.000000e+00 : f32
    %511 = vector.broadcast %cst_171 : f32 to vector<16x32xf32>
    %512 = arith.divf %511, %510 : vector<16x32xf32>
    %513 = vector.extract_strided_slice %504 {offsets = [0, 32], sizes = [16, 32], strides = [1, 1]} : vector<16x128xf32> to vector<16x32xf32>
    %cst_172 = arith.constant 0.000000e+00 : f32
    %514 = vector.broadcast %cst_172 : f32 to vector<16x32xf32>
    %515 = arith.subf %514, %513 : vector<16x32xf32>
    %516 = math.exp %515 : vector<16x32xf32>
    %cst_173 = arith.constant 1.000000e+00 : f32
    %517 = vector.broadcast %cst_173 : f32 to vector<16x32xf32>
    %518 = arith.addf %517, %516 : vector<16x32xf32>
    %cst_174 = arith.constant 1.000000e+00 : f32
    %519 = vector.broadcast %cst_174 : f32 to vector<16x32xf32>
    %520 = arith.divf %519, %518 : vector<16x32xf32>
    %521 = vector.extract_strided_slice %504 {offsets = [0, 64], sizes = [16, 32], strides = [1, 1]} : vector<16x128xf32> to vector<16x32xf32>
    %522 = math.tanh %521 : vector<16x32xf32>
    %523 = vector.extract_strided_slice %504 {offsets = [0, 96], sizes = [16, 32], strides = [1, 1]} : vector<16x128xf32> to vector<16x32xf32>
    %cst_175 = arith.constant 0.000000e+00 : f32
    %524 = vector.broadcast %cst_175 : f32 to vector<16x32xf32>
    %525 = arith.subf %524, %523 : vector<16x32xf32>
    %526 = math.exp %525 : vector<16x32xf32>
    %cst_176 = arith.constant 1.000000e+00 : f32
    %527 = vector.broadcast %cst_176 : f32 to vector<16x32xf32>
    %528 = arith.addf %527, %526 : vector<16x32xf32>
    %cst_177 = arith.constant 1.000000e+00 : f32
    %529 = vector.broadcast %cst_177 : f32 to vector<16x32xf32>
    %530 = arith.divf %529, %528 : vector<16x32xf32>
    %531 = arith.mulf %520, %493 : vector<16x32xf32>
    %532 = arith.mulf %512, %522 : vector<16x32xf32>
    %533 = arith.addf %531, %532 : vector<16x32xf32>
    %534 = math.tanh %533 : vector<16x32xf32>
    %535 = arith.mulf %530, %534 : vector<16x32xf32>
    %536 = arith.index_cast %c11_i32 : i32 to index
    %c0_178 = arith.constant 0 : index
    %c0_179 = arith.constant 0 : index
    %537 = vector.load %arg11[%536, %c0_178, %c0_179] : memref<16x16x32xf32, #tpu.memory_space<vmem>>, vector<1x16x32xf32>
    %538 = vector.shape_cast %537 : vector<1x16x32xf32> to vector<16x32xf32>
    %539 = vector.shape_cast %535 : vector<16x32xf32> to vector<1x16x32xf32>
    tpu.vector_store %arg11[%536, %c0_178, %c0_179], %539 {strides = array<i32>} : memref<16x16x32xf32, #tpu.memory_space<vmem>>, vector<1x16x32xf32>,
    %c12_i32 = arith.constant 12 : i32
    %540 = arith.index_cast %c12_i32 : i32 to index
    %c0_180 = arith.constant 0 : index
    %c0_181 = arith.constant 0 : index
    %541 = vector.load %arg10[%540, %c0_180, %c0_181] : memref<16x16x128xf32, #tpu.memory_space<vmem>>, vector<1x16x128xf32>
    %542 = vector.shape_cast %541 : vector<1x16x128xf32> to vector<16x128xf32>
    %cst_182 = arith.constant dense<0.000000e+00> : vector<16x128xf32>
    %543 = tpu.matmul %535, %58, %cst_182 {dimension_numbers = #tpu.dot_dimension_numbers<[1], [0], [0], [1], [0, 0, 1, 1], [], []>} : vector<16x32xf32>, vector<32x128xf32>, vector<16x128xf32> -> vector<16x128xf32>
    %544 = arith.addf %542, %543 : vector<16x128xf32>
    %545 = vector.extract_strided_slice %544 {offsets = [0, 0], sizes = [16, 32], strides = [1, 1]} : vector<16x128xf32> to vector<16x32xf32>
    %cst_183 = arith.constant 0.000000e+00 : f32
    %546 = vector.broadcast %cst_183 : f32 to vector<16x32xf32>
    %547 = arith.subf %546, %545 : vector<16x32xf32>
    %548 = math.exp %547 : vector<16x32xf32>
    %cst_184 = arith.constant 1.000000e+00 : f32
    %549 = vector.broadcast %cst_184 : f32 to vector<16x32xf32>
    %550 = arith.addf %549, %548 : vector<16x32xf32>
    %cst_185 = arith.constant 1.000000e+00 : f32
    %551 = vector.broadcast %cst_185 : f32 to vector<16x32xf32>
    %552 = arith.divf %551, %550 : vector<16x32xf32>
    %553 = vector.extract_strided_slice %544 {offsets = [0, 32], sizes = [16, 32], strides = [1, 1]} : vector<16x128xf32> to vector<16x32xf32>
    %cst_186 = arith.constant 0.000000e+00 : f32
    %554 = vector.broadcast %cst_186 : f32 to vector<16x32xf32>
    %555 = arith.subf %554, %553 : vector<16x32xf32>
    %556 = math.exp %555 : vector<16x32xf32>
    %cst_187 = arith.constant 1.000000e+00 : f32
    %557 = vector.broadcast %cst_187 : f32 to vector<16x32xf32>
    %558 = arith.addf %557, %556 : vector<16x32xf32>
    %cst_188 = arith.constant 1.000000e+00 : f32
    %559 = vector.broadcast %cst_188 : f32 to vector<16x32xf32>
    %560 = arith.divf %559, %558 : vector<16x32xf32>
    %561 = vector.extract_strided_slice %544 {offsets = [0, 64], sizes = [16, 32], strides = [1, 1]} : vector<16x128xf32> to vector<16x32xf32>
    %562 = math.tanh %561 : vector<16x32xf32>
    %563 = vector.extract_strided_slice %544 {offsets = [0, 96], sizes = [16, 32], strides = [1, 1]} : vector<16x128xf32> to vector<16x32xf32>
    %cst_189 = arith.constant 0.000000e+00 : f32
    %564 = vector.broadcast %cst_189 : f32 to vector<16x32xf32>
    %565 = arith.subf %564, %563 : vector<16x32xf32>
    %566 = math.exp %565 : vector<16x32xf32>
    %cst_190 = arith.constant 1.000000e+00 : f32
    %567 = vector.broadcast %cst_190 : f32 to vector<16x32xf32>
    %568 = arith.addf %567, %566 : vector<16x32xf32>
    %cst_191 = arith.constant 1.000000e+00 : f32
    %569 = vector.broadcast %cst_191 : f32 to vector<16x32xf32>
    %570 = arith.divf %569, %568 : vector<16x32xf32>
    %571 = arith.mulf %560, %533 : vector<16x32xf32>
    %572 = arith.mulf %552, %562 : vector<16x32xf32>
    %573 = arith.addf %571, %572 : vector<16x32xf32>
    %574 = math.tanh %573 : vector<16x32xf32>
    %575 = arith.mulf %570, %574 : vector<16x32xf32>
    %576 = arith.index_cast %c12_i32 : i32 to index
    %c0_192 = arith.constant 0 : index
    %c0_193 = arith.constant 0 : index
    %577 = vector.load %arg11[%576, %c0_192, %c0_193] : memref<16x16x32xf32, #tpu.memory_space<vmem>>, vector<1x16x32xf32>
    %578 = vector.shape_cast %577 : vector<1x16x32xf32> to vector<16x32xf32>
    %579 = vector.shape_cast %575 : vector<16x32xf32> to vector<1x16x32xf32>
    tpu.vector_store %arg11[%576, %c0_192, %c0_193], %579 {strides = array<i32>} : memref<16x16x32xf32, #tpu.memory_space<vmem>>, vector<1x16x32xf32>,
    %c13_i32 = arith.constant 13 : i32
    %580 = arith.index_cast %c13_i32 : i32 to index
    %c0_194 = arith.constant 0 : index
    %c0_195 = arith.constant 0 : index
    %581 = vector.load %arg10[%580, %c0_194, %c0_195] : memref<16x16x128xf32, #tpu.memory_space<vmem>>, vector<1x16x128xf32>
    %582 = vector.shape_cast %581 : vector<1x16x128xf32> to vector<16x128xf32>
    %cst_196 = arith.constant dense<0.000000e+00> : vector<16x128xf32>
    %583 = tpu.matmul %575, %58, %cst_196 {dimension_numbers = #tpu.dot_dimension_numbers<[1], [0], [0], [1], [0, 0, 1, 1], [], []>} : vector<16x32xf32>, vector<32x128xf32>, vector<16x128xf32> -> vector<16x128xf32>
    %584 = arith.addf %582, %583 : vector<16x128xf32>
    %585 = vector.extract_strided_slice %584 {offsets = [0, 0], sizes = [16, 32], strides = [1, 1]} : vector<16x128xf32> to vector<16x32xf32>
    %cst_197 = arith.constant 0.000000e+00 : f32
    %586 = vector.broadcast %cst_197 : f32 to vector<16x32xf32>
    %587 = arith.subf %586, %585 : vector<16x32xf32>
    %588 = math.exp %587 : vector<16x32xf32>
    %cst_198 = arith.constant 1.000000e+00 : f32
    %589 = vector.broadcast %cst_198 : f32 to vector<16x32xf32>
    %590 = arith.addf %589, %588 : vector<16x32xf32>
    %cst_199 = arith.constant 1.000000e+00 : f32
    %591 = vector.broadcast %cst_199 : f32 to vector<16x32xf32>
    %592 = arith.divf %591, %590 : vector<16x32xf32>
    %593 = vector.extract_strided_slice %584 {offsets = [0, 32], sizes = [16, 32], strides = [1, 1]} : vector<16x128xf32> to vector<16x32xf32>
    %cst_200 = arith.constant 0.000000e+00 : f32
    %594 = vector.broadcast %cst_200 : f32 to vector<16x32xf32>
    %595 = arith.subf %594, %593 : vector<16x32xf32>
    %596 = math.exp %595 : vector<16x32xf32>
    %cst_201 = arith.constant 1.000000e+00 : f32
    %597 = vector.broadcast %cst_201 : f32 to vector<16x32xf32>
    %598 = arith.addf %597, %596 : vector<16x32xf32>
    %cst_202 = arith.constant 1.000000e+00 : f32
    %599 = vector.broadcast %cst_202 : f32 to vector<16x32xf32>
    %600 = arith.divf %599, %598 : vector<16x32xf32>
    %601 = vector.extract_strided_slice %584 {offsets = [0, 64], sizes = [16, 32], strides = [1, 1]} : vector<16x128xf32> to vector<16x32xf32>
    %602 = math.tanh %601 : vector<16x32xf32>
    %603 = vector.extract_strided_slice %584 {offsets = [0, 96], sizes = [16, 32], strides = [1, 1]} : vector<16x128xf32> to vector<16x32xf32>
    %cst_203 = arith.constant 0.000000e+00 : f32
    %604 = vector.broadcast %cst_203 : f32 to vector<16x32xf32>
    %605 = arith.subf %604, %603 : vector<16x32xf32>
    %606 = math.exp %605 : vector<16x32xf32>
    %cst_204 = arith.constant 1.000000e+00 : f32
    %607 = vector.broadcast %cst_204 : f32 to vector<16x32xf32>
    %608 = arith.addf %607, %606 : vector<16x32xf32>
    %cst_205 = arith.constant 1.000000e+00 : f32
    %609 = vector.broadcast %cst_205 : f32 to vector<16x32xf32>
    %610 = arith.divf %609, %608 : vector<16x32xf32>
    %611 = arith.mulf %600, %573 : vector<16x32xf32>
    %612 = arith.mulf %592, %602 : vector<16x32xf32>
    %613 = arith.addf %611, %612 : vector<16x32xf32>
    %614 = math.tanh %613 : vector<16x32xf32>
    %615 = arith.mulf %610, %614 : vector<16x32xf32>
    %616 = arith.index_cast %c13_i32 : i32 to index
    %c0_206 = arith.constant 0 : index
    %c0_207 = arith.constant 0 : index
    %617 = vector.load %arg11[%616, %c0_206, %c0_207] : memref<16x16x32xf32, #tpu.memory_space<vmem>>, vector<1x16x32xf32>
    %618 = vector.shape_cast %617 : vector<1x16x32xf32> to vector<16x32xf32>
    %619 = vector.shape_cast %615 : vector<16x32xf32> to vector<1x16x32xf32>
    tpu.vector_store %arg11[%616, %c0_206, %c0_207], %619 {strides = array<i32>} : memref<16x16x32xf32, #tpu.memory_space<vmem>>, vector<1x16x32xf32>,
    %c14_i32 = arith.constant 14 : i32
    %620 = arith.index_cast %c14_i32 : i32 to index
    %c0_208 = arith.constant 0 : index
    %c0_209 = arith.constant 0 : index
    %621 = vector.load %arg10[%620, %c0_208, %c0_209] : memref<16x16x128xf32, #tpu.memory_space<vmem>>, vector<1x16x128xf32>
    %622 = vector.shape_cast %621 : vector<1x16x128xf32> to vector<16x128xf32>
    %cst_210 = arith.constant dense<0.000000e+00> : vector<16x128xf32>
    %623 = tpu.matmul %615, %58, %cst_210 {dimension_numbers = #tpu.dot_dimension_numbers<[1], [0], [0], [1], [0, 0, 1, 1], [], []>} : vector<16x32xf32>, vector<32x128xf32>, vector<16x128xf32> -> vector<16x128xf32>
    %624 = arith.addf %622, %623 : vector<16x128xf32>
    %625 = vector.extract_strided_slice %624 {offsets = [0, 0], sizes = [16, 32], strides = [1, 1]} : vector<16x128xf32> to vector<16x32xf32>
    %cst_211 = arith.constant 0.000000e+00 : f32
    %626 = vector.broadcast %cst_211 : f32 to vector<16x32xf32>
    %627 = arith.subf %626, %625 : vector<16x32xf32>
    %628 = math.exp %627 : vector<16x32xf32>
    %cst_212 = arith.constant 1.000000e+00 : f32
    %629 = vector.broadcast %cst_212 : f32 to vector<16x32xf32>
    %630 = arith.addf %629, %628 : vector<16x32xf32>
    %cst_213 = arith.constant 1.000000e+00 : f32
    %631 = vector.broadcast %cst_213 : f32 to vector<16x32xf32>
    %632 = arith.divf %631, %630 : vector<16x32xf32>
    %633 = vector.extract_strided_slice %624 {offsets = [0, 32], sizes = [16, 32], strides = [1, 1]} : vector<16x128xf32> to vector<16x32xf32>
    %cst_214 = arith.constant 0.000000e+00 : f32
    %634 = vector.broadcast %cst_214 : f32 to vector<16x32xf32>
    %635 = arith.subf %634, %633 : vector<16x32xf32>
    %636 = math.exp %635 : vector<16x32xf32>
    %cst_215 = arith.constant 1.000000e+00 : f32
    %637 = vector.broadcast %cst_215 : f32 to vector<16x32xf32>
    %638 = arith.addf %637, %636 : vector<16x32xf32>
    %cst_216 = arith.constant 1.000000e+00 : f32
    %639 = vector.broadcast %cst_216 : f32 to vector<16x32xf32>
    %640 = arith.divf %639, %638 : vector<16x32xf32>
    %641 = vector.extract_strided_slice %624 {offsets = [0, 64], sizes = [16, 32], strides = [1, 1]} : vector<16x128xf32> to vector<16x32xf32>
    %642 = math.tanh %641 : vector<16x32xf32>
    %643 = vector.extract_strided_slice %624 {offsets = [0, 96], sizes = [16, 32], strides = [1, 1]} : vector<16x128xf32> to vector<16x32xf32>
    %cst_217 = arith.constant 0.000000e+00 : f32
    %644 = vector.broadcast %cst_217 : f32 to vector<16x32xf32>
    %645 = arith.subf %644, %643 : vector<16x32xf32>
    %646 = math.exp %645 : vector<16x32xf32>
    %cst_218 = arith.constant 1.000000e+00 : f32
    %647 = vector.broadcast %cst_218 : f32 to vector<16x32xf32>
    %648 = arith.addf %647, %646 : vector<16x32xf32>
    %cst_219 = arith.constant 1.000000e+00 : f32
    %649 = vector.broadcast %cst_219 : f32 to vector<16x32xf32>
    %650 = arith.divf %649, %648 : vector<16x32xf32>
    %651 = arith.mulf %640, %613 : vector<16x32xf32>
    %652 = arith.mulf %632, %642 : vector<16x32xf32>
    %653 = arith.addf %651, %652 : vector<16x32xf32>
    %654 = math.tanh %653 : vector<16x32xf32>
    %655 = arith.mulf %650, %654 : vector<16x32xf32>
    %656 = arith.index_cast %c14_i32 : i32 to index
    %c0_220 = arith.constant 0 : index
    %c0_221 = arith.constant 0 : index
    %657 = vector.load %arg11[%656, %c0_220, %c0_221] : memref<16x16x32xf32, #tpu.memory_space<vmem>>, vector<1x16x32xf32>
    %658 = vector.shape_cast %657 : vector<1x16x32xf32> to vector<16x32xf32>
    %659 = vector.shape_cast %655 : vector<16x32xf32> to vector<1x16x32xf32>
    tpu.vector_store %arg11[%656, %c0_220, %c0_221], %659 {strides = array<i32>} : memref<16x16x32xf32, #tpu.memory_space<vmem>>, vector<1x16x32xf32>,
    %c15_i32 = arith.constant 15 : i32
    %660 = arith.index_cast %c15_i32 : i32 to index
    %c0_222 = arith.constant 0 : index
    %c0_223 = arith.constant 0 : index
    %661 = vector.load %arg10[%660, %c0_222, %c0_223] : memref<16x16x128xf32, #tpu.memory_space<vmem>>, vector<1x16x128xf32>
    %662 = vector.shape_cast %661 : vector<1x16x128xf32> to vector<16x128xf32>
    %cst_224 = arith.constant dense<0.000000e+00> : vector<16x128xf32>
    %663 = tpu.matmul %655, %58, %cst_224 {dimension_numbers = #tpu.dot_dimension_numbers<[1], [0], [0], [1], [0, 0, 1, 1], [], []>} : vector<16x32xf32>, vector<32x128xf32>, vector<16x128xf32> -> vector<16x128xf32>
    %664 = arith.addf %662, %663 : vector<16x128xf32>
    %665 = vector.extract_strided_slice %664 {offsets = [0, 0], sizes = [16, 32], strides = [1, 1]} : vector<16x128xf32> to vector<16x32xf32>
    %cst_225 = arith.constant 0.000000e+00 : f32
    %666 = vector.broadcast %cst_225 : f32 to vector<16x32xf32>
    %667 = arith.subf %666, %665 : vector<16x32xf32>
    %668 = math.exp %667 : vector<16x32xf32>
    %cst_226 = arith.constant 1.000000e+00 : f32
    %669 = vector.broadcast %cst_226 : f32 to vector<16x32xf32>
    %670 = arith.addf %669, %668 : vector<16x32xf32>
    %cst_227 = arith.constant 1.000000e+00 : f32
    %671 = vector.broadcast %cst_227 : f32 to vector<16x32xf32>
    %672 = arith.divf %671, %670 : vector<16x32xf32>
    %673 = vector.extract_strided_slice %664 {offsets = [0, 32], sizes = [16, 32], strides = [1, 1]} : vector<16x128xf32> to vector<16x32xf32>
    %cst_228 = arith.constant 0.000000e+00 : f32
    %674 = vector.broadcast %cst_228 : f32 to vector<16x32xf32>
    %675 = arith.subf %674, %673 : vector<16x32xf32>
    %676 = math.exp %675 : vector<16x32xf32>
    %cst_229 = arith.constant 1.000000e+00 : f32
    %677 = vector.broadcast %cst_229 : f32 to vector<16x32xf32>
    %678 = arith.addf %677, %676 : vector<16x32xf32>
    %cst_230 = arith.constant 1.000000e+00 : f32
    %679 = vector.broadcast %cst_230 : f32 to vector<16x32xf32>
    %680 = arith.divf %679, %678 : vector<16x32xf32>
    %681 = vector.extract_strided_slice %664 {offsets = [0, 64], sizes = [16, 32], strides = [1, 1]} : vector<16x128xf32> to vector<16x32xf32>
    %682 = math.tanh %681 : vector<16x32xf32>
    %683 = vector.extract_strided_slice %664 {offsets = [0, 96], sizes = [16, 32], strides = [1, 1]} : vector<16x128xf32> to vector<16x32xf32>
    %cst_231 = arith.constant 0.000000e+00 : f32
    %684 = vector.broadcast %cst_231 : f32 to vector<16x32xf32>
    %685 = arith.subf %684, %683 : vector<16x32xf32>
    %686 = math.exp %685 : vector<16x32xf32>
    %cst_232 = arith.constant 1.000000e+00 : f32
    %687 = vector.broadcast %cst_232 : f32 to vector<16x32xf32>
    %688 = arith.addf %687, %686 : vector<16x32xf32>
    %cst_233 = arith.constant 1.000000e+00 : f32
    %689 = vector.broadcast %cst_233 : f32 to vector<16x32xf32>
    %690 = arith.divf %689, %688 : vector<16x32xf32>
    %691 = arith.mulf %680, %653 : vector<16x32xf32>
    %692 = arith.mulf %672, %682 : vector<16x32xf32>
    %693 = arith.addf %691, %692 : vector<16x32xf32>
    %694 = math.tanh %693 : vector<16x32xf32>
    %695 = arith.mulf %690, %694 : vector<16x32xf32>
    %696 = arith.index_cast %c15_i32 : i32 to index
    %c0_234 = arith.constant 0 : index
    %c0_235 = arith.constant 0 : index
    %697 = vector.load %arg11[%696, %c0_234, %c0_235] : memref<16x16x32xf32, #tpu.memory_space<vmem>>, vector<1x16x32xf32>
    %698 = vector.shape_cast %697 : vector<1x16x32xf32> to vector<16x32xf32>
    %699 = vector.shape_cast %695 : vector<16x32xf32> to vector<1x16x32xf32>
    tpu.vector_store %arg11[%696, %c0_234, %c0_235], %699 {strides = array<i32>} : memref<16x16x32xf32, #tpu.memory_space<vmem>>, vector<1x16x32xf32>,
    %c16_i32 = arith.constant 16 : i32
    %c0_236 = arith.constant 0 : index
    %c0_237 = arith.constant 0 : index
    %c0_238 = arith.constant 0 : index
    %700 = vector.load %arg11[%c0_236, %c0_237, %c0_238] : memref<16x16x32xf32, #tpu.memory_space<vmem>>, vector<16x16x32xf32>
    %701 = vector.shape_cast %700 : vector<16x16x32xf32> to vector<256x32xf32>
    %c0_239 = arith.constant 0 : index
    %c0_240 = arith.constant 0 : index
    %702 = vector.load %arg6[%c0_239, %c0_240] : memref<32x64xf32, #tpu.memory_space<vmem>>, vector<32x64xf32>
    %cst_241 = arith.constant dense<0.000000e+00> : vector<256x64xf32>
    %703 = tpu.matmul %701, %702, %cst_241 {dimension_numbers = #tpu.dot_dimension_numbers<[1], [0], [0], [1], [0, 0, 1, 1], [], []>} : vector<256x32xf32>, vector<32x64xf32>, vector<256x64xf32> -> vector<256x64xf32>
    %c0_242 = arith.constant 0 : index
    %c0_243 = arith.constant 0 : index
    %704 = vector.load %arg7[%c0_242, %c0_243] : memref<1x64xf32, #tpu.memory_space<vmem>>, vector<1x64xf32>
    %705 = vector.broadcast %704 : vector<1x64xf32> to vector<256x64xf32>
    %706 = arith.addf %703, %705 : vector<256x64xf32>
    %707 = math.tanh %706 : vector<256x64xf32>
    %c0_244 = arith.constant 0 : index
    %c0_245 = arith.constant 0 : index
    %708 = vector.load %arg8[%c0_244, %c0_245] : memref<1x64xf32, #tpu.memory_space<vmem>>, vector<1x64xf32>
    %709 = vector.shape_cast %708 : vector<1x64xf32> to vector<1x1x64xf32>
    %710 = vector.shape_cast %707 : vector<256x64xf32> to vector<16x16x64xf32>
    %711 = vector.broadcast %709 : vector<1x1x64xf32> to vector<16x16x64xf32>
    %712 = arith.mulf %710, %711 : vector<16x16x64xf32>
    %cst_246 = arith.constant dense<0.000000e+00> : vector<16x16xf32>
    %713 = vector.multi_reduction <add>, %712, %cst_246 [2] : vector<16x16x64xf32> to vector<16x16xf32>
    %cst_247 = arith.constant dense<0xFF800000> : vector<16xf32>
    %714 = vector.multi_reduction <maximumf>, %713, %cst_247 [0] : vector<16x16xf32> to vector<16xf32>
    %715 = vector.shape_cast %714 : vector<16xf32> to vector<1x16xf32>
    %716 = vector.broadcast %715 : vector<1x16xf32> to vector<16x16xf32>
    %717 = arith.subf %713, %716 : vector<16x16xf32>
    %718 = math.exp %717 : vector<16x16xf32>
    %719 = tpu.iota {dimensions = array<i32: 0>} : vector<16x16xi32>
    %720 = tpu.iota {dimensions = array<i32: 1>} : vector<16x16xi32>
    %721 = arith.cmpi sle, %720, %719 : vector<16x16xi32>
    %722 = arith.extui %721 : vector<16x16xi1> to vector<16x16xi32>
    %723 = arith.sitofp %722 : vector<16x16xi32> to vector<16x16xf32>
    %cst_248 = arith.constant dense<0.000000e+00> : vector<16x16xf32>
    %724 = tpu.matmul %723, %718, %cst_248 {dimension_numbers = #tpu.dot_dimension_numbers<[1], [0], [0], [1], [0, 0, 1, 1], [], []>} : vector<16x16xf32>, vector<16x16xf32>, vector<16x16xf32> -> vector<16x16xf32>
    %725 = arith.divf %718, %724 : vector<16x16xf32>
    %c0_249 = arith.constant 0 : index
    %c0_250 = arith.constant 0 : index
    %726 = vector.load %arg2[%c0_249, %c0_250] : memref<16x16xf32, #tpu.memory_space<vmem>>, vector<16x16xf32>
    %727 = tpu.transpose %726, [1, 0] : vector<16x16xf32> -> vector<16x16xf32>
    %728 = arith.mulf %725, %727 : vector<16x16xf32>
    %c1_i32_251 = arith.constant 1 : i32
    %729 = vector.broadcast %c1_i32_251 : i32 to vector<16x16xi32>
    %730 = arith.cmpi sge, %719, %729 : vector<16x16xi32>
    %731 = arith.cmpi sle, %719, %720 : vector<16x16xi32>
    %732 = arith.andi %730, %731 : vector<16x16xi1>
    %733 = arith.extui %732 : vector<16x16xi1> to vector<16x16xi32>
    %734 = arith.sitofp %733 : vector<16x16xi32> to vector<16x16xf32>
    %cst_252 = arith.constant dense<0.000000e+00> : vector<16x16xf32>
    %735 = tpu.matmul %734, %728, %cst_252 {dimension_numbers = #tpu.dot_dimension_numbers<[1], [0], [0], [1], [0, 0, 1, 1], [], []>} : vector<16x16xf32>, vector<16x16xf32>, vector<16x16xf32> -> vector<16x16xf32>
    %736 = vector.shape_cast %735 : vector<16x16xf32> to vector<16x16x1xf32>
    %737 = vector.broadcast %736 : vector<16x16x1xf32> to vector<16x16x32xf32>
    %738 = arith.mulf %737, %700 : vector<16x16x32xf32>
    %cst_253 = arith.constant dense<0.000000e+00> : vector<16x32xf32>
    %739 = vector.multi_reduction <add>, %738, %cst_253 [0] : vector<16x16x32xf32> to vector<16x32xf32>
    %c0_254 = arith.constant 0 : index
    %c0_255 = arith.constant 0 : index
    %740 = vector.load %arg9[%c0_254, %c0_255] : memref<16x32xf32, #tpu.memory_space<vmem>>, vector<16x32xf32>
    tpu.vector_store %arg9[%c0_254, %c0_255], %739 {strides = array<i32>} : memref<16x32xf32, #tpu.memory_space<vmem>>, vector<16x32xf32>,
    return
  }
  func.func @transform_0(%arg0: i32) -> (i32, i32, i32) {
    %c0_i32 = arith.constant 0 : i32
    %c0_i32_0 = arith.constant 0 : i32
    %c0_i32_1 = arith.constant 0 : i32
    return %arg0, %c0_i32, %c0_i32_0 : i32, i32, i32
  }
  func.func @transform_1(%arg0: i32) -> (i32, i32) {
    %c0_i32 = arith.constant 0 : i32
    %c0_i32_0 = arith.constant 0 : i32
    return %arg0, %c0_i32 : i32, i32
  }
  func.func @transform_2(%arg0: i32) -> (i32, i32) {
    %c0_i32 = arith.constant 0 : i32
    %c0_i32_0 = arith.constant 0 : i32
    %c0_i32_1 = arith.constant 0 : i32
    return %c0_i32, %c0_i32_0 : i32, i32
  }
  func.func @transform_3(%arg0: i32) -> (i32, i32) {
    %c0_i32 = arith.constant 0 : i32
    %c0_i32_0 = arith.constant 0 : i32
    %c0_i32_1 = arith.constant 0 : i32
    return %c0_i32, %c0_i32_0 : i32, i32
  }
  func.func @transform_4(%arg0: i32) -> (i32, i32) {
    %c0_i32 = arith.constant 0 : i32
    %c0_i32_0 = arith.constant 0 : i32
    %c0_i32_1 = arith.constant 0 : i32
    return %c0_i32, %c0_i32_0 : i32, i32
  }
  func.func @transform_5(%arg0: i32) -> (i32, i32) {
    %c0_i32 = arith.constant 0 : i32
    %c0_i32_0 = arith.constant 0 : i32
    %c0_i32_1 = arith.constant 0 : i32
    return %c0_i32, %c0_i32_0 : i32, i32
  }
  func.func @transform_6(%arg0: i32) -> (i32, i32) {
    %c0_i32 = arith.constant 0 : i32
    %c0_i32_0 = arith.constant 0 : i32
    %c0_i32_1 = arith.constant 0 : i32
    return %c0_i32, %c0_i32_0 : i32, i32
  }
  func.func @transform_7(%arg0: i32) -> (i32, i32) {
    %c0_i32 = arith.constant 0 : i32
    %c0_i32_0 = arith.constant 0 : i32
    %c0_i32_1 = arith.constant 0 : i32
    return %c0_i32, %c0_i32_0 : i32, i32
  }
  func.func @transform_8(%arg0: i32) -> (i32, i32) {
    %c0_i32 = arith.constant 0 : i32
    %c0_i32_0 = arith.constant 0 : i32
    return %arg0, %c0_i32 : i32, i32
  }
}

</mosaic_0001>

<bundles_post_ra>
// kernel: tpu_custom_call.1
= control target key start
LH: loop header
LB: loop body
LE: loop exit
PB: predicated region body
PF: predicated region fallthrough
CT: control target
= control target key end

     0   :  { %13 = vsyncpa [#allocation5], 0  ;;  %s9483_s0 = inlined_call_operand.hbm [shape: f32[16,16,32], index: 0, kind: input, shape index: {}]   ;;  %s9484_s1 = inlined_call_operand.hbm [shape: f32[16,16], index: 1, kind: input, shape index: {}]   ;;  %s9485_s2 = inlined_call_operand.hbm [shape: f32[32,128], index: 2, kind: input, shape index: {}]   ;;  %s9486_s3 = inlined_call_operand.hbm [shape: f32[32,128], index: 3, kind: input, shape index: {}]   ;;  %s9487_s4 = inlined_call_operand.vmem [shape: f32[1,128], index: 4, kind: input, shape index: {}]   ;;  %s9488_s5 = inlined_call_operand.hbm [shape: f32[32,64], index: 5, kind: input, shape index: {}]   ;;  %s9489_s6 = inlined_call_operand.vmem [shape: f32[1,64], index: 6, kind: input, shape index: {}]   ;;  %s9490_s7 = inlined_call_operand.vmem [shape: f32[1,64], index: 7, kind: input, shape index: {}]   ;;  %s9491_s8 = inlined_call_operand.hbm [shape: f32[16,32], index: 8, kind: output, shape index: {}]  }
   0x1   :  { %14 = vsyncpa [#allocation8], 0 }
   0x2   :  { %15 = vsyncpa [#allocation11], 0 }
   0x3   :  { %16 = vsyncpa [#allocation6], 0  ;;  %s7287_s27 = smov [#allocation7]   ;;  %s7288_s29 = smov [#allocation10]  }
   0x4   :  { %s34_s28 = sshll.u32 %s7287_s27, 4  ;;  %s58_s30 = sshll.u32 %s7288_s29, 4  ;;  %s35_s28 = int_to_ptr.vmem [resolvable:$true] %s34_s28  ;;  %s7344_s30 = int_to_ptr.vmem [resolvable:$true] %s58_s30 }
   0x5   :  { %s7147_s11 = scalar_lea.hbm %s9484_s1, 256 }
   0x6   :  { %p7148_p0 = scmp.ne.s32.totalorder %s9484_s1, %s7147_s11  ;;  %p7151_p1 = scmp.lt.u32.totalorder %s7147_s11, %s9484_s1 }
   0x8   :  { %p7153_p2 = pnand %p7151_p1, %p7148_p0 }
   0xa   :  { %7156 = shalt.err (!%p7153_p2)
}
   0xb   :  { %s7157_s16 = scalar_lea.vmem %s35_s28, 256  ;;  %p7162_p4 = scmp.lt.s32.totalorder %s35_s28, %s35_s28 }
   0xc   :  { %p7158_p3 = scmp.ne.s32.totalorder %s35_s28, %s7157_s16  ;;  %p7163_p5 = scmp.lt.s32.totalorder %s7157_s16, %s7157_s16 }
   0xe   :  { %p7164_p6 = por %p7163_p5, %p7162_p4 }
  0x10   :  { %p7165_p7 = pnand %p7164_p6, %p7158_p3 }
  0x12   :  { %7168 = shalt.err (!%p7165_p7)
}
  0x13   :  { %s7289_s17 = smov 128   ;;  %s7290_s18 = smov 8  }
  0x14   :  { %40 = dma.hbm_to_vmem [thread:$0]  %s9484_s1, 256, %s35_s28, [#allocation8], %s7289_s17, %s7289_s17, %s7290_s18  }
  0x15   :  { %s7169_s23 = scalar_lea.hbm %s9486_s3, 512 }
  0x16   :  { %p7170_p8 = scmp.ne.s32.totalorder %s9486_s3, %s7169_s23  ;;  %p7173_p9 = scmp.lt.u32.totalorder %s7169_s23, %s9486_s3 }
  0x18   :  { %p7175_p10 = pnand %p7173_p9, %p7170_p8 }
  0x1a   :  { %7178 = shalt.err (!%p7175_p10)
}
  0x1b   :  { %s7179_s29 = scalar_lea.vmem %s7344_s30, 512  ;;  %p7184_p12 = scmp.lt.s32.totalorder %s7344_s30, %s7344_s30 }
  0x1c   :  { %p7180_p11 = scmp.ne.s32.totalorder %s7344_s30, %s7179_s29  ;;  %p7185_p13 = scmp.lt.s32.totalorder %s7179_s29, %s7179_s29 }
  0x1e   :  { %p7186_p0 = por %p7185_p13, %p7184_p12 }
  0x20   :  { %p7187_p1 = pnand %p7186_p0, %p7180_p11 }
  0x22   :  { %7190 = shalt.err (!%p7187_p1)
}
  0x23   :  { %64 = dma.hbm_to_vmem [thread:$0]  %s9486_s3, 512, %s7344_s30, [#allocation11], %s7289_s17, %s7289_s17, %s7290_s18  }
  0x24   :  { %s7291_s9 = smov [#allocation4]   ;;  %s7292_s11 = smov [#allocation9]  }
  0x25   :  { %s22_s10 = sshll.u32 %s7291_s9, 4  ;;  %s46_s12 = sshll.u32 %s7292_s11, 4  ;;  %s23_s10 = int_to_ptr.vmem [resolvable:$true] %s22_s10  ;;  %s7381_s12 = int_to_ptr.vmem [resolvable:$true] %s46_s12 }
  0x26   :  { %s7191_s15 = scalar_lea.hbm %s9483_s0, 4096 }
  0x27   :  { %p7192_p2 = scmp.ne.s32.totalorder %s9483_s0, %s7191_s15  ;;  %p7195_p3 = scmp.lt.u32.totalorder %s7191_s15, %s9483_s0 }
  0x29   :  { %p7197_p4 = pnand %p7195_p3, %p7192_p2 }
  0x2b   :  { %7200 = shalt.err (!%p7197_p4)
}
  0x2c   :  { %s7201_s3 = scalar_lea.vmem %s23_s10, 4096  ;;  %p7206_p6 = scmp.lt.s32.totalorder %s23_s10, %s23_s10 }
  0x2d   :  { %p7202_p5 = scmp.ne.s32.totalorder %s23_s10, %s7201_s3  ;;  %p7207_p7 = scmp.lt.s32.totalorder %s7201_s3, %s7201_s3 }
  0x2f   :  { %p7208_p8 = por %p7207_p7, %p7206_p6 }
  0x31   :  { %p7209_p9 = pnand %p7208_p8, %p7202_p5 }
  0x33   :  { %7212 = shalt.err (!%p7209_p9)
}
  0x34   :  { %28 = dma.hbm_to_vmem [thread:$0]  %s9483_s0, 4096, %s23_s10, [#allocation5], %s7289_s17, %s7289_s17, %s7290_s18  }
  0x35   :  { %s7213_s25 = scalar_lea.hbm %s9485_s2, 512 }
  0x36   :  { %p7214_p10 = scmp.ne.s32.totalorder %s9485_s2, %s7213_s25  ;;  %p7217_p11 = scmp.lt.u32.totalorder %s7213_s25, %s9485_s2 }
  0x38   :  { %p7219_p12 = pnand %p7217_p11, %p7214_p10 }
  0x3a   :  { %7222 = shalt.err (!%p7219_p12)
}
  0x3b   :  { %s7223_s28 = scalar_lea.vmem %s7381_s12, 512  ;;  %p7228_p0 = scmp.lt.s32.totalorder %s7381_s12, %s7381_s12 }
  0x3c   :  { %p7224_p13 = scmp.ne.s32.totalorder %s7381_s12, %s7223_s28  ;;  %p7229_p1 = scmp.lt.s32.totalorder %s7223_s28, %s7223_s28 }
  0x3e   :  { %p7230_p2 = por %p7229_p1, %p7228_p0 }
  0x40   :  { %p7231_p3 = pnand %p7230_p2, %p7224_p13 }
  0x42   :  { %7234 = shalt.err (!%p7231_p3)
}
  0x43   :  { %52 = dma.hbm_to_vmem [thread:$0]  %s9485_s2, 512, %s7381_s12, [#allocation8], %s7289_s17, %s7289_s17, %s7290_s18  }
  0x44   :  { %s7293_s10 = smov [#allocation12]   ;;  %s7235_s15 = scalar_lea.hbm %s9488_s5, 512 }
  0x45   :  { %s72_s11 = sshll.u32 %s7293_s10, 4  ;;  %p7236_p4 = scmp.ne.s32.totalorder %s9488_s5, %s7235_s15  ;;  %s73_s11 = int_to_ptr.vmem [resolvable:$true] %s72_s11 }
  0x46   :  { %p7239_p5 = scmp.lt.u32.totalorder %s7235_s15, %s9488_s5 }
  0x48   :  { %p7241_p6 = pnand %p7239_p5, %p7236_p4 }
  0x4a   :  { %7244 = shalt.err (!%p7241_p6)
}
  0x4b   :  { %s7245_s3 = scalar_lea.vmem %s73_s11, 512  ;;  %p7250_p8 = scmp.lt.s32.totalorder %s73_s11, %s73_s11 }
  0x4c   :  { %p7246_p7 = scmp.ne.s32.totalorder %s73_s11, %s7245_s3  ;;  %p7251_p9 = scmp.lt.s32.totalorder %s7245_s3, %s7245_s3 }
  0x4e   :  { %p7252_p10 = por %p7251_p9, %p7250_p8 }
  0x50   :  { %p7253_p11 = pnand %p7252_p10, %p7246_p7 }
  0x52   :  { %7256 = shalt.err (!%p7253_p11)
}
  0x53   :  { %78 = dma.hbm_to_vmem [thread:$0]  %s9488_s5, 512, %s73_s11, [#allocation11], %s7289_s17, %s7289_s17, %s7290_s18  }
  0x54   :  { %7279 = dma.done.wait [#allocation5], 4096  }
  0x55   :  { %7280 = vsyncadd [#allocation5], 4294963200 }
  0x56   :  { %7281 = dma.done.wait [#allocation8], 768  }
  0x57   :  { %7282 = vsyncadd [#allocation8], 4294966528 }
  0x58   :  { %7283 = dma.done.wait [#allocation11], 1024  }
  0x59   :  { %7284 = vsyncadd [#allocation11], 4294966272  ;;  %v386_v0 = vld [vmem:[#allocation9] sm:$0xff]  ;;  %v387_v1 = vld [vmem:[#allocation9 + $0x8] sm:$0xff]  ;;  %vm397_vm0 = vcmask 1041409   ;;  %vm399_vm1 = vcmask 1042434  }
  0x5a   :  { %v388_v2 = vld [vmem:[#allocation9 + $0x10] sm:$0xff]  ;;  %v6351_v3 = vpack.c.bf16 %v387_v1, %v386_v0  ;;  %v389_v4 = vld [vmem:[#allocation9 + $0x18] sm:$0xff]  ;;  %v7435_v6 = vld [vmem:[#allocation4 + $0x10] sm:$0xff]  ;;  %vm401_vm2 = vcmask 1043459   ;;  %vm403_vm3 = vcmask 1044484   ;;  %vm405_vm4 = vcmask 1045509  }
  0x5b   :  { %v7433_v5 = vld [vmem:[#allocation4] sm:$0xff]  ;;  %v6355_v7 = vpack.c.bf16 %v389_v4, %v388_v2  ;;  %v7439_v9 = vld [vmem:[#allocation4 + $0x30] sm:$0xff]  ;;  %v243_v11 = vrot.slane %v7435_v6, 7  ;;  %vm407_vm5 = vcmask 1046534   ;;  %vm409_vm6 = vcmask 1047559   ;;  %v1147_v38 = vld [vmem:[#allocation10 + $0x8] sm:$0xff] }
  0x5c   :  { %v7437_v8 = vld [vmem:[#allocation4 + $0x20] sm:$0xff]  ;;  %6352 = vmatprep.subr.bf16.mxu0 %v6351_v3  ;;  %v7444_v12 = vld [vmem:[#allocation4 + $0x50] sm:$0xff]  ;;  %v213_v16 = vrot.slane %v7439_v9, 5  ;;  %6503 = vmatprep.subr.bf16.mxu1 %v6351_v3  ;;  %v146_v28 = vrot.slane %v7433_v5, 1  ;;  %vm824_vm7 = vcmask 261120   ;;  %v5603_v50 = vrot.slane %v7439_v9, 6 }
  0x5d   :  { %v7441_v10 = vld [vmem:[#allocation4 + $0x40] sm:$0xff]  ;;  %v7448_v14 = vld [vmem:[#allocation4 + $0x70] sm:$0xff]  ;;  %v228_v17 = vrot.slane %v7437_v8, 6  ;;  %6354 = vmatpush3.bf16.msra.mxu0 %v6351_v3  ;;  %v183_v19 = vrot.slane %v7444_v12, 3  ;;  %v398_v20 = vsel %vm397_vm0, %v243_v11, %v7433_v5  ;;  %6505 = vmatpush3.bf16.msra.mxu1 %v6351_v3  ;;  %v5602_v49 = vrot.slane %v7437_v8, 7  ;;  %s7295_s22 = smov 64  }
  0x5e   :  { %v7446_v13 = vld [vmem:[#allocation4 + $0x60] sm:$0xff]  ;;  %v198_v15 = vrot.slane %v7441_v10, 4  ;;  %v153_v18 = vrot.slane %v7448_v14, 1  ;;  %v7459_v21 = vld [vmem:[#allocation4 + $0x90] sm:$0xff]  ;;  %6356 = vmatprep.subr.bf16.mxu0 %v6355_v7  ;;  %6504 = vmatprep.subr.bf16.mxu1 %v6355_v7  ;;  %v419_v47 = vsel %vm397_vm0, %v7435_v6, %v146_v28  ;;  %v5604_v51 = vrot.slane %v7441_v10, 5  ;;  %s7296_s23 = smov 32  }
  0x5f   :  { %v7461_v22 = vld [vmem:[#allocation4 + $0xa0] sm:$0xff]  ;;  %v168_v23 = vrot.slane %v7446_v13, 2  ;;  %v400_v24 = vsel %vm399_vm1, %v228_v17, %v398_v20  ;;  %v7467_v25 = vld [vmem:[#allocation4 + $0xb0] sm:$0xff]  ;;  %v251_v45 = vrot.slane %v7459_v21, 7  ;;  %v5605_v53 = vrot.slane %v7444_v12, 4 }
  0x60   :  { %v7469_v26 = vld [vmem:[#allocation4 + $0xc0] sm:$0xff]  ;;  %v7471_v27 = vld [vmem:[#allocation4 + $0xd0] sm:$0xff]  ;;  %v402_v29 = vsel %vm401_vm2, %v213_v16, %v400_v24  ;;  %v430_v30 = vrot.slane %v153_v18, 1  ;;  %v221_v42 = vrot.slane %v7467_v25, 5  ;;  %v236_v43 = vrot.slane %v7461_v22, 6 }
  0x61   :  { %v7477_v31 = vld [vmem:[#allocation4 + $0xe0] sm:$0xff]  ;;  %v7479_v32 = vld [vmem:[#allocation4 + $0xf0] sm:$0xff]  ;;  %v404_v34 = vsel %vm403_vm3, %v198_v15, %v402_v29  ;;  %v191_v37 = vrot.slane %v7471_v27, 3  ;;  %6358 = vmatpush3.bf16.msra.mxu0 %v6355_v7  ;;  %v206_v41 = vrot.slane %v7469_v26, 4  ;;  %6506 = vmatpush3.bf16.msra.mxu1 %v6355_v7  ;;  %v5606_v54 = vrot.slane %v7446_v13, 3  ;;  %v1149_v7 = vld [vmem:[#allocation10 + $0x18] sm:$0xff] }
  0x62   :  { %v1146_v33 = vld [vmem:[#allocation10] sm:$0xff]  ;;  %v161_v35 = vrot.slane %v7479_v32, 1  ;;  %v176_v36 = vrot.slane %v7477_v31, 2  ;;  %v406_v39 = vsel %vm405_vm4, %v183_v19, %v404_v34  ;;  %v7490_v40 = vld [vmem:[#allocation4 + $0x80] sm:$0xff]  ;;  %v421_v57 = vsel %vm399_vm1, %v5602_v49, %v419_v47 }
  0x63   :  { %v408_v44 = vsel %vm407_vm5, %v168_v23, %v406_v39  ;;  %v7499_v46 = vpack.c.bf16 %v1147_v38, %v1146_v33  ;;  %v411_v52 = vsel %vm397_vm0, %v251_v45, %v7490_v40  ;;  %v154_v55 = vrot.slane %v7490_v40, 1  ;;  %v1148_v4 = vld [vmem:[#allocation10 + $0x10] sm:$0xff] }
  0x64   :  { %v410_v48 = vsel %vm409_vm6, %v153_v18, %v408_v44  ;;  %v412_v56 = vsel %vm399_vm1, %v236_v43, %v411_v52  ;;  %v5608_v58 = vrot.slane %v7461_v22, 7  ;;  %v5609_v59 = vrot.slane %v7467_v25, 6 }
  0x65   :  { %6057 = vmatprep.mubr.msk.f32.mxu0 %vm824_vm7, %v410_v48  ;;  %6360 = vmatprep.subr.bf16.mxu0 %v7499_v46  ;;  %v413_v60 = vsel %vm401_vm2, %v221_v42, %v412_v56  ;;  %v423_v61 = vsel %vm401_vm2, %v5603_v50, %v421_v57  ;;  %v433_v62 = vsel %vm397_vm0, %v7459_v21, %v154_v55  ;;  %v5610_v63 = vrot.slane %v7469_v26, 5 }
  0x66   :  { %v414_v0 = vsel %vm403_vm3, %v206_v41, %v413_v60  ;;  %v425_v1 = vsel %vm403_vm3, %v5604_v51, %v423_v61  ;;  %v435_v2 = vsel %vm399_vm1, %v5608_v58, %v433_v62  ;;  %v5611_v3 = vrot.slane %v7471_v27, 4 }
  0x67   :  { %v415_v18 = vsel %vm405_vm4, %v191_v37, %v414_v0  ;;  %v427_v20 = vsel %vm405_vm4, %v5605_v53, %v425_v1  ;;  %v437_v24 = vsel %vm401_vm2, %v5609_v59, %v435_v2  ;;  %v5612_v28 = vrot.slane %v7477_v31, 3 }
  0x68   :  { %v416_v29 = vsel %vm407_vm5, %v176_v36, %v415_v18  ;;  %v429_v33 = vsel %vm407_vm5, %v5606_v54, %v427_v20  ;;  %v439_v34 = vsel %vm403_vm3, %v5610_v63, %v437_v24  ;;  %v444_v38 = vrot.slane %v161_v35, 1 }
  0x69   :  { %v417_v39 = vsel %vm409_vm6, %v161_v35, %v416_v29  ;;  %v431_v44 = vsel %vm409_vm6, %v430_v30, %v429_v33  ;;  %v441_v47 = vsel %vm405_vm4, %v5611_v3, %v439_v34  ;;  %v7549_v48 = vpack.c.bf16 %v1149_v7, %v1148_v4  ;;  %v5600_v35 = vld [vmem:[%s9487_s4] ss:$0 sm:$0xff] }
  0x6a   :  { %6058 = vmatmul.mubr.msk.f32.vlgmr.msra.gmra.mrb[0].mxu0 %vm824_vm7, %v417_v39  ;;  %v443_v49 = vsel %vm407_vm5, %v5612_v28, %v441_v47  ;;  %v9492_v30 = vmov 0.0   ;;  %v7586_v34 = vrot.slane %v198_v15, 4  ;;  %v482_v39 = vrot.slane %v183_v19, 3 }
  0x6b   :  { %6362 = vmatpush3.bf16.msra.mxu0 %v7499_v46  ;;  %6060 = vmatprep.mubr.msk.f32.mxu0 %vm824_vm7, %v431_v44  ;;  %v445_v50 = vsel %vm409_vm6, %v444_v38, %v443_v49  ;;  %v7594_v44 = vrot.slane %v213_v16, 5  ;;  %v7598_v47 = vrot.slane %v228_v17, 6  ;;  %v7602_v49 = vrot.slane %v243_v11, 7 }
  0x6c   :  { %6364 = vmatprep.subr.bf16.mxu0 %v7549_v48  ;;  %v162_v15 = vrot.slane %v7433_v5, 2  ;;  %v5615_v19 = vrot.slane %v7439_v9, 7  ;;  %v5617_v16 = vrot.slane %v7444_v12, 5  ;;  %v456_v17 = vrot.slane %v168_v23, 2 }
  0x6d   :  { %v470_v23 = vrot.slane %v176_v36, 2  ;;  %vm3870_vm8 = vcmask 523264   ;;  %vm4298_vm10 = vcmask 130048   ;;  %vm4145_vm11 = vcmask 130112  }
  0x6e   :  { %6061 = vmatmul.mubr.msk.f32.gmra.mrb[2].mxu0 %vm824_vm7, %v445_v50  ;;  %v5613_v50 = vrot.slane %v7435_v6, 9 }
  0x6f   :  { %6366 = vmatpush3.bf16.msra.mxu0 %v7549_v48  ;;  %6113 = vmatprep.mubr.f32.mxu0 %v9492_v30 }
  0x70   :  { %6368 = vmatprep.subr.bf16.mxu0 %v7499_v46  ;;  %v447_v11 = vsel %vm397_vm0, %v5613_v50, %v162_v15  ;;  %v5630_v15 = vrot.slane %v7448_v14, 4 }
  0x72   :  { %6114 = vmatmul.mubr.f32.vlgmr.msra.gmra.mrb[0].mxu0 %v9492_v30 }
  0x73   :  { %6370 = vmatpush3.bf16.msra.mxu0 %v7499_v46 }
  0x74   :  { %6372 = vmatprep.subr.bf16.mxu0 %v7549_v48 }
  0x77   :  { %6374 = vmatpush3.bf16.msra.mxu0 %v7549_v48 }
  0x78   :  { %6376 = vmatprep.subr.bf16.mxu0 %v7499_v46 }
 0x145   :  { %v6115_v51 = vpop.f32.mrb[0].mxu0 }
 0x146   :  { %v1221_v52 = vpop.f32.mrb[1].mxu0  ;;  %v6507_v54 = vadd.f32 %v6115_v51, %v5600_v35  ;;  %v5618_v51 = vrot.slane %v7448_v14, 3 }
 0x147   :  { %v6508_v53 = vadd.f32 %v5600_v35, %v1221_v52  ;;  %v5616_v35 = vrot.slane %v7441_v10, 6  ;;  %v170_v52 = vrot.slane %v7490_v40, 2 }
 0x148   :  { %v1233_v58 = vsub.f32 0.0, %v6507_v54 }
 0x149   :  { %6665 = vtanh.f32 %v6508_v53  ;;  %v1232_v57 = vsub.f32 0.0, %v6508_v53  ;;  %v5619_v53 = vrot.slane %v7459_v21, 9 }
 0x14a   :  { %6667 = vtanh.f32 %v6507_v54  ;;  %v1236_v60 = vmul.f32 1.442695, %v1233_v58  ;;  %v5621_v54 = vrot.slane %v7467_v25, 7 }
 0x14b   :  { %v1234_v59 = vmul.f32 1.442695, %v1232_v57  ;;  %v5623_v57 = vrot.slane %v7471_v27, 5 }
 0x14d   :  { %6669 = vpow2.f32 %v1234_v59  ;;  %v461_v59 = vsel %vm397_vm0, %v5619_v53, %v170_v52  ;;  %v5631_v52 = vrot.slane %v7459_v21, 10  ;;  %v5632_v53 = vrot.slane %v7461_v22, 9 }
 0x14e   :  { %6671 = vpow2.f32 %v1236_v60  ;;  %v5624_v60 = vrot.slane %v7479_v32, 3 }
 0x153   :  { %v6666_v55 = vpop.eup %6665 }
 0x154   :  { %1250 = vrot.lane.b32.xlu0 %v6666_v55, %s7295_s22  ;;  %v6668_v56 = vpop.eup %6667  ;;  %v449_v55 = vsel %vm399_vm1, %v7437_v8, %v447_v11 }
 0x155   :  { %v451_v58 = vsel %vm401_vm2, %v5615_v19, %v449_v55 }
 0x157   :  { %v6670_v61 = vpop.eup %6669 }
 0x158   :  { %1252 = vrot.lane.b32.xlu0 %v6668_v56, %s7295_s22  ;;  %v1238_v62 = vadd.f32 1.0, %v6670_v61  ;;  %v6672_v63 = vpop.eup %6671  ;;  %v5622_v56 = vrot.slane %v7469_v26, 6  ;;  %v178_v61 = vrot.slane %v7433_v5, 3 }
 0x159   :  { %v1239_v0 = vadd.f32 1.0, %v6672_v63  ;;  %v463_v63 = vsel %vm399_vm1, %v7461_v22, %v461_v59  ;;  %v5635_v59 = vrot.slane %v7477_v31, 5 }
 0x15a   :  { %6673 = vrcp.f32 %v1238_v62  ;;  %v453_v62 = vsel %vm403_vm3, %v5616_v35, %v451_v58 }
 0x15b   :  { %6675 = vrcp.f32 %v1239_v0  ;;  %v5625_v0 = vrot.slane %v7435_v6, 10  ;;  %v455_v36 = vsel %vm405_vm4, %v5617_v16, %v453_v62  ;;  %v186_v16 = vrot.slane %v7490_v40, 3 }
 0x15d   :  { %v489_v58 = vsel %vm397_vm0, %v5631_v52, %v186_v16  ;;  %v5644_v16 = vrot.slane %v7461_v22, 10  ;;  %v5645_v52 = vrot.slane %v7467_v25, 9 }
 0x15e   :  { %v491_v62 = vsel %vm399_vm1, %v5632_v53, %v489_v58  ;;  %v522_v53 = vrot.slane %v206_v41, 4  ;;  %v210_v58 = vrot.slane %v7433_v5, 5 }
 0x164   :  { %v7571_v1 = vpop.eup %6673 }
 0x165   :  { %v7575_v4 = vpop.eup %6675  ;;  %v1246_v20 = vmul.f32 0.0, %v7571_v1 }
 0x166   :  { %v1247_v29 = vmul.f32 0.0, %v7575_v4 }
 0x1c6   :  { %v1251_v2 = vpop.permute.xlu0 %1250 }
 0x1c7   :  { %v1256_v3 = vmul.f32 %v7571_v1, %v1251_v2  ;;  %v5626_v2 = vrot.slane %v7437_v8, 9 }
 0x1c9   :  { %1260 = vrot.lane.b32.xlu1 %v1256_v3, %s7296_s23 }
 0x1ca   :  { %v1253_v7 = vpop.permute.xlu0 %1252 }
 0x1cb   :  { %v1257_v18 = vmul.f32 %v7575_v4, %v1253_v7  ;;  %v465_v7 = vsel %vm401_vm2, %v5621_v54, %v463_v63  ;;  %v194_v63 = vrot.slane %v7433_v5, 4 }
 0x1cd   :  { %1262 = vrot.lane.b32.xlu1 %v1257_v18, %s7296_s23  ;;  %v5628_v18 = vrot.slane %v7441_v10, 7 }
 0x23b   :  { %v1261_v24 = vpop.permute.xlu1 %1260 }
 0x23c   :  { %v7580_v28 = vadd.f32 %v1261_v24, %v1246_v20  ;;  %v5629_v20 = vrot.slane %v7446_v13, 5  ;;  %v457_v24 = vsel %vm407_vm5, %v456_v17, %v455_v36 }
 0x23d   :  { %v459_v50 = vsel %vm409_vm6, %v5618_v51, %v457_v24 }
 0x23e   :  { %6677 = vtanh.f32 %v7580_v28  ;;  %6063 = vmatprep.mubr.msk.f32.mxu1 %vm824_vm7, %v459_v50 }
 0x23f   :  { %v1263_v33 = vpop.permute.xlu1 %1262 }
 0x240   :  { %v7588_v38 = vadd.f32 %v1263_v33, %v1247_v29  ;;  %v467_v29 = vsel %vm403_vm3, %v5622_v56, %v465_v7  ;;  %v475_v33 = vsel %vm397_vm0, %v5625_v0, %v178_v61  ;;  %v5634_v56 = vrot.slane %v7469_v26, 7 }
 0x241   :  { %v469_v19 = vsel %vm405_vm4, %v5623_v57, %v467_v29  ;;  %v477_v35 = vsel %vm399_vm1, %v5626_v2, %v475_v33  ;;  %v496_v57 = vrot.slane %v191_v37, 3  ;;  %v5636_v61 = vrot.slane %v7479_v32, 4 }
 0x242   :  { %6679 = vtanh.f32 %v7588_v38  ;;  %v471_v11 = vsel %vm407_vm5, %v470_v23, %v469_v19  ;;  %v479_v17 = vsel %vm401_vm2, %v7439_v9, %v477_v35  ;;  %v5637_v37 = vrot.slane %v7435_v6, 11 }
 0x243   :  { %v473_v51 = vsel %vm409_vm6, %v5624_v60, %v471_v11  ;;  %v481_v55 = vsel %vm403_vm3, %v5628_v18, %v479_v17  ;;  %v493_v2 = vsel %vm401_vm2, %v7467_v25, %v491_v62  ;;  %v5640_v18 = vrot.slane %v7444_v12, 7 }
 0x244   :  { %6064 = vmatmul.mubr.msk.f32.vlgmr.msra.gmra.mrb[0].mxu1 %vm824_vm7, %v473_v51  ;;  %v483_v23 = vsel %vm405_vm4, %v482_v39, %v481_v55  ;;  %v5638_v39 = vrot.slane %v7437_v8, 10  ;;  %v495_v36 = vsel %vm403_vm3, %v5634_v56, %v493_v2  ;;  %v503_v7 = vsel %vm397_vm0, %v5637_v37, %v194_v63 }
 0x245   :  { %v485_v60 = vsel %vm407_vm5, %v5629_v20, %v483_v23  ;;  %v5641_v20 = vrot.slane %v7446_v13, 6  ;;  %v497_v24 = vsel %vm405_vm4, %v496_v57, %v495_v36  ;;  %v5642_v33 = vrot.slane %v7448_v14, 5 }
 0x246   :  { %v487_v0 = vsel %vm409_vm6, %v5630_v15, %v485_v60  ;;  %v505_v29 = vsel %vm399_vm1, %v5638_v39, %v503_v7  ;;  %v202_v15 = vrot.slane %v7490_v40, 4  ;;  %v499_v50 = vsel %vm407_vm5, %v5635_v59, %v497_v24 }
 0x247   :  { %6066 = vmatprep.mubr.msk.f32.mxu1 %vm824_vm7, %v487_v0  ;;  %v5643_v35 = vrot.slane %v7459_v21, 11  ;;  %v501_v11 = vsel %vm409_vm6, %v5636_v61, %v499_v50  ;;  %v5646_v55 = vrot.slane %v7471_v27, 7  ;;  %v5647_v56 = vrot.slane %v7477_v31, 6 }
 0x248   :  { %v6678_v3 = vpop.eup %6677  ;;  %6067 = vmatmul.mubr.msk.f32.gmra.mrb[2].mxu1 %vm824_vm7, %v501_v11  ;;  %v5649_v61 = vrot.slane %v7435_v6, 12  ;;  %v5650_v60 = vrot.slane %v7437_v8, 11  ;;  %v5651_v63 = vrot.slane %v7441_v10, 9  ;;  %v5653_v37 = vrot.slane %v7446_v13, 7 }
 0x249   :  { %1272 = vrot.lane.b32.xlu0 %v6678_v3, %s7295_s22  ;;  %v5639_v3 = vrot.slane %v7439_v9, 9  ;;  %v517_v51 = vsel %vm397_vm0, %v5643_v35, %v202_v15  ;;  %v5654_v0 = vrot.slane %v7448_v14, 6  ;;  %v5655_v36 = vrot.slane %v7459_v21, 12 }
 0x24a   :  { %v519_v23 = vsel %vm399_vm1, %v5644_v16, %v517_v51  ;;  %v531_v39 = vsel %vm397_vm0, %v5649_v61, %v210_v58  ;;  %v548_v24 = vrot.slane %v221_v42, 5  ;;  %v5657_v50 = vrot.slane %v7469_v26, 9 }
 0x24b   :  { %v507_v19 = vsel %vm401_vm2, %v5639_v3, %v505_v29  ;;  %v521_v59 = vsel %vm401_vm2, %v5645_v52, %v519_v23  ;;  %v218_v3 = vrot.slane %v7490_v40, 5  ;;  %v5659_v16 = vrot.slane %v7477_v31, 7 }
 0x24c   :  { %v6680_v54 = vpop.eup %6679  ;;  %v509_v17 = vsel %vm403_vm3, %v7586_v34, %v507_v19  ;;  %v5648_v34 = vrot.slane %v7479_v32, 5  ;;  %v523_v62 = vsel %vm403_vm3, %v522_v53, %v521_v59  ;;  %v5660_v11 = vrot.slane %v7479_v32, 6 }
 0x24d   :  { %1274 = vrot.lane.b32.xlu1 %v6680_v54, %s7295_s22  ;;  %v511_v54 = vsel %vm405_vm4, %v5640_v18, %v509_v17  ;;  %v525_v2 = vsel %vm405_vm4, %v5646_v55, %v523_v62  ;;  %v533_v18 = vsel %vm399_vm1, %v5650_v60, %v531_v39  ;;  %v545_v15 = vsel %vm397_vm0, %v5655_v36, %v218_v3 }
 0x24e   :  { %v513_v57 = vsel %vm407_vm5, %v5641_v20, %v511_v54  ;;  %v527_v7 = vsel %vm407_vm5, %v5647_v56, %v525_v2  ;;  %v5656_v20 = vrot.slane %v7461_v22, 11  ;;  %v5661_v52 = vrot.slane %v7435_v6, 13 }
 0x24f   :  { %v515_v41 = vsel %vm409_vm6, %v5642_v33, %v513_v57  ;;  %v529_v29 = vsel %vm409_vm6, %v5648_v34, %v527_v7  ;;  %v535_v33 = vsel %vm401_vm2, %v7594_v44, %v533_v18  ;;  %v226_v44 = vrot.slane %v7433_v5, 6 }
 0x250   :  { %6069 = vmatprep.mubr.msk.f32.mxu1 %vm824_vm7, %v515_v41  ;;  %v537_v19 = vsel %vm403_vm3, %v5651_v63, %v535_v33  ;;  %v547_v35 = vsel %vm399_vm1, %v5656_v20, %v545_v15  ;;  %v5662_v51 = vrot.slane %v7439_v9, 11  ;;  %v5663_v55 = vrot.slane %v7441_v10, 10 }
 0x251   :  { %6070 = vmatmul.mubr.msk.f32.gmra.mrb[4].mxu1 %vm824_vm7, %v529_v29  ;;  %v539_v42 = vsel %vm405_vm4, %v7444_v12, %v537_v19  ;;  %v549_v17 = vsel %vm401_vm2, %v548_v24, %v547_v35  ;;  %v559_v23 = vsel %vm397_vm0, %v5661_v52, %v226_v44  ;;  %v5664_v34 = vrot.slane %v7444_v12, 9  ;;  %v7786_v44 = vld [vmem:[#allocation4 + $0x68] sm:$0xff] }
 0x252   :  { %v541_v53 = vsel %vm407_vm5, %v5653_v37, %v539_v42  ;;  %v551_v54 = vsel %vm403_vm3, %v5657_v50, %v549_v17  ;;  %v561_v58 = vsel %vm399_vm1, %v7598_v47, %v559_v23  ;;  %v5666_v41 = vrot.slane %v7448_v14, 7  ;;  %v7807_v23 = vld [vmem:[#allocation4 + $0x28] sm:$0xff] }
 0x253   :  { %v543_v56 = vsel %vm409_vm6, %v5654_v0, %v541_v53  ;;  %v553_v57 = vsel %vm405_vm4, %v7471_v27, %v551_v54  ;;  %v234_v59 = vrot.slane %v7490_v40, 6  ;;  %v563_v60 = vsel %vm401_vm2, %v5662_v51, %v561_v58  ;;  %v7794_v53 = vld [vmem:[#allocation4 + $0x38] sm:$0xff]  ;;  %v7796_v54 = vld [vmem:[#allocation4 + $0x48] sm:$0xff] }
 0x254   :  { %6072 = vmatprep.mubr.msk.f32.mxu1 %vm824_vm7, %v543_v56  ;;  %v555_v6 = vsel %vm407_vm5, %v5659_v16, %v553_v57  ;;  %v5667_v62 = vrot.slane %v7459_v21, 13  ;;  %v574_v63 = vrot.slane %v236_v43, 6  ;;  %v565_v37 = vsel %vm403_vm3, %v5663_v55, %v563_v60  ;;  %v7798_v51 = vld [vmem:[#allocation4 + $0x58] sm:$0xff]  ;;  %v7824_v60 = vld [vmem:[#allocation4 + $0x8] sm:$0xff] }
 0x255   :  { %v557_v61 = vsel %vm409_vm6, %v5660_v11, %v555_v6  ;;  %v5668_v0 = vrot.slane %v7467_v25, 11  ;;  %v5669_v47 = vrot.slane %v7469_v26, 10  ;;  %v5670_v2 = vrot.slane %v7471_v27, 9  ;;  %v7805_v57 = vld [vmem:[#allocation4 + $0x18] sm:$0xff] }
 0x256   :  { %6073 = vmatmul.mubr.msk.f32.gmra.mrb[6].mxu1 %vm824_vm7, %v557_v61  ;;  %v567_v39 = vsel %vm405_vm4, %v5664_v34, %v565_v37  ;;  %v573_v3 = vsel %vm397_vm0, %v5667_v62, %v234_v59  ;;  %v5672_v36 = vrot.slane %v7479_v32, 7  ;;  %v242_v7 = vrot.slane %v7433_v5, 7  ;;  %v7816_v59 = vld [vmem:[#allocation4 + $0xc8] sm:$0xff] }
 0x257   :  { %v569_v43 = vsel %vm407_vm5, %v7446_v13, %v567_v39  ;;  %v575_v18 = vsel %vm399_vm1, %v574_v63, %v573_v3  ;;  %v5673_v20 = vrot.slane %v7437_v8, 13  ;;  %v5674_v24 = vrot.slane %v7439_v9, 12  ;;  %v7829_v37 = vld [vmem:[#allocation4 + $0xa8] sm:$0xff]  ;;  %v7836_v3 = vld [vmem:[#allocation4 + $0x98] sm:$0xff] }
 0x258   :  { %v571_v29 = vsel %vm409_vm6, %v5666_v41, %v569_v43  ;;  %v577_v33 = vsel %vm401_vm2, %v5668_v0, %v575_v18  ;;  %v587_v15 = vsel %vm397_vm0, %v7602_v49, %v242_v7  ;;  %v5675_v50 = vrot.slane %v7441_v10, 11  ;;  %v7831_v0 = vld [vmem:[#allocation4 + $0xb8] sm:$0xff] }
 0x259   :  { %6075 = vmatprep.mubr.msk.f32.mxu1 %vm824_vm7, %v571_v29  ;;  %v579_v5 = vsel %vm403_vm3, %v5669_v47, %v577_v33  ;;  %v589_v19 = vsel %vm399_vm1, %v5673_v20, %v587_v15  ;;  %v5676_v35 = vrot.slane %v7444_v12, 10  ;;  %v5677_v8 = vrot.slane %v7446_v13, 9  ;;  %v7788_v13 = vld [vmem:[#allocation4 + $0x78] sm:$0xff]  ;;  %v7849_v33 = vld [vmem:[#allocation4 + $0x88] sm:$0xff] }
 0x25a   :  { %v581_v9 = vsel %vm405_vm4, %v5670_v2, %v579_v5  ;;  %v591_v16 = vsel %vm401_vm2, %v5674_v24, %v589_v19  ;;  %v250_v11 = vrot.slane %v7490_v40, 7  ;;  %v600_v49 = vrot.slane %v251_v45, 7 }
 0x25b   :  { %v583_v10 = vsel %vm407_vm5, %v7477_v31, %v581_v9  ;;  %v593_v42 = vsel %vm403_vm3, %v5675_v50, %v591_v16  ;;  %v5679_v17 = vrot.slane %v7461_v22, 13  ;;  %v5680_v12 = vrot.slane %v7467_v25, 12 }
 0x25c   :  { %v585_v52 = vsel %vm409_vm6, %v5672_v36, %v583_v10  ;;  %v595_v40 = vsel %vm405_vm4, %v5676_v35, %v593_v42  ;;  %v601_v21 = vsel %vm397_vm0, %v600_v49, %v250_v11  ;;  %v5681_v45 = vrot.slane %v7469_v26, 11  ;;  %v7809_v26 = vld [vmem:[#allocation4 + $0xf8] sm:$0xff] }
 0x25d   :  { %6076 = vmatmul.mubr.msk.f32.gmra.mrb[8].mxu1 %vm824_vm7, %v585_v52  ;;  %v597_v22 = vsel %vm407_vm5, %v5677_v8, %v595_v40  ;;  %v603_v25 = vsel %vm399_vm1, %v5679_v17, %v601_v21  ;;  %v5682_v55 = vrot.slane %v7471_v27, 10  ;;  %v5683_v56 = vrot.slane %v7477_v31, 9  ;;  %v7818_v27 = vld [vmem:[#allocation4 + $0xd8] sm:$0xff]  ;;  %v7820_v31 = vld [vmem:[#allocation4 + $0xe8] sm:$0xff] }
 0x25e   :  { %v599_v34 = vsel %vm409_vm6, %v7448_v14, %v597_v22  ;;  %v605_v6 = vsel %vm401_vm2, %v5680_v12, %v603_v25  ;;  %v281_v58 = vrot.slane %v7788_v13, 1  ;;  %v296_v41 = vrot.slane %v7786_v44, 2 }
 0x25f   :  { %6078 = vmatprep.mubr.msk.f32.mxu1 %vm824_vm7, %v599_v34  ;;  %v607_v61 = vsel %vm403_vm3, %v5681_v45, %v605_v6  ;;  %v311_v14 = vrot.slane %v7798_v51, 3  ;;  %v326_v62 = vrot.slane %v7796_v54, 4  ;;  %v341_v63 = vrot.slane %v7794_v53, 5 }
 0x260   :  { %v609_v47 = vsel %vm405_vm4, %v5682_v55, %v607_v61  ;;  %v356_v2 = vrot.slane %v7807_v23, 6  ;;  %v371_v39 = vrot.slane %v7805_v57, 7  ;;  %v289_v36 = vrot.slane %v7809_v26, 1 }
 0x261   :  { %v611_v7 = vsel %vm407_vm5, %v5683_v56, %v609_v47  ;;  %v304_v43 = vrot.slane %v7820_v31, 2  ;;  %v319_v18 = vrot.slane %v7818_v27, 3  ;;  %v334_v20 = vrot.slane %v7816_v59, 4 }
 0x262   :  { %v613_v24 = vsel %vm409_vm6, %v7479_v32, %v611_v7  ;;  %v614_v29 = vsel %vm397_vm0, %v371_v39, %v7824_v60  ;;  %v349_v15 = vrot.slane %v7831_v0, 5  ;;  %v364_v50 = vrot.slane %v7829_v37, 6 }
 0x263   :  { %6079 = vmatmul.mubr.msk.f32.gmra.mrb[10].mxu1 %vm824_vm7, %v613_v24  ;;  %v615_v5 = vsel %vm399_vm1, %v356_v2, %v614_v29  ;;  %v379_v19 = vrot.slane %v7836_v3, 7  ;;  %v274_v32 = vrot.slane %v7824_v60, 1  ;;  %v5686_v35 = vrot.slane %v7807_v23, 7 }
 0x264   :  { %v616_v8 = vsel %vm401_vm2, %v341_v63, %v615_v5  ;;  %v5687_v9 = vrot.slane %v7794_v53, 6  ;;  %v5688_v16 = vrot.slane %v7796_v54, 5  ;;  %v5689_v11 = vrot.slane %v7798_v51, 4 }
 0x265   :  { %v617_v49 = vsel %vm403_vm3, %v326_v62, %v616_v8  ;;  %v621_v10 = vsel %vm397_vm0, %v379_v19, %v7849_v33  ;;  %v629_v42 = vsel %vm397_vm0, %v7805_v57, %v274_v32  ;;  %v5690_v17 = vrot.slane %v7786_v44, 3 }
 0x266   :  { %v618_v12 = vsel %vm405_vm4, %v311_v14, %v617_v49  ;;  %v622_v52 = vsel %vm399_vm1, %v364_v50, %v621_v10  ;;  %v631_v40 = vsel %vm399_vm1, %v5686_v35, %v629_v42  ;;  %v640_v21 = vrot.slane %v281_v58, 1 }
 0x267   :  { %v619_v45 = vsel %vm407_vm5, %v296_v41, %v618_v12  ;;  %v623_v22 = vsel %vm401_vm2, %v349_v15, %v622_v52  ;;  %v633_v25 = vsel %vm401_vm2, %v5687_v9, %v631_v40  ;;  %v282_v55 = vrot.slane %v7849_v33, 1 }
 0x268   :  { %v620_v56 = vsel %vm409_vm6, %v281_v58, %v619_v45  ;;  %v624_v34 = vsel %vm403_vm3, %v334_v20, %v623_v22  ;;  %v635_v6 = vsel %vm403_vm3, %v5688_v16, %v633_v25  ;;  %v5692_v61 = vrot.slane %v7829_v37, 7 }
 0x269   :  { %6081 = vmatprep.mubr.msk.f32.mxu1 %vm824_vm7, %v620_v56  ;;  %v625_v47 = vsel %vm405_vm4, %v319_v18, %v624_v34  ;;  %v637_v7 = vsel %vm405_vm4, %v5689_v11, %v635_v6  ;;  %v643_v24 = vsel %vm397_vm0, %v7836_v3, %v282_v55  ;;  %v5693_v58 = vrot.slane %v7831_v0, 6 }
 0x26a   :  { %v626_v29 = vsel %vm407_vm5, %v304_v43, %v625_v47  ;;  %v639_v5 = vsel %vm407_vm5, %v5690_v17, %v637_v7  ;;  %v645_v32 = vsel %vm399_vm1, %v5692_v61, %v643_v24  ;;  %v5694_v35 = vrot.slane %v7816_v59, 5 }
 0x26b   :  { %v627_v8 = vsel %vm409_vm6, %v289_v36, %v626_v29  ;;  %v641_v9 = vsel %vm409_vm6, %v640_v21, %v639_v5  ;;  %v647_v16 = vsel %vm401_vm2, %v5693_v58, %v645_v32  ;;  %v5695_v11 = vrot.slane %v7818_v27, 4 }
 0x26c   :  { %6082 = vmatmul.mubr.msk.f32.gmra.mrb[12].mxu1 %vm824_vm7, %v627_v8  ;;  %v649_v49 = vsel %vm403_vm3, %v5694_v35, %v647_v16  ;;  %v5696_v10 = vrot.slane %v7820_v31, 3  ;;  %v654_v42 = vrot.slane %v289_v36, 1  ;;  %v290_v17 = vrot.slane %v7824_v60, 2 }
 0x26d   :  { %6084 = vmatprep.mubr.msk.f32.mxu1 %vm824_vm7, %v641_v9  ;;  %v651_v12 = vsel %vm405_vm4, %v5695_v11, %v649_v49  ;;  %v5697_v52 = vrot.slane %v7805_v57, 9  ;;  %v5699_v40 = vrot.slane %v7794_v53, 7  ;;  %v5700_v21 = vrot.slane %v7796_v54, 6 }
 0x26e   :  { %v653_v45 = vsel %vm407_vm5, %v5696_v10, %v651_v12  ;;  %v5701_v22 = vrot.slane %v7798_v51, 5  ;;  %v666_v25 = vrot.slane %v296_v41, 2  ;;  %v5702_v36 = vrot.slane %v7788_v13, 3 }
 0x26f   :  { %v655_v55 = vsel %vm409_vm6, %v654_v42, %v653_v45  ;;  %v657_v56 = vsel %vm397_vm0, %v5697_v52, %v290_v17  ;;  %v298_v34 = vrot.slane %v7849_v33, 2  ;;  %v5703_v6 = vrot.slane %v7836_v3, 9 }
 0x270   :  { %6085 = vmatmul.mubr.msk.f32.gmra.mrb[14].mxu1 %vm824_vm7, %v655_v55  ;;  %v659_v61 = vsel %vm399_vm1, %v7807_v23, %v657_v56  ;;  %v5705_v47 = vrot.slane %v7831_v0, 7  ;;  %v5706_v7 = vrot.slane %v7816_v59, 6  ;;  %v5707_v41 = vrot.slane %v7818_v27, 5 }
 0x271   :  { %v661_v24 = vsel %vm401_vm2, %v5699_v40, %v659_v61  ;;  %v671_v58 = vsel %vm397_vm0, %v5703_v6, %v298_v34  ;;  %v680_v29 = vrot.slane %v304_v43, 2  ;;  %v5708_v5 = vrot.slane %v7809_v26, 3 }
 0x272   :  { %v663_v32 = vsel %vm403_vm3, %v5700_v21, %v661_v24  ;;  %v673_v35 = vsel %vm399_vm1, %v7829_v37, %v671_v58  ;;  %v306_v8 = vrot.slane %v7824_v60, 3  ;;  %v5709_v9 = vrot.slane %v7805_v57, 10 }
 0x273   :  { %v665_v16 = vsel %vm405_vm4, %v5701_v22, %v663_v32  ;;  %v675_v11 = vsel %vm401_vm2, %v5705_v47, %v673_v35  ;;  %v5710_v49 = vrot.slane %v7807_v23, 9  ;;  %v5712_v10 = vrot.slane %v7796_v54, 7 }
 0x274   :  { %v667_v43 = vsel %vm407_vm5, %v666_v25, %v665_v16  ;;  %v677_v42 = vsel %vm403_vm3, %v5706_v7, %v675_v11  ;;  %v685_v17 = vsel %vm397_vm0, %v5709_v9, %v306_v8  ;;  %v692_v12 = vrot.slane %v311_v14, 3 }
 0x275   :  { %v669_v52 = vsel %vm409_vm6, %v5702_v36, %v667_v43  ;;  %v679_v40 = vsel %vm405_vm4, %v5707_v41, %v677_v42  ;;  %v687_v21 = vsel %vm399_vm1, %v5710_v49, %v685_v17  ;;  %v5713_v45 = vrot.slane %v7786_v44, 5 }
 0x276   :  { %6087 = vmatprep.mubr.msk.f32.mxu1 %vm824_vm7, %v669_v52  ;;  %v681_v22 = vsel %vm407_vm5, %v680_v29, %v679_v40  ;;  %v689_v25 = vsel %vm401_vm2, %v7794_v53, %v687_v21  ;;  %v5714_v55 = vrot.slane %v7788_v13, 4  ;;  %v314_v56 = vrot.slane %v7849_v33, 3 }
 0x277   :  { %v683_v14 = vsel %vm409_vm6, %v5708_v5, %v681_v22  ;;  %v691_v36 = vsel %vm403_vm3, %v5712_v10, %v689_v25  ;;  %v5715_v34 = vrot.slane %v7836_v3, 10  ;;  %v5716_v6 = vrot.slane %v7829_v37, 9 }
 0x278   :  { %6088 = vmatmul.mubr.msk.f32.gmra.mrb[16].mxu1 %vm824_vm7, %v683_v14  ;;  %v693_v61 = vsel %vm405_vm4, %v692_v12, %v691_v36  ;;  %v5718_v47 = vrot.slane %v7816_v59, 7  ;;  %v706_v7 = vrot.slane %v319_v18, 3  ;;  %v5719_v41 = vrot.slane %v7820_v31, 5 }
 0x279   :  { %v695_v24 = vsel %vm407_vm5, %v5713_v45, %v693_v61  ;;  %v699_v58 = vsel %vm397_vm0, %v5715_v34, %v314_v56  ;;  %v5720_v29 = vrot.slane %v7809_v26, 4  ;;  %v322_v5 = vrot.slane %v7824_v60, 4 }
 0x27a   :  { %v697_v32 = vsel %vm409_vm6, %v5714_v55, %v695_v24  ;;  %v701_v35 = vsel %vm399_vm1, %v5716_v6, %v699_v58  ;;  %v5721_v8 = vrot.slane %v7805_v57, 11  ;;  %v5722_v9 = vrot.slane %v7807_v23, 10 }
 0x27b   :  { %6090 = vmatprep.mubr.msk.f32.mxu1 %vm824_vm7, %v697_v32  ;;  %v703_v18 = vsel %vm401_vm2, %v7831_v0, %v701_v35  ;;  %v5723_v16 = vrot.slane %v7794_v53, 9  ;;  %v718_v11 = vrot.slane %v326_v62, 4  ;;  %v5724_v49 = vrot.slane %v7798_v51, 7 }
 0x27c   :  { %v705_v10 = vsel %vm403_vm3, %v5718_v47, %v703_v18  ;;  %v713_v43 = vsel %vm397_vm0, %v5721_v8, %v322_v5  ;;  %v5725_v42 = vrot.slane %v7786_v44, 6  ;;  %v5726_v17 = vrot.slane %v7788_v13, 5 }
 0x27d   :  { %v707_v12 = vsel %vm405_vm4, %v706_v7, %v705_v10  ;;  %v715_v52 = vsel %vm399_vm1, %v5722_v9, %v713_v43  ;;  %v330_v40 = vrot.slane %v7849_v33, 4  ;;  %v5727_v21 = vrot.slane %v7836_v3, 11 }
 0x27e   :  { %v709_v62 = vsel %vm407_vm5, %v5719_v41, %v707_v12  ;;  %v717_v45 = vsel %vm401_vm2, %v5723_v16, %v715_v52  ;;  %v5728_v22 = vrot.slane %v7829_v37, 10  ;;  %v5729_v25 = vrot.slane %v7831_v0, 9 }
 0x27f   :  { %v711_v55 = vsel %vm409_vm6, %v5720_v29, %v709_v62  ;;  %v719_v56 = vsel %vm403_vm3, %v718_v11, %v717_v45  ;;  %v727_v14 = vsel %vm397_vm0, %v5727_v21, %v330_v40  ;;  %v732_v36 = vrot.slane %v334_v20, 4 }
 0x280   :  { %6091 = vmatmul.mubr.msk.f32.gmra.mrb[18].mxu1 %vm824_vm7, %v711_v55  ;;  %v721_v34 = vsel %vm405_vm4, %v5724_v49, %v719_v56  ;;  %v729_v6 = vsel %vm399_vm1, %v5728_v22, %v727_v14  ;;  %v5730_v61 = vrot.slane %v7818_v27, 7  ;;  %v5731_v47 = vrot.slane %v7820_v31, 6 }
 0x281   :  { %v723_v7 = vsel %vm407_vm5, %v5725_v42, %v721_v34  ;;  %v731_v41 = vsel %vm401_vm2, %v5729_v25, %v729_v6  ;;  %v5732_v24 = vrot.slane %v7809_v26, 5  ;;  %v338_v58 = vrot.slane %v7824_v60, 5 }
 0x282   :  { %v725_v20 = vsel %vm409_vm6, %v5726_v17, %v723_v7  ;;  %v733_v29 = vsel %vm403_vm3, %v732_v36, %v731_v41  ;;  %v5733_v5 = vrot.slane %v7805_v57, 12  ;;  %v5734_v32 = vrot.slane %v7807_v23, 11 }
 0x283   :  { %6093 = vmatprep.mubr.msk.f32.mxu1 %vm824_vm7, %v725_v20  ;;  %v735_v35 = vsel %vm405_vm4, %v5730_v61, %v733_v29  ;;  %v744_v8 = vrot.slane %v341_v63, 5  ;;  %v5735_v9 = vrot.slane %v7796_v54, 9  ;;  %v5737_v11 = vrot.slane %v7786_v44, 7 }
 0x284   :  { %v737_v18 = vsel %vm407_vm5, %v5731_v47, %v735_v35  ;;  %v741_v16 = vsel %vm397_vm0, %v5733_v5, %v338_v58  ;;  %v346_v49 = vrot.slane %v7849_v33, 5  ;;  %v5739_v42 = vrot.slane %v7836_v3, 12 }
 0x285   :  { %v739_v10 = vsel %vm409_vm6, %v5732_v24, %v737_v18  ;;  %v743_v43 = vsel %vm399_vm1, %v5734_v32, %v741_v16  ;;  %v5740_v17 = vrot.slane %v7829_v37, 11  ;;  %v5738_v12 = vrot.slane %v7788_v13, 6 }
 0x286   :  { %6094 = vmatmul.mubr.msk.f32.gmra.mrb[20].mxu1 %vm824_vm7, %v739_v10  ;;  %v745_v63 = vsel %vm401_vm2, %v744_v8, %v743_v43  ;;  %v758_v52 = vrot.slane %v349_v15, 5  ;;  %v5741_v40 = vrot.slane %v7816_v59, 9  ;;  %v755_v62 = vsel %vm397_vm0, %v5739_v42, %v346_v49 }
 0x287   :  { %v747_v21 = vsel %vm403_vm3, %v5735_v9, %v745_v63  ;;  %v757_v22 = vsel %vm399_vm1, %v5740_v17, %v755_v62  ;;  %v5743_v25 = vrot.slane %v7820_v31, 7  ;;  %v5744_v14 = vrot.slane %v7809_v26, 6 }
 0x288   :  { %v749_v45 = vsel %vm405_vm4, %v7798_v51, %v747_v21  ;;  %v759_v56 = vsel %vm401_vm2, %v758_v52, %v757_v22  ;;  %v354_v47 = vrot.slane %v7824_v60, 6  ;;  %v5745_v7 = vrot.slane %v7805_v57, 13  ;;  %v3467_v22 = vld [vmem:[#allocation12] sm:$0xff] }
 0x289   :  { %v751_v55 = vsel %vm407_vm5, %v5737_v11, %v749_v45  ;;  %v761_v36 = vsel %vm403_vm3, %v5741_v40, %v759_v56  ;;  %v770_v41 = vrot.slane %v356_v2, 6  ;;  %v362_v24 = vrot.slane %v7849_v33, 6 }
 0x28a   :  { %v753_v15 = vsel %vm409_vm6, %v5738_v12, %v751_v55  ;;  %v763_v34 = vsel %vm405_vm4, %v7818_v27, %v761_v36  ;;  %v5751_v58 = vrot.slane %v7836_v3, 13  ;;  %v769_v20 = vsel %vm397_vm0, %v5745_v7, %v354_v47  ;;  %v3469_v7 = vld [vmem:[#allocation12 + $0x10] sm:$0xff] }
 0x28b   :  { %6096 = vmatprep.mubr.msk.f32.mxu1 %vm824_vm7, %v753_v15  ;;  %v765_v6 = vsel %vm407_vm5, %v5743_v25, %v763_v34  ;;  %v5746_v29 = vrot.slane %v7794_v53, 11  ;;  %v784_v5 = vrot.slane %v364_v50, 6  ;;  %v771_v32 = vsel %vm399_vm1, %v770_v41, %v769_v20  ;;  %v3468_v25 = vld [vmem:[#allocation12 + $0x8] sm:$0xff]  ;;  %v3470_v41 = vld [vmem:[#allocation12 + $0x18] sm:$0xff] }
 0x28c   :  { %v767_v61 = vsel %vm409_vm6, %v5744_v14, %v765_v6  ;;  %v5747_v35 = vrot.slane %v7796_v54, 10  ;;  %v783_v8 = vsel %vm397_vm0, %v5751_v58, %v362_v24  ;;  %v5752_v9 = vrot.slane %v7831_v0, 11 }
 0x28d   :  { %6097 = vmatmul.mubr.msk.f32.gmra.mrb[22].mxu1 %vm824_vm7, %v767_v61  ;;  %v773_v2 = vsel %vm401_vm2, %v5746_v29, %v771_v32  ;;  %v5748_v18 = vrot.slane %v7798_v51, 9  ;;  %v785_v16 = vsel %vm399_vm1, %v784_v5, %v783_v8  ;;  %v5753_v11 = vrot.slane %v7816_v59, 10 }
 0x28e   :  { %v775_v49 = vsel %vm403_vm3, %v5747_v35, %v773_v2  ;;  %v787_v50 = vsel %vm401_vm2, %v5752_v9, %v785_v16  ;;  %v5754_v10 = vrot.slane %v7818_v27, 9  ;;  %v370_v43 = vrot.slane %v7824_v60, 7 }
 0x28f   :  { %v777_v42 = vsel %vm405_vm4, %v5748_v18, %v775_v49  ;;  %v5750_v17 = vrot.slane %v7788_v13, 7  ;;  %v789_v63 = vsel %vm403_vm3, %v5753_v11, %v787_v50  ;;  %v796_v12 = vrot.slane %v371_v39, 7 }
 0x290   :  { %v779_v52 = vsel %vm407_vm5, %v7786_v44, %v777_v42  ;;  %v791_v40 = vsel %vm405_vm4, %v5754_v10, %v789_v63  ;;  %v5756_v21 = vrot.slane %v7809_v26, 7  ;;  %v5757_v62 = vrot.slane %v7807_v23, 13 }
 0x291   :  { %v781_v60 = vsel %vm409_vm6, %v5750_v17, %v779_v52  ;;  %v793_v45 = vsel %vm407_vm5, %v7820_v31, %v791_v40  ;;  %v797_v55 = vsel %vm397_vm0, %v796_v12, %v370_v43  ;;  %v5758_v57 = vrot.slane %v7794_v53, 12 }
 0x292   :  { %6099 = vmatprep.mubr.msk.f32.mxu1 %vm824_vm7, %v781_v60  ;;  %v795_v39 = vsel %vm409_vm6, %v5756_v21, %v793_v45  ;;  %v6487_v56 = vpack.c.bf16 %v3468_v25, %v3467_v22  ;;  %v799_v14 = vsel %vm399_vm1, %v5757_v62, %v797_v55  ;;  %v5759_v23 = vrot.slane %v7796_v54, 11 }
 0x293   :  { %6100 = vmatmul.mubr.msk.f32.gmra.mrb[24].mxu1 %vm824_vm7, %v795_v39  ;;  %v801_v15 = vsel %vm401_vm2, %v5758_v57, %v799_v14  ;;  %v5760_v36 = vrot.slane %v7798_v51, 10  ;;  %v5761_v34 = vrot.slane %v7786_v44, 9  ;;  %v378_v6 = vrot.slane %v7849_v33, 7 }
 0x294   :  { %6488 = vmatprep.subr.bf16.mxu1 %v6487_v56  ;;  %v803_v53 = vsel %vm403_vm3, %v5759_v23, %v801_v15  ;;  %v810_v61 = vrot.slane %v379_v19, 7  ;;  %v5763_v47 = vrot.slane %v7829_v37, 13  ;;  %v5764_v54 = vrot.slane %v7831_v0, 12 }
 0x295   :  { %6490 = vmatpush3.bf16.msra.mxu1 %v6487_v56  ;;  %v805_v24 = vsel %vm405_vm4, %v5760_v36, %v803_v53  ;;  %v5765_v51 = vrot.slane %v7816_v59, 11  ;;  %v5766_v58 = vrot.slane %v7818_v27, 10  ;;  %v6491_v20 = vpack.c.bf16 %v3470_v41, %v3469_v7 }
 0x296   :  { %v807_v44 = vsel %vm407_vm5, %v5761_v34, %v805_v24  ;;  %v811_v33 = vsel %vm397_vm0, %v810_v61, %v378_v6  ;;  %v5767_v0 = vrot.slane %v7820_v31, 9  ;;  %v8200_v34 = vld [vmem:[%s9487_s4] ss:$0 sm:$0xff] }
 0x297   :  { %v809_v3 = vsel %vm409_vm6, %v7788_v13, %v807_v44  ;;  %v813_v37 = vsel %vm399_vm1, %v5763_v47, %v811_v33  ;;  %6492 = vmatprep.subr.bf16.mxu1 %v6491_v20 }
 0x298   :  { %6102 = vmatprep.mubr.msk.f32.mxu1 %vm824_vm7, %v809_v3  ;;  %v815_v19 = vsel %vm401_vm2, %v5764_v54, %v813_v37 }
 0x299   :  { %v817_v59 = vsel %vm403_vm3, %v5765_v51, %v815_v19  ;;  %6494 = vmatpush3.bf16.msra.mxu1 %v6491_v20 }
 0x29a   :  { %v819_v5 = vsel %vm405_vm4, %v5766_v58, %v817_v59 }
 0x29b   :  { %v821_v32 = vsel %vm407_vm5, %v5767_v0, %v819_v5 }
 0x29c   :  { %v823_v13 = vsel %vm409_vm6, %v7809_v26, %v821_v32 }
 0x29d   :  { %6103 = vmatmul.mubr.msk.f32.gmra.mrb[26].mxu1 %vm824_vm7, %v823_v13 }
 0x2bb   :  { %v1273_v29 = vpop.permute.xlu0 %1272 }
 0x2bc   :  { %v1278_v27 = vmul.f32 %v7571_v1, %v1273_v29 }
 0x2be   :  { %1282 = vrot.lane.b32.xlu0 %v1278_v27, %s7296_s23 }
 0x2bf   :  { %v1275_v31 = vpop.permute.xlu1 %1274 }
 0x2c0   :  { %v1279_v35 = vmul.f32 %v7575_v4, %v1275_v31 }
 0x2c2   :  { %1284 = vrot.lane.b32.xlu1 %v1279_v35, %s7296_s23 }
 0x317   :  { %v8131_v8 = vpop.f32.mrb[0].mxu1 }
 0x318   :  { %v8133_v9 = vpop.f32.mrb[1].mxu1 }
 0x31b   :  { %v8135_v2 = vpop.f32.mrb[2].mxu1 }
 0x31c   :  { %v8137_v1 = vpop.f32.mrb[3].mxu1 }
 0x324   :  { %v8139_v18 = vpop.f32.mrb[4].mxu1 }
 0x325   :  { %v8141_v26 = vpop.f32.mrb[5].mxu1 }
 0x329   :  { %v8145_v11 = vpop.f32.mrb[6].mxu1 }
 0x32a   :  { %v8149_v49 = vpop.f32.mrb[7].mxu1 }
 0x330   :  { %v1283_v16 = vpop.permute.xlu0 %1282  ;;  %v8156_v43 = vpop.f32.mrb[8].mxu1 }
 0x331   :  { %1288 = vst.msk [vmem:[#allocation3] sm:$0xff] %vm824_vm7, %v1283_v16  ;;  %6124 = vmatprep.mubr.msk.f32.mxu0 %vm824_vm7, %v1283_v16  ;;  %v8159_v42 = vpop.f32.mrb[9].mxu1 }
 0x334   :  { %v1285_v4 = vpop.permute.xlu1 %1284 }
 0x335   :  { %1289 = vst.msk [vmem:[#allocation3 + $0x8] sm:$0xff] %vm824_vm7, %v1285_v4  ;;  %6125 = vmatmul.mubr.msk.f32.vlgmr.msra.gmra.mrb[2].mxu0 %vm824_vm7, %v1285_v4 }
 0x336   :  { %6378 = vmatpush3.bf16.msra.mxu0 %v7499_v46  ;;  %v8161_v17 = vpop.f32.mrb[10].mxu1 }
 0x337   :  { %6380 = vmatprep.subr.bf16.mxu0 %v7549_v48  ;;  %v8163_v63 = vpop.f32.mrb[11].mxu1 }
 0x338   :  { %v3435_v50 = vld [vmem:[#allocation3] sm:$0xff] }
 0x339   :  { %6289 = vmatprep.mubr.msk.f32.mxu1 %vm824_vm7, %v3435_v50 }
 0x33a   :  { %6382 = vmatpush3.bf16.msra.mxu0 %v7549_v48 }
 0x33b   :  { %6384 = vmatprep.subr.bf16.mxu0 %v7499_v46 }
 0x33c   :  { %v3436_v10 = vld [vmem:[#allocation3 + $0x8] sm:$0xff] }
 0x33d   :  { %6290 = vmatmul.mubr.msk.f32.vlgmr.msra.gmra.mrb[28].mxu1 %vm824_vm7, %v3436_v10 }
 0x33f   :  { %v8165_v12 = vpop.f32.mrb[12].mxu1 }
 0x340   :  { %v8167_v52 = vpop.f32.mrb[13].mxu1 }
 0x343   :  { %v8169_v40 = vpop.f32.mrb[14].mxu1 }
 0x344   :  { %v8171_v21 = vpop.f32.mrb[15].mxu1 }
 0x34b   :  { %v8173_v62 = vpop.f32.mrb[16].mxu1 }
 0x34c   :  { %v8175_v60 = vpop.f32.mrb[17].mxu1 }
 0x353   :  { %v8177_v45 = vpop.f32.mrb[18].mxu1 }
 0x354   :  { %v8179_v22 = vpop.f32.mrb[19].mxu1 }
 0x359   :  { %v8181_v25 = vpop.f32.mrb[20].mxu1 }
 0x35a   :  { %v8183_v55 = vpop.f32.mrb[21].mxu1 }
 0x360   :  { %v8185_v57 = vpop.f32.mrb[22].mxu1 }
 0x361   :  { %v8187_v39 = vpop.f32.mrb[23].mxu1 }
 0x366   :  { %v8189_v56 = vpop.f32.mrb[24].mxu1 }
 0x367   :  { %v8191_v14 = vpop.f32.mrb[25].mxu1 }
 0x370   :  { %v8193_v23 = vpop.f32.mrb[26].mxu1 }
 0x371   :  { %v8195_v15 = vpop.f32.mrb[27].mxu1 }
 0x408   :  { %v6126_v36 = vpop.f32.mrb[2].mxu0 }
 0x409   :  { %v6509_v6 = vadd.f32 %v8200_v34, %v6126_v36  ;;  %v1363_v53 = vpop.f32.mrb[3].mxu0 }
 0x40a   :  { %v6510_v61 = vadd.f32 %v8200_v34, %v1363_v53 }
 0x40b   :  { %6681 = vtanh.f32 %v6509_v6  ;;  %v1375_v24 = vsub.f32 0.0, %v6509_v6 }
 0x40c   :  { %6683 = vtanh.f32 %v6510_v61  ;;  %v1374_v51 = vsub.f32 0.0, %v6510_v61 }
 0x40d   :  { %v1378_v44 = vmul.f32 1.442695, %v1375_v24  ;;  %v981_v24 = vadd.f32 %v8200_v34, %v8131_v8 }
 0x40e   :  { %v1376_v33 = vmul.f32 1.442695, %v1374_v51  ;;  %v976_v51 = vadd.f32 %v8200_v34, %v8133_v9 }
 0x40f   :  { %6685 = vpow2.f32 %v1378_v44 }
 0x410   :  { %v8204_v47 = vpop.f32.mrb[28].mxu1  ;;  %6687 = vpow2.f32 %v1376_v33 }
 0x411   :  { %v8206_v54 = vpop.f32.mrb[29].mxu1 }
 0x415   :  { %v6682_v7 = vpop.eup %6681 }
 0x416   :  { %v6684_v41 = vpop.eup %6683  ;;  %1394 = vrot.lane.b32.xlu1 %v6682_v7, %s7295_s22 }
 0x417   :  { %1392 = vrot.lane.b32.xlu0 %v6684_v41, %s7295_s22 }
 0x419   :  { %v6686_v58 = vpop.eup %6685 }
 0x41a   :  { %v6688_v20 = vpop.eup %6687  ;;  %v1381_v3 = vadd.f32 1.0, %v6686_v58 }
 0x41b   :  { %v1380_v37 = vadd.f32 1.0, %v6688_v20 }
 0x41c   :  { %6689 = vrcp.f32 %v1381_v3 }
 0x41d   :  { %6691 = vrcp.f32 %v1380_v37 }
 0x426   :  { %v6690_v0 = vpop.eup %6689 }
 0x427   :  { %v6692_v59 = vpop.eup %6691  ;;  %v1389_v32 = vmul.f32 %v6690_v0, %v7588_v38 }
 0x428   :  { %v1388_v31 = vmul.f32 %v6692_v59, %v7580_v28 }
 0x488   :  { %v1395_v19 = vpop.permute.xlu1 %1394 }
 0x489   :  { %v1399_v29 = vmul.f32 %v6690_v0, %v1395_v19  ;;  %v1393_v5 = vpop.permute.xlu0 %1392 }
 0x48a   :  { %v1398_v27 = vmul.f32 %v6692_v59, %v1393_v5 }
 0x48b   :  { %1404 = vrot.lane.b32.xlu1 %v1399_v29, %s7296_s23 }
 0x48c   :  { %1402 = vrot.lane.b32.xlu0 %v1398_v27, %s7296_s23 }
 0x4fd   :  { %v1405_v13 = vpop.permute.xlu1 %1404 }
 0x4fe   :  { %v8214_v35 = vadd.f32 %v1405_v13, %v1389_v32  ;;  %v1403_v16 = vpop.permute.xlu0 %1402 }
 0x4ff   :  { %v8216_v4 = vadd.f32 %v1403_v16, %v1388_v31 }
 0x500   :  { %6693 = vtanh.f32 %v8214_v35 }
 0x501   :  { %6695 = vtanh.f32 %v8216_v4 }
 0x50a   :  { %v6694_v50 = vpop.eup %6693 }
 0x50b   :  { %v6696_v10 = vpop.eup %6695  ;;  %1416 = vrot.lane.b32.xlu1 %v6694_v50, %s7295_s22 }
 0x50c   :  { %1414 = vrot.lane.b32.xlu0 %v6696_v10, %s7295_s22 }
 0x57d   :  { %v1417_v36 = vpop.permute.xlu1 %1416 }
 0x57e   :  { %v1421_v38 = vmul.f32 %v6690_v0, %v1417_v36  ;;  %v1415_v6 = vpop.permute.xlu0 %1414 }
 0x57f   :  { %v1420_v53 = vmul.f32 %v6692_v59, %v1415_v6 }
 0x580   :  { %1426 = vrot.lane.b32.xlu1 %v1421_v38, %s7296_s23 }
 0x581   :  { %1424 = vrot.lane.b32.xlu0 %v1420_v53, %s7296_s23 }
 0x5f2   :  { %v1427_v28 = vpop.permute.xlu1 %1426 }
 0x5f3   :  { %1432 = vst.msk [vmem:[#allocation3 + $0x18] sm:$0xff] %vm824_vm7, %v1427_v28  ;;  %v1425_v61 = vpop.permute.xlu0 %1424 }
 0x5f4   :  { %1431 = vst.msk [vmem:[#allocation3 + $0x10] sm:$0xff] %vm824_vm7, %v1425_v61  ;;  %6135 = vmatprep.mubr.msk.f32.mxu0 %vm824_vm7, %v1425_v61 }
 0x5f5   :  { %6136 = vmatmul.mubr.msk.f32.vlgmr.msra.gmra.mrb[4].mxu0 %vm824_vm7, %v1427_v28 }
 0x5f6   :  { %6386 = vmatpush3.bf16.msra.mxu0 %v7499_v46 }
 0x5f7   :  { %6388 = vmatprep.subr.bf16.mxu0 %v7549_v48 }
 0x5fa   :  { %6390 = vmatpush3.bf16.msra.mxu0 %v7549_v48  ;;  %v3438_v41 = vld [vmem:[#allocation3 + $0x18] sm:$0xff] }
 0x5fb   :  { %v3437_v7 = vld [vmem:[#allocation3 + $0x10] sm:$0xff]  ;;  %6392 = vmatprep.subr.bf16.mxu0 %v7499_v46 }
 0x5fc   :  { %6292 = vmatprep.mubr.msk.f32.mxu1 %vm824_vm7, %v3437_v7 }
 0x5fd   :  { %6293 = vmatmul.mubr.msk.f32.gmra.mrb[30].mxu1 %vm824_vm7, %v3438_v41 }
 0x6c8   :  { %v6137_v44 = vpop.f32.mrb[4].mxu0 }
 0x6c9   :  { %v1516_v33 = vadd.f32 %v6137_v44, %v981_v24  ;;  %v1506_v58 = vpop.f32.mrb[5].mxu0 }
 0x6ca   :  { %v1515_v20 = vadd.f32 %v1506_v58, %v976_v51 }
 0x6cb   :  { %6697 = vtanh.f32 %v1516_v33  ;;  %v1518_v8 = vsub.f32 0.0, %v1516_v33 }
 0x6cc   :  { %6699 = vtanh.f32 %v1515_v20  ;;  %v1517_v59 = vsub.f32 0.0, %v1515_v20 }
 0x6cd   :  { %v1521_v29 = vmul.f32 1.442695, %v1518_v8  ;;  %v991_v8 = vadd.f32 %v8200_v34, %v8135_v2 }
 0x6ce   :  { %v1519_v9 = vmul.f32 1.442695, %v1517_v59  ;;  %v986_v59 = vadd.f32 %v8200_v34, %v8137_v1 }
 0x6cf   :  { %6701 = vpow2.f32 %v1521_v29 }
 0x6d0   :  { %v8238_v3 = vpop.f32.mrb[30].mxu1  ;;  %6703 = vpow2.f32 %v1519_v9 }
 0x6d1   :  { %v8240_v37 = vpop.f32.mrb[31].mxu1 }
 0x6d5   :  { %v6698_v0 = vpop.eup %6697 }
 0x6d6   :  { %v6700_v19 = vpop.eup %6699  ;;  %1537 = vrot.lane.b32.xlu1 %v6698_v0, %s7295_s22 }
 0x6d7   :  { %1535 = vrot.lane.b32.xlu0 %v6700_v19, %s7295_s22 }
 0x6d9   :  { %v6702_v5 = vpop.eup %6701 }
 0x6da   :  { %v6704_v27 = vpop.eup %6703  ;;  %v1524_v32 = vadd.f32 1.0, %v6702_v5 }
 0x6db   :  { %v1523_v13 = vadd.f32 1.0, %v6704_v27 }
 0x6dc   :  { %6705 = vrcp.f32 %v1524_v32 }
 0x6dd   :  { %6707 = vrcp.f32 %v1523_v13 }
 0x6e6   :  { %v6706_v31 = vpop.eup %6705 }
 0x6e7   :  { %v6708_v50 = vpop.eup %6707  ;;  %v1532_v6 = vmul.f32 %v6706_v31, %v8214_v35 }
 0x6e8   :  { %v1531_v28 = vmul.f32 %v6708_v50, %v8216_v4 }
 0x748   :  { %v1538_v16 = vpop.permute.xlu1 %1537 }
 0x749   :  { %v1542_v10 = vmul.f32 %v6706_v31, %v1538_v16  ;;  %v1536_v36 = vpop.permute.xlu0 %1535 }
 0x74a   :  { %v1541_v38 = vmul.f32 %v6708_v50, %v1536_v36 }
 0x74b   :  { %1547 = vrot.lane.b32.xlu1 %v1542_v10, %s7296_s23 }
 0x74c   :  { %1545 = vrot.lane.b32.xlu0 %v1541_v38, %s7296_s23 }
 0x7bd   :  { %v1548_v53 = vpop.permute.xlu1 %1547 }
 0x7be   :  { %v8248_v61 = vadd.f32 %v1548_v53, %v1532_v6  ;;  %v1546_v7 = vpop.permute.xlu0 %1545 }
 0x7bf   :  { %v8250_v41 = vadd.f32 %v1546_v7, %v1531_v28 }
 0x7c0   :  { %6709 = vtanh.f32 %v8248_v61 }
 0x7c1   :  { %6711 = vtanh.f32 %v8250_v41 }
 0x7ca   :  { %v6710_v24 = vpop.eup %6709 }
 0x7cb   :  { %v6712_v51 = vpop.eup %6711  ;;  %1559 = vrot.lane.b32.xlu1 %v6710_v24, %s7295_s22 }
 0x7cc   :  { %1557 = vrot.lane.b32.xlu0 %v6712_v51, %s7295_s22 }
 0x83d   :  { %v1560_v44 = vpop.permute.xlu1 %1559 }
 0x83e   :  { %v1564_v35 = vmul.f32 %v6706_v31, %v1560_v44  ;;  %v1558_v33 = vpop.permute.xlu0 %1557 }
 0x83f   :  { %v1563_v58 = vmul.f32 %v6708_v50, %v1558_v33 }
 0x840   :  { %1569 = vrot.lane.b32.xlu1 %v1564_v35, %s7296_s23 }
 0x841   :  { %1567 = vrot.lane.b32.xlu0 %v1563_v58, %s7296_s23 }
 0x8b2   :  { %v1570_v4 = vpop.permute.xlu1 %1569 }
 0x8b3   :  { %1575 = vst.msk [vmem:[#allocation3 + $0x28] sm:$0xff] %vm824_vm7, %v1570_v4  ;;  %v1568_v20 = vpop.permute.xlu0 %1567 }
 0x8b4   :  { %1574 = vst.msk [vmem:[#allocation3 + $0x20] sm:$0xff] %vm824_vm7, %v1568_v20  ;;  %6146 = vmatprep.mubr.msk.f32.mxu0 %vm824_vm7, %v1568_v20 }
 0x8b5   :  { %6147 = vmatmul.mubr.msk.f32.vlgmr.msra.gmra.mrb[6].mxu0 %vm824_vm7, %v1570_v4 }
 0x8b6   :  { %6394 = vmatpush3.bf16.msra.mxu0 %v7499_v46 }
 0x8b7   :  { %6396 = vmatprep.subr.bf16.mxu0 %v7549_v48 }
 0x8ba   :  { %6398 = vmatpush3.bf16.msra.mxu0 %v7549_v48  ;;  %v3440_v19 = vld [vmem:[#allocation3 + $0x28] sm:$0xff] }
 0x8bb   :  { %v3439_v0 = vld [vmem:[#allocation3 + $0x20] sm:$0xff]  ;;  %6400 = vmatprep.subr.bf16.mxu0 %v7499_v46 }
 0x8bc   :  { %6295 = vmatprep.mubr.msk.f32.mxu1 %vm824_vm7, %v3439_v0 }
 0x8bd   :  { %6296 = vmatmul.mubr.msk.f32.gmra.mrb[32].mxu1 %vm824_vm7, %v3440_v19 }
 0x988   :  { %v6148_v29 = vpop.f32.mrb[6].mxu0 }
 0x989   :  { %v1659_v9 = vadd.f32 %v6148_v29, %v991_v8  ;;  %v1649_v5 = vpop.f32.mrb[7].mxu0 }
 0x98a   :  { %v1658_v27 = vadd.f32 %v1649_v5, %v986_v59 }
 0x98b   :  { %6713 = vtanh.f32 %v1659_v9  ;;  %v1661_v2 = vsub.f32 0.0, %v1659_v9 }
 0x98c   :  { %6715 = vtanh.f32 %v1658_v27  ;;  %v1660_v50 = vsub.f32 0.0, %v1658_v27 }
 0x98d   :  { %v1664_v10 = vmul.f32 1.442695, %v1661_v2  ;;  %v1001_v2 = vadd.f32 %v8200_v34, %v8139_v18 }
 0x98e   :  { %v1662_v1 = vmul.f32 1.442695, %v1660_v50  ;;  %v996_v50 = vadd.f32 %v8200_v34, %v8141_v26 }
 0x98f   :  { %6717 = vpow2.f32 %v1664_v10 }
 0x990   :  { %v8272_v32 = vpop.f32.mrb[32].mxu1  ;;  %6719 = vpow2.f32 %v1662_v1 }
 0x991   :  { %v8274_v13 = vpop.f32.mrb[33].mxu1 }
 0x995   :  { %v6714_v31 = vpop.eup %6713 }
 0x996   :  { %v6716_v16 = vpop.eup %6715  ;;  %1680 = vrot.lane.b32.xlu1 %v6714_v31, %s7295_s22 }
 0x997   :  { %1678 = vrot.lane.b32.xlu0 %v6716_v16, %s7295_s22 }
 0x999   :  { %v6718_v36 = vpop.eup %6717 }
 0x99a   :  { %v6720_v38 = vpop.eup %6719  ;;  %v1667_v6 = vadd.f32 1.0, %v6718_v36 }
 0x99b   :  { %v1666_v53 = vadd.f32 1.0, %v6720_v38 }
 0x99c   :  { %6721 = vrcp.f32 %v1667_v6 }
 0x99d   :  { %6723 = vrcp.f32 %v1666_v53 }
 0x9a6   :  { %v6722_v28 = vpop.eup %6721 }
 0x9a7   :  { %v6724_v24 = vpop.eup %6723  ;;  %v1675_v33 = vmul.f32 %v6722_v28, %v8248_v61 }
 0x9a8   :  { %v1674_v4 = vmul.f32 %v6724_v24, %v8250_v41 }
 0xa08   :  { %v1681_v7 = vpop.permute.xlu1 %1680 }
 0xa09   :  { %v1685_v51 = vmul.f32 %v6722_v28, %v1681_v7  ;;  %v1679_v44 = vpop.permute.xlu0 %1678 }
 0xa0a   :  { %v1684_v35 = vmul.f32 %v6724_v24, %v1679_v44 }
 0xa0b   :  { %1690 = vrot.lane.b32.xlu1 %v1685_v51, %s7296_s23 }
 0xa0c   :  { %1688 = vrot.lane.b32.xlu0 %v1684_v35, %s7296_s23 }
 0xa7d   :  { %v1691_v58 = vpop.permute.xlu1 %1690 }
 0xa7e   :  { %v8282_v20 = vadd.f32 %v1691_v58, %v1675_v33  ;;  %v1689_v0 = vpop.permute.xlu0 %1688 }
 0xa7f   :  { %v8284_v19 = vadd.f32 %v1689_v0, %v1674_v4 }
 0xa80   :  { %6725 = vtanh.f32 %v8282_v20 }
 0xa81   :  { %6727 = vtanh.f32 %v8284_v19 }
 0xa8a   :  { %v6726_v8 = vpop.eup %6725 }
 0xa8b   :  { %v6728_v59 = vpop.eup %6727  ;;  %1702 = vrot.lane.b32.xlu1 %v6726_v8, %s7295_s22 }
 0xa8c   :  { %1700 = vrot.lane.b32.xlu0 %v6728_v59, %s7295_s22 }
 0xafd   :  { %v1703_v29 = vpop.permute.xlu1 %1702 }
 0xafe   :  { %v1707_v61 = vmul.f32 %v6722_v28, %v1703_v29  ;;  %v1701_v9 = vpop.permute.xlu0 %1700 }
 0xaff   :  { %v1706_v5 = vmul.f32 %v6724_v24, %v1701_v9 }
 0xb00   :  { %1712 = vrot.lane.b32.xlu1 %v1707_v61, %s7296_s23 }
 0xb01   :  { %1710 = vrot.lane.b32.xlu0 %v1706_v5, %s7296_s23 }
 0xb72   :  { %v1713_v41 = vpop.permute.xlu1 %1712 }
 0xb73   :  { %1718 = vst.msk [vmem:[#allocation3 + $0x38] sm:$0xff] %vm824_vm7, %v1713_v41  ;;  %v1711_v27 = vpop.permute.xlu0 %1710 }
 0xb74   :  { %1717 = vst.msk [vmem:[#allocation3 + $0x30] sm:$0xff] %vm824_vm7, %v1711_v27  ;;  %6157 = vmatprep.mubr.msk.f32.mxu0 %vm824_vm7, %v1711_v27 }
 0xb75   :  { %6158 = vmatmul.mubr.msk.f32.vlgmr.msra.gmra.mrb[8].mxu0 %vm824_vm7, %v1713_v41 }
 0xb76   :  { %6402 = vmatpush3.bf16.msra.mxu0 %v7499_v46 }
 0xb77   :  { %6404 = vmatprep.subr.bf16.mxu0 %v7549_v48 }
 0xb7a   :  { %6406 = vmatpush3.bf16.msra.mxu0 %v7549_v48  ;;  %v3442_v16 = vld [vmem:[#allocation3 + $0x38] sm:$0xff] }
 0xb7b   :  { %v3441_v31 = vld [vmem:[#allocation3 + $0x30] sm:$0xff]  ;;  %6408 = vmatprep.subr.bf16.mxu0 %v7499_v46 }
 0xb7c   :  { %6298 = vmatprep.mubr.msk.f32.mxu1 %vm824_vm7, %v3441_v31 }
 0xb7d   :  { %6299 = vmatmul.mubr.msk.f32.gmra.mrb[34].mxu1 %vm824_vm7, %v3442_v16 }
 0xc48   :  { %v6159_v10 = vpop.f32.mrb[8].mxu0 }
 0xc49   :  { %v1802_v1 = vadd.f32 %v6159_v10, %v1001_v2  ;;  %v1792_v36 = vpop.f32.mrb[9].mxu0 }
 0xc4a   :  { %v1801_v38 = vadd.f32 %v1792_v36, %v996_v50 }
 0xc4b   :  { %6729 = vtanh.f32 %v1802_v1  ;;  %v1804_v18 = vsub.f32 0.0, %v1802_v1 }
 0xc4c   :  { %6731 = vtanh.f32 %v1801_v38  ;;  %v1803_v24 = vsub.f32 0.0, %v1801_v38 }
 0xc4d   :  { %v1807_v51 = vmul.f32 1.442695, %v1804_v18  ;;  %v1011_v18 = vadd.f32 %v8200_v34, %v8145_v11 }
 0xc4e   :  { %v1805_v26 = vmul.f32 1.442695, %v1803_v24  ;;  %v1006_v24 = vadd.f32 %v8200_v34, %v8149_v49 }
 0xc4f   :  { %6733 = vpow2.f32 %v1807_v51 }
 0xc50   :  { %v8306_v6 = vpop.f32.mrb[34].mxu1  ;;  %6735 = vpow2.f32 %v1805_v26 }
 0xc51   :  { %v8308_v53 = vpop.f32.mrb[35].mxu1 }
 0xc55   :  { %v6730_v28 = vpop.eup %6729 }
 0xc56   :  { %v6732_v7 = vpop.eup %6731  ;;  %1823 = vrot.lane.b32.xlu1 %v6730_v28, %s7295_s22 }
 0xc57   :  { %1821 = vrot.lane.b32.xlu0 %v6732_v7, %s7295_s22 }
 0xc59   :  { %v6734_v44 = vpop.eup %6733 }
 0xc5a   :  { %v6736_v35 = vpop.eup %6735  ;;  %v1810_v33 = vadd.f32 1.0, %v6734_v44 }
 0xc5b   :  { %v1809_v58 = vadd.f32 1.0, %v6736_v35 }
 0xc5c   :  { %6737 = vrcp.f32 %v1810_v33 }
 0xc5d   :  { %6739 = vrcp.f32 %v1809_v58 }
 0xc66   :  { %v6738_v4 = vpop.eup %6737 }
 0xc67   :  { %v6740_v8 = vpop.eup %6739  ;;  %v1818_v9 = vmul.f32 %v6738_v4, %v8282_v20 }
 0xc68   :  { %v1817_v41 = vmul.f32 %v6740_v8, %v8284_v19 }
 0xcc8   :  { %v1824_v0 = vpop.permute.xlu1 %1823 }
 0xcc9   :  { %v1828_v59 = vmul.f32 %v6738_v4, %v1824_v0  ;;  %v1822_v29 = vpop.permute.xlu0 %1821 }
 0xcca   :  { %v1827_v61 = vmul.f32 %v6740_v8, %v1822_v29 }
 0xccb   :  { %1833 = vrot.lane.b32.xlu1 %v1828_v59, %s7296_s23 }
 0xccc   :  { %1831 = vrot.lane.b32.xlu0 %v1827_v61, %s7296_s23 }
 0xd3d   :  { %v1834_v5 = vpop.permute.xlu1 %1833 }
 0xd3e   :  { %v8316_v27 = vadd.f32 %v1834_v5, %v1818_v9  ;;  %v1832_v31 = vpop.permute.xlu0 %1831 }
 0xd3f   :  { %v8318_v16 = vadd.f32 %v1832_v31, %v1817_v41 }
 0xd40   :  { %6741 = vtanh.f32 %v8316_v27 }
 0xd41   :  { %6743 = vtanh.f32 %v8318_v16 }
 0xd4a   :  { %v6742_v2 = vpop.eup %6741 }
 0xd4b   :  { %v6744_v50 = vpop.eup %6743  ;;  %1845 = vrot.lane.b32.xlu1 %v6742_v2, %s7295_s22 }
 0xd4c   :  { %1843 = vrot.lane.b32.xlu0 %v6744_v50, %s7295_s22 }
 0xdbd   :  { %v1846_v10 = vpop.permute.xlu1 %1845 }
 0xdbe   :  { %v1850_v20 = vmul.f32 %v6738_v4, %v1846_v10  ;;  %v1844_v1 = vpop.permute.xlu0 %1843 }
 0xdbf   :  { %v1849_v36 = vmul.f32 %v6740_v8, %v1844_v1 }
 0xdc0   :  { %1855 = vrot.lane.b32.xlu1 %v1850_v20, %s7296_s23 }
 0xdc1   :  { %1853 = vrot.lane.b32.xlu0 %v1849_v36, %s7296_s23 }
 0xe32   :  { %v1856_v19 = vpop.permute.xlu1 %1855 }
 0xe33   :  { %1861 = vst.msk [vmem:[#allocation3 + $0x48] sm:$0xff] %vm824_vm7, %v1856_v19  ;;  %v1854_v38 = vpop.permute.xlu0 %1853 }
 0xe34   :  { %1860 = vst.msk [vmem:[#allocation3 + $0x40] sm:$0xff] %vm824_vm7, %v1854_v38  ;;  %6168 = vmatprep.mubr.msk.f32.mxu0 %vm824_vm7, %v1854_v38 }
 0xe35   :  { %6169 = vmatmul.mubr.msk.f32.vlgmr.msra.gmra.mrb[10].mxu0 %vm824_vm7, %v1856_v19 }
 0xe36   :  { %6410 = vmatpush3.bf16.msra.mxu0 %v7499_v46 }
 0xe37   :  { %6412 = vmatprep.subr.bf16.mxu0 %v7549_v48 }
 0xe3a   :  { %6414 = vmatpush3.bf16.msra.mxu0 %v7549_v48  ;;  %v3444_v7 = vld [vmem:[#allocation3 + $0x48] sm:$0xff] }
 0xe3b   :  { %v3443_v28 = vld [vmem:[#allocation3 + $0x40] sm:$0xff]  ;;  %6416 = vmatprep.subr.bf16.mxu0 %v7499_v46 }
 0xe3c   :  { %6301 = vmatprep.mubr.msk.f32.mxu1 %vm824_vm7, %v3443_v28 }
 0xe3d   :  { %6302 = vmatmul.mubr.msk.f32.gmra.mrb[36].mxu1 %vm824_vm7, %v3444_v7 }
 0xf08   :  { %v6170_v51 = vpop.f32.mrb[10].mxu0 }
 0xf09   :  { %v1945_v26 = vadd.f32 %v6170_v51, %v1011_v18  ;;  %v1935_v44 = vpop.f32.mrb[11].mxu0 }
 0xf0a   :  { %v1944_v35 = vadd.f32 %v1935_v44, %v1006_v24 }
 0xf0b   :  { %6745 = vtanh.f32 %v1945_v26  ;;  %v1947_v11 = vsub.f32 0.0, %v1945_v26 }
 0xf0c   :  { %6747 = vtanh.f32 %v1944_v35  ;;  %v1946_v8 = vsub.f32 0.0, %v1944_v35 }
 0xf0d   :  { %v1950_v59 = vmul.f32 1.442695, %v1947_v11  ;;  %v1021_v11 = vadd.f32 %v8200_v34, %v8156_v43 }
 0xf0e   :  { %v1948_v49 = vmul.f32 1.442695, %v1946_v8  ;;  %v1016_v8 = vadd.f32 %v8200_v34, %v8159_v42 }
 0xf0f   :  { %6749 = vpow2.f32 %v1950_v59 }
 0xf10   :  { %v8340_v33 = vpop.f32.mrb[36].mxu1  ;;  %6751 = vpow2.f32 %v1948_v49 }
 0xf11   :  { %v8342_v58 = vpop.f32.mrb[37].mxu1 }
 0xf15   :  { %v6746_v4 = vpop.eup %6745 }
 0xf16   :  { %v6748_v0 = vpop.eup %6747  ;;  %1966 = vrot.lane.b32.xlu1 %v6746_v4, %s7295_s22 }
 0xf17   :  { %1964 = vrot.lane.b32.xlu0 %v6748_v0, %s7295_s22 }
 0xf19   :  { %v6750_v29 = vpop.eup %6749 }
 0xf1a   :  { %v6752_v61 = vpop.eup %6751  ;;  %v1953_v9 = vadd.f32 1.0, %v6750_v29 }
 0xf1b   :  { %v1952_v5 = vadd.f32 1.0, %v6752_v61 }
 0xf1c   :  { %6753 = vrcp.f32 %v1953_v9 }
 0xf1d   :  { %6755 = vrcp.f32 %v1952_v5 }
 0xf26   :  { %v6754_v41 = vpop.eup %6753 }
 0xf27   :  { %v6756_v2 = vpop.eup %6755  ;;  %v1961_v1 = vmul.f32 %v6754_v41, %v8316_v27 }
 0xf28   :  { %v1960_v19 = vmul.f32 %v6756_v2, %v8318_v16 }
 0xf88   :  { %v1967_v31 = vpop.permute.xlu1 %1966 }
 0xf89   :  { %v1971_v50 = vmul.f32 %v6754_v41, %v1967_v31  ;;  %v1965_v10 = vpop.permute.xlu0 %1964 }
 0xf8a   :  { %v1970_v20 = vmul.f32 %v6756_v2, %v1965_v10 }
 0xf8b   :  { %1976 = vrot.lane.b32.xlu1 %v1971_v50, %s7296_s23 }
 0xf8c   :  { %1974 = vrot.lane.b32.xlu0 %v1970_v20, %s7296_s23 }
 0xffd   :  { %v1977_v36 = vpop.permute.xlu1 %1976 }
 0xffe   :  { %v8350_v38 = vadd.f32 %v1977_v36, %v1961_v1  ;;  %v1975_v28 = vpop.permute.xlu0 %1974 }
 0xfff   :  { %v8352_v7 = vadd.f32 %v1975_v28, %v1960_v19 }
0x1000   :  { %6757 = vtanh.f32 %v8350_v38 }
0x1001   :  { %6759 = vtanh.f32 %v8352_v7 }
0x100a   :  { %v6758_v18 = vpop.eup %6757 }
0x100b   :  { %v6760_v24 = vpop.eup %6759  ;;  %1988 = vrot.lane.b32.xlu1 %v6758_v18, %s7295_s22 }
0x100c   :  { %1986 = vrot.lane.b32.xlu0 %v6760_v24, %s7295_s22 }
0x107d   :  { %v1989_v51 = vpop.permute.xlu1 %1988 }
0x107e   :  { %v1993_v27 = vmul.f32 %v6754_v41, %v1989_v51  ;;  %v1987_v26 = vpop.permute.xlu0 %1986 }
0x107f   :  { %v1992_v44 = vmul.f32 %v6756_v2, %v1987_v26 }
0x1080   :  { %1998 = vrot.lane.b32.xlu1 %v1993_v27, %s7296_s23 }
0x1081   :  { %1996 = vrot.lane.b32.xlu0 %v1992_v44, %s7296_s23 }
0x10f2   :  { %v1999_v16 = vpop.permute.xlu1 %1998 }
0x10f3   :  { %2004 = vst.msk [vmem:[#allocation3 + $0x58] sm:$0xff] %vm824_vm7, %v1999_v16  ;;  %v1997_v35 = vpop.permute.xlu0 %1996 }
0x10f4   :  { %2003 = vst.msk [vmem:[#allocation3 + $0x50] sm:$0xff] %vm824_vm7, %v1997_v35  ;;  %6179 = vmatprep.mubr.msk.f32.mxu0 %vm824_vm7, %v1997_v35 }
0x10f5   :  { %6180 = vmatmul.mubr.msk.f32.vlgmr.msra.gmra.mrb[12].mxu0 %vm824_vm7, %v1999_v16 }
0x10f6   :  { %6418 = vmatpush3.bf16.msra.mxu0 %v7499_v46 }
0x10f7   :  { %6420 = vmatprep.subr.bf16.mxu0 %v7549_v48 }
0x10fa   :  { %6422 = vmatpush3.bf16.msra.mxu0 %v7549_v48  ;;  %v3446_v0 = vld [vmem:[#allocation3 + $0x58] sm:$0xff] }
0x10fb   :  { %v3445_v4 = vld [vmem:[#allocation3 + $0x50] sm:$0xff]  ;;  %6424 = vmatprep.subr.bf16.mxu0 %v7499_v46 }
0x10fc   :  { %6304 = vmatprep.mubr.msk.f32.mxu1 %vm824_vm7, %v3445_v4 }
0x10fd   :  { %6305 = vmatmul.mubr.msk.f32.gmra.mrb[38].mxu1 %vm824_vm7, %v3446_v0 }
0x11c8   :  { %v6181_v59 = vpop.f32.mrb[12].mxu0 }
0x11c9   :  { %v2088_v49 = vadd.f32 %v6181_v59, %v1021_v11  ;;  %v2078_v29 = vpop.f32.mrb[13].mxu0 }
0x11ca   :  { %v2087_v61 = vadd.f32 %v2078_v29, %v1016_v8 }
0x11cb   :  { %6761 = vtanh.f32 %v2088_v49  ;;  %v2090_v43 = vsub.f32 0.0, %v2088_v49 }
0x11cc   :  { %6763 = vtanh.f32 %v2087_v61  ;;  %v2089_v2 = vsub.f32 0.0, %v2087_v61 }
0x11cd   :  { %v2093_v50 = vmul.f32 1.442695, %v2090_v43  ;;  %v1031_v43 = vadd.f32 %v8200_v34, %v8161_v17 }
0x11ce   :  { %v2091_v42 = vmul.f32 1.442695, %v2089_v2  ;;  %v1026_v2 = vadd.f32 %v8200_v34, %v8163_v63 }
0x11cf   :  { %6765 = vpow2.f32 %v2093_v50 }
0x11d0   :  { %v8374_v9 = vpop.f32.mrb[38].mxu1  ;;  %6767 = vpow2.f32 %v2091_v42 }
0x11d1   :  { %v8376_v5 = vpop.f32.mrb[39].mxu1 }
0x11d5   :  { %v6762_v41 = vpop.eup %6761 }
0x11d6   :  { %v6764_v31 = vpop.eup %6763  ;;  %2109 = vrot.lane.b32.xlu1 %v6762_v41, %s7295_s22 }
0x11d7   :  { %2107 = vrot.lane.b32.xlu0 %v6764_v31, %s7295_s22 }
0x11d9   :  { %v6766_v10 = vpop.eup %6765 }
0x11da   :  { %v6768_v20 = vpop.eup %6767  ;;  %v2096_v1 = vadd.f32 1.0, %v6766_v10 }
0x11db   :  { %v2095_v36 = vadd.f32 1.0, %v6768_v20 }
0x11dc   :  { %6769 = vrcp.f32 %v2096_v1 }
0x11dd   :  { %6771 = vrcp.f32 %v2095_v36 }
0x11e6   :  { %v6770_v19 = vpop.eup %6769 }
0x11e7   :  { %v6772_v18 = vpop.eup %6771  ;;  %v2104_v26 = vmul.f32 %v6770_v19, %v8350_v38 }
0x11e8   :  { %v2103_v16 = vmul.f32 %v6772_v18, %v8352_v7 }
0x1248   :  { %v2110_v28 = vpop.permute.xlu1 %2109 }
0x1249   :  { %v2114_v24 = vmul.f32 %v6770_v19, %v2110_v28  ;;  %v2108_v51 = vpop.permute.xlu0 %2107 }
0x124a   :  { %v2113_v27 = vmul.f32 %v6772_v18, %v2108_v51 }
0x124b   :  { %2119 = vrot.lane.b32.xlu1 %v2114_v24, %s7296_s23 }
0x124c   :  { %2117 = vrot.lane.b32.xlu0 %v2113_v27, %s7296_s23 }
0x12bd   :  { %v2120_v44 = vpop.permute.xlu1 %2119 }
0x12be   :  { %v8384_v35 = vadd.f32 %v2120_v44, %v2104_v26  ;;  %v2118_v4 = vpop.permute.xlu0 %2117 }
0x12bf   :  { %v8386_v0 = vadd.f32 %v2118_v4, %v2103_v16 }
0x12c0   :  { %6773 = vtanh.f32 %v8384_v35 }
0x12c1   :  { %6775 = vtanh.f32 %v8386_v0 }
0x12ca   :  { %v6774_v11 = vpop.eup %6773 }
0x12cb   :  { %v6776_v8 = vpop.eup %6775  ;;  %2131 = vrot.lane.b32.xlu1 %v6774_v11, %s7295_s22 }
0x12cc   :  { %2129 = vrot.lane.b32.xlu0 %v6776_v8, %s7295_s22 }
0x133d   :  { %v2132_v59 = vpop.permute.xlu1 %2131 }
0x133e   :  { %v2136_v38 = vmul.f32 %v6770_v19, %v2132_v59  ;;  %v2130_v49 = vpop.permute.xlu0 %2129 }
0x133f   :  { %v2135_v29 = vmul.f32 %v6772_v18, %v2130_v49 }
0x1340   :  { %2141 = vrot.lane.b32.xlu1 %v2136_v38, %s7296_s23 }
0x1341   :  { %2139 = vrot.lane.b32.xlu0 %v2135_v29, %s7296_s23 }
0x13b2   :  { %v2142_v7 = vpop.permute.xlu1 %2141 }
0x13b3   :  { %2147 = vst.msk [vmem:[#allocation3 + $0x68] sm:$0xff] %vm824_vm7, %v2142_v7  ;;  %v2140_v61 = vpop.permute.xlu0 %2139 }
0x13b4   :  { %2146 = vst.msk [vmem:[#allocation3 + $0x60] sm:$0xff] %vm824_vm7, %v2140_v61  ;;  %6190 = vmatprep.mubr.msk.f32.mxu0 %vm824_vm7, %v2140_v61 }
0x13b5   :  { %6191 = vmatmul.mubr.msk.f32.vlgmr.msra.gmra.mrb[14].mxu0 %vm824_vm7, %v2142_v7 }
0x13b6   :  { %6426 = vmatpush3.bf16.msra.mxu0 %v7499_v46 }
0x13b7   :  { %6428 = vmatprep.subr.bf16.mxu0 %v7549_v48 }
0x13ba   :  { %6430 = vmatpush3.bf16.msra.mxu0 %v7549_v48  ;;  %v3448_v31 = vld [vmem:[#allocation3 + $0x68] sm:$0xff] }
0x13bb   :  { %v3447_v41 = vld [vmem:[#allocation3 + $0x60] sm:$0xff]  ;;  %6432 = vmatprep.subr.bf16.mxu0 %v7499_v46 }
0x13bc   :  { %6307 = vmatprep.mubr.msk.f32.mxu1 %vm824_vm7, %v3447_v41 }
0x13bd   :  { %6308 = vmatmul.mubr.msk.f32.gmra.mrb[40].mxu1 %vm824_vm7, %v3448_v31 }
0x1488   :  { %v6192_v50 = vpop.f32.mrb[14].mxu0 }
0x1489   :  { %v2231_v42 = vadd.f32 %v6192_v50, %v1031_v43  ;;  %v2221_v10 = vpop.f32.mrb[15].mxu0 }
0x148a   :  { %v2230_v20 = vadd.f32 %v2221_v10, %v1026_v2 }
0x148b   :  { %6777 = vtanh.f32 %v2231_v42  ;;  %v2233_v17 = vsub.f32 0.0, %v2231_v42 }
0x148c   :  { %6779 = vtanh.f32 %v2230_v20  ;;  %v2232_v18 = vsub.f32 0.0, %v2230_v20 }
0x148d   :  { %v2236_v24 = vmul.f32 1.442695, %v2233_v17  ;;  %v1041_v17 = vadd.f32 %v8200_v34, %v8165_v12 }
0x148e   :  { %v2234_v63 = vmul.f32 1.442695, %v2232_v18  ;;  %v1036_v18 = vadd.f32 %v8200_v34, %v8167_v52 }
0x148f   :  { %6781 = vpow2.f32 %v2236_v24 }
0x1490   :  { %v8408_v1 = vpop.f32.mrb[40].mxu1  ;;  %6783 = vpow2.f32 %v2234_v63 }
0x1491   :  { %v8410_v36 = vpop.f32.mrb[41].mxu1 }
0x1495   :  { %v6778_v19 = vpop.eup %6777 }
0x1496   :  { %v6780_v28 = vpop.eup %6779  ;;  %2252 = vrot.lane.b32.xlu1 %v6778_v19, %s7295_s22 }
0x1497   :  { %2250 = vrot.lane.b32.xlu0 %v6780_v28, %s7295_s22 }
0x1499   :  { %v6782_v51 = vpop.eup %6781 }
0x149a   :  { %v6784_v27 = vpop.eup %6783  ;;  %v2239_v26 = vadd.f32 1.0, %v6782_v51 }
0x149b   :  { %v2238_v44 = vadd.f32 1.0, %v6784_v27 }
0x149c   :  { %6785 = vrcp.f32 %v2239_v26 }
0x149d   :  { %6787 = vrcp.f32 %v2238_v44 }
0x14a6   :  { %v6786_v16 = vpop.eup %6785 }
0x14a7   :  { %v6788_v11 = vpop.eup %6787  ;;  %v2247_v49 = vmul.f32 %v6786_v16, %v8384_v35 }
0x14a8   :  { %v2246_v7 = vmul.f32 %v6788_v11, %v8386_v0 }
0x1508   :  { %v2253_v4 = vpop.permute.xlu1 %2252 }
0x1509   :  { %v2257_v8 = vmul.f32 %v6786_v16, %v2253_v4  ;;  %v2251_v59 = vpop.permute.xlu0 %2250 }
0x150a   :  { %v2256_v38 = vmul.f32 %v6788_v11, %v2251_v59 }
0x150b   :  { %2262 = vrot.lane.b32.xlu1 %v2257_v8, %s7296_s23 }
0x150c   :  { %2260 = vrot.lane.b32.xlu0 %v2256_v38, %s7296_s23 }
0x157d   :  { %v2263_v29 = vpop.permute.xlu1 %2262 }
0x157e   :  { %v8418_v61 = vadd.f32 %v2263_v29, %v2247_v49  ;;  %v2261_v41 = vpop.permute.xlu0 %2260 }
0x157f   :  { %v8420_v31 = vadd.f32 %v2261_v41, %v2246_v7 }
0x1580   :  { %6789 = vtanh.f32 %v8418_v61 }
0x1581   :  { %6791 = vtanh.f32 %v8420_v31 }
0x158a   :  { %v6790_v43 = vpop.eup %6789 }
0x158b   :  { %v6792_v2 = vpop.eup %6791  ;;  %2274 = vrot.lane.b32.xlu1 %v6790_v43, %s7295_s22 }
0x158c   :  { %2272 = vrot.lane.b32.xlu0 %v6792_v2, %s7295_s22 }
0x15fd   :  { %v2275_v50 = vpop.permute.xlu1 %2274 }
0x15fe   :  { %v2279_v35 = vmul.f32 %v6786_v16, %v2275_v50  ;;  %v2273_v42 = vpop.permute.xlu0 %2272 }
0x15ff   :  { %v2278_v10 = vmul.f32 %v6788_v11, %v2273_v42 }
0x1600   :  { %2284 = vrot.lane.b32.xlu1 %v2279_v35, %s7296_s23 }
0x1601   :  { %2282 = vrot.lane.b32.xlu0 %v2278_v10, %s7296_s23 }
0x1672   :  { %v2285_v0 = vpop.permute.xlu1 %2284 }
0x1673   :  { %2290 = vst.msk [vmem:[#allocation3 + $0x78] sm:$0xff] %vm824_vm7, %v2285_v0  ;;  %v2283_v20 = vpop.permute.xlu0 %2282 }
0x1674   :  { %2289 = vst.msk [vmem:[#allocation3 + $0x70] sm:$0xff] %vm824_vm7, %v2283_v20  ;;  %6201 = vmatprep.mubr.msk.f32.mxu0 %vm824_vm7, %v2283_v20 }
0x1675   :  { %6202 = vmatmul.mubr.msk.f32.vlgmr.msra.gmra.mrb[16].mxu0 %vm824_vm7, %v2285_v0 }
0x1676   :  { %6434 = vmatpush3.bf16.msra.mxu0 %v7499_v46 }
0x1677   :  { %6436 = vmatprep.subr.bf16.mxu0 %v7549_v48 }
0x167a   :  { %6438 = vmatpush3.bf16.msra.mxu0 %v7549_v48  ;;  %v3450_v28 = vld [vmem:[#allocation3 + $0x78] sm:$0xff] }
0x167b   :  { %v3449_v19 = vld [vmem:[#allocation3 + $0x70] sm:$0xff]  ;;  %6440 = vmatprep.subr.bf16.mxu0 %v7499_v46 }
0x167c   :  { %6310 = vmatprep.mubr.msk.f32.mxu1 %vm824_vm7, %v3449_v19 }
0x167d   :  { %6311 = vmatmul.mubr.msk.f32.gmra.mrb[42].mxu1 %vm824_vm7, %v3450_v28 }
0x1748   :  { %v6203_v24 = vpop.f32.mrb[16].mxu0 }
0x1749   :  { %v2374_v63 = vadd.f32 %v6203_v24, %v1041_v17  ;;  %v2364_v51 = vpop.f32.mrb[17].mxu0 }
0x174a   :  { %v2373_v27 = vadd.f32 %v2364_v51, %v1036_v18 }
0x174b   :  { %6793 = vtanh.f32 %v2374_v63  ;;  %v2376_v12 = vsub.f32 0.0, %v2374_v63 }
0x174c   :  { %6795 = vtanh.f32 %v2373_v27  ;;  %v2375_v11 = vsub.f32 0.0, %v2373_v27 }
0x174d   :  { %v2379_v8 = vmul.f32 1.442695, %v2376_v12 }
0x174e   :  { %v2377_v52 = vmul.f32 1.442695, %v2375_v11 }
0x174f   :  { %6797 = vpow2.f32 %v2379_v8 }
0x1750   :  { %v8442_v26 = vpop.f32.mrb[42].mxu1  ;;  %6799 = vpow2.f32 %v2377_v52 }
0x1751   :  { %v8444_v44 = vpop.f32.mrb[43].mxu1 }
0x1755   :  { %v6794_v16 = vpop.eup %6793 }
0x1756   :  { %v6796_v4 = vpop.eup %6795  ;;  %2395 = vrot.lane.b32.xlu1 %v6794_v16, %s7295_s22 }
0x1757   :  { %2393 = vrot.lane.b32.xlu0 %v6796_v4, %s7295_s22  ;;  %v8475_v4 = vld [vmem:[%s9487_s4] ss:$0 sm:$0xff] }
0x1758   :  { %v1051_v12 = vadd.f32 %v8475_v4, %v8169_v40  ;;  %v1046_v11 = vadd.f32 %v8475_v4, %v8171_v21 }
0x1759   :  { %v6798_v34 = vpop.eup %6797 }
0x175a   :  { %v6800_v59 = vpop.eup %6799  ;;  %v2382_v38 = vadd.f32 1.0, %v6798_v34 }
0x175b   :  { %v2381_v49 = vadd.f32 1.0, %v6800_v59 }
0x175c   :  { %6801 = vrcp.f32 %v2382_v38 }
0x175d   :  { %6803 = vrcp.f32 %v2381_v49 }
0x1766   :  { %v6802_v29 = vpop.eup %6801 }
0x1767   :  { %v6804_v41 = vpop.eup %6803  ;;  %v2390_v35 = vmul.f32 %v6802_v29, %v8418_v61 }
0x1768   :  { %v2389_v10 = vmul.f32 %v6804_v41, %v8420_v31 }
0x17c8   :  { %v2396_v7 = vpop.permute.xlu1 %2395 }
0x17c9   :  { %v2400_v43 = vmul.f32 %v6802_v29, %v2396_v7  ;;  %v2394_v2 = vpop.permute.xlu0 %2393 }
0x17ca   :  { %v2399_v50 = vmul.f32 %v6804_v41, %v2394_v2 }
0x17cb   :  { %2405 = vrot.lane.b32.xlu1 %v2400_v43, %s7296_s23 }
0x17cc   :  { %2403 = vrot.lane.b32.xlu0 %v2399_v50, %s7296_s23 }
0x183d   :  { %v2406_v42 = vpop.permute.xlu1 %2405 }
0x183e   :  { %v8452_v0 = vadd.f32 %v2406_v42, %v2390_v35  ;;  %v2404_v20 = vpop.permute.xlu0 %2403 }
0x183f   :  { %v8454_v19 = vadd.f32 %v2404_v20, %v2389_v10 }
0x1840   :  { %6805 = vtanh.f32 %v8452_v0 }
0x1841   :  { %6807 = vtanh.f32 %v8454_v19 }
0x184a   :  { %v6806_v28 = vpop.eup %6805 }
0x184b   :  { %v6808_v17 = vpop.eup %6807  ;;  %2417 = vrot.lane.b32.xlu1 %v6806_v28, %s7295_s22 }
0x184c   :  { %2415 = vrot.lane.b32.xlu0 %v6808_v17, %s7295_s22 }
0x18bd   :  { %v2418_v18 = vpop.permute.xlu1 %2417 }
0x18be   :  { %v2422_v61 = vmul.f32 %v6802_v29, %v2418_v18  ;;  %v2416_v24 = vpop.permute.xlu0 %2415 }
0x18bf   :  { %v2421_v63 = vmul.f32 %v6804_v41, %v2416_v24 }
0x18c0   :  { %2427 = vrot.lane.b32.xlu1 %v2422_v61, %s7296_s23 }
0x18c1   :  { %2425 = vrot.lane.b32.xlu0 %v2421_v63, %s7296_s23 }
0x1932   :  { %v2428_v31 = vpop.permute.xlu1 %2427 }
0x1933   :  { %2433 = vst.msk [vmem:[#allocation3 + $0x88] sm:$0xff] %vm824_vm7, %v2428_v31  ;;  %v2426_v51 = vpop.permute.xlu0 %2425 }
0x1934   :  { %2432 = vst.msk [vmem:[#allocation3 + $0x80] sm:$0xff] %vm824_vm7, %v2426_v51  ;;  %6212 = vmatprep.mubr.msk.f32.mxu0 %vm824_vm7, %v2426_v51 }
0x1935   :  { %6213 = vmatmul.mubr.msk.f32.vlgmr.msra.gmra.mrb[18].mxu0 %vm824_vm7, %v2428_v31 }
0x1936   :  { %6442 = vmatpush3.bf16.msra.mxu0 %v7499_v46 }
0x1937   :  { %6444 = vmatprep.subr.bf16.mxu0 %v7549_v48 }
0x193a   :  { %6446 = vmatpush3.bf16.msra.mxu0 %v7549_v48  ;;  %v3452_v16 = vld [vmem:[#allocation3 + $0x88] sm:$0xff] }
0x193b   :  { %v3451_v27 = vld [vmem:[#allocation3 + $0x80] sm:$0xff]  ;;  %6448 = vmatprep.subr.bf16.mxu0 %v7499_v46 }
0x193c   :  { %6313 = vmatprep.mubr.msk.f32.mxu1 %vm824_vm7, %v3451_v27 }
0x193d   :  { %6314 = vmatmul.mubr.msk.f32.gmra.mrb[44].mxu1 %vm824_vm7, %v3452_v16 }
0x1a08   :  { %v6214_v8 = vpop.f32.mrb[18].mxu0 }
0x1a09   :  { %v2517_v52 = vadd.f32 %v6214_v8, %v1051_v12  ;;  %v2507_v34 = vpop.f32.mrb[19].mxu0 }
0x1a0a   :  { %v2516_v59 = vadd.f32 %v2507_v34, %v1046_v11 }
0x1a0b   :  { %6809 = vtanh.f32 %v2517_v52  ;;  %v2519_v40 = vsub.f32 0.0, %v2517_v52 }
0x1a0c   :  { %6811 = vtanh.f32 %v2516_v59  ;;  %v2518_v41 = vsub.f32 0.0, %v2516_v59 }
0x1a0d   :  { %v2522_v43 = vmul.f32 1.442695, %v2519_v40  ;;  %v1061_v40 = vadd.f32 %v8475_v4, %v8173_v62 }
0x1a0e   :  { %v2520_v21 = vmul.f32 1.442695, %v2518_v41  ;;  %v1056_v41 = vadd.f32 %v8475_v4, %v8175_v60 }
0x1a0f   :  { %6813 = vpow2.f32 %v2522_v43 }
0x1a10   :  { %v8481_v38 = vpop.f32.mrb[44].mxu1  ;;  %6815 = vpow2.f32 %v2520_v21 }
0x1a11   :  { %v8483_v49 = vpop.f32.mrb[45].mxu1 }
0x1a15   :  { %v6810_v29 = vpop.eup %6809 }
0x1a16   :  { %v6812_v7 = vpop.eup %6811  ;;  %2538 = vrot.lane.b32.xlu1 %v6810_v29, %s7295_s22 }
0x1a17   :  { %2536 = vrot.lane.b32.xlu0 %v6812_v7, %s7295_s22 }
0x1a19   :  { %v6814_v2 = vpop.eup %6813 }
0x1a1a   :  { %v6816_v50 = vpop.eup %6815  ;;  %v2525_v35 = vadd.f32 1.0, %v6814_v2 }
0x1a1b   :  { %v2524_v42 = vadd.f32 1.0, %v6816_v50 }
0x1a1c   :  { %6817 = vrcp.f32 %v2525_v35 }
0x1a1d   :  { %6819 = vrcp.f32 %v2524_v42 }
0x1a26   :  { %v6818_v10 = vpop.eup %6817 }
0x1a27   :  { %v6820_v28 = vpop.eup %6819  ;;  %v2533_v24 = vmul.f32 %v6818_v10, %v8452_v0 }
0x1a28   :  { %v2532_v31 = vmul.f32 %v6820_v28, %v8454_v19 }
0x1a88   :  { %v2539_v20 = vpop.permute.xlu1 %2538 }
0x1a89   :  { %v2543_v17 = vmul.f32 %v6818_v10, %v2539_v20  ;;  %v2537_v18 = vpop.permute.xlu0 %2536 }
0x1a8a   :  { %v2542_v61 = vmul.f32 %v6820_v28, %v2537_v18 }
0x1a8b   :  { %2548 = vrot.lane.b32.xlu1 %v2543_v17, %s7296_s23 }
0x1a8c   :  { %2546 = vrot.lane.b32.xlu0 %v2542_v61, %s7296_s23 }
0x1afd   :  { %v2549_v63 = vpop.permute.xlu1 %2548 }
0x1afe   :  { %v8491_v51 = vadd.f32 %v2549_v63, %v2533_v24  ;;  %v2547_v27 = vpop.permute.xlu0 %2546 }
0x1aff   :  { %v8493_v16 = vadd.f32 %v2547_v27, %v2532_v31 }
0x1b00   :  { %6821 = vtanh.f32 %v8491_v51 }
0x1b01   :  { %6823 = vtanh.f32 %v8493_v16 }
0x1b0a   :  { %v6822_v12 = vpop.eup %6821 }
0x1b0b   :  { %v6824_v11 = vpop.eup %6823  ;;  %2560 = vrot.lane.b32.xlu1 %v6822_v12, %s7295_s22 }
0x1b0c   :  { %2558 = vrot.lane.b32.xlu0 %v6824_v11, %s7295_s22 }
0x1b7d   :  { %v2561_v8 = vpop.permute.xlu1 %2560 }
0x1b7e   :  { %v2565_v0 = vmul.f32 %v6818_v10, %v2561_v8  ;;  %v2559_v52 = vpop.permute.xlu0 %2558 }
0x1b7f   :  { %v2564_v34 = vmul.f32 %v6820_v28, %v2559_v52 }
0x1b80   :  { %2570 = vrot.lane.b32.xlu1 %v2565_v0, %s7296_s23 }
0x1b81   :  { %2568 = vrot.lane.b32.xlu0 %v2564_v34, %s7296_s23 }
0x1bf2   :  { %v2571_v19 = vpop.permute.xlu1 %2570 }
0x1bf3   :  { %2576 = vst.msk [vmem:[#allocation3 + $0x98] sm:$0xff] %vm824_vm7, %v2571_v19  ;;  %v2569_v59 = vpop.permute.xlu0 %2568 }
0x1bf4   :  { %2575 = vst.msk [vmem:[#allocation3 + $0x90] sm:$0xff] %vm824_vm7, %v2569_v59  ;;  %6223 = vmatprep.mubr.msk.f32.mxu0 %vm824_vm7, %v2569_v59 }
0x1bf5   :  { %6224 = vmatmul.mubr.msk.f32.vlgmr.msra.gmra.mrb[20].mxu0 %vm824_vm7, %v2571_v19 }
0x1bf6   :  { %6450 = vmatpush3.bf16.msra.mxu0 %v7499_v46 }
0x1bf7   :  { %6452 = vmatprep.subr.bf16.mxu0 %v7549_v48 }
0x1bfa   :  { %6454 = vmatpush3.bf16.msra.mxu0 %v7549_v48  ;;  %v3454_v7 = vld [vmem:[#allocation3 + $0x98] sm:$0xff] }
0x1bfb   :  { %v3453_v29 = vld [vmem:[#allocation3 + $0x90] sm:$0xff]  ;;  %6456 = vmatprep.subr.bf16.mxu0 %v7499_v46 }
0x1bfc   :  { %6316 = vmatprep.mubr.msk.f32.mxu1 %vm824_vm7, %v3453_v29 }
0x1bfd   :  { %6317 = vmatmul.mubr.msk.f32.gmra.mrb[46].mxu1 %vm824_vm7, %v3454_v7 }
0x1cc8   :  { %v6225_v43 = vpop.f32.mrb[20].mxu0 }
0x1cc9   :  { %v2660_v21 = vadd.f32 %v6225_v43, %v1061_v40  ;;  %v2650_v2 = vpop.f32.mrb[21].mxu0 }
0x1cca   :  { %v2659_v50 = vadd.f32 %v2650_v2, %v1056_v41 }
0x1ccb   :  { %6825 = vtanh.f32 %v2660_v21  ;;  %v2662_v62 = vsub.f32 0.0, %v2660_v21 }
0x1ccc   :  { %6827 = vtanh.f32 %v2659_v50  ;;  %v2661_v28 = vsub.f32 0.0, %v2659_v50 }
0x1ccd   :  { %v2665_v17 = vmul.f32 1.442695, %v2662_v62  ;;  %v1071_v62 = vadd.f32 %v8475_v4, %v8177_v45 }
0x1cce   :  { %v2663_v60 = vmul.f32 1.442695, %v2661_v28  ;;  %v1066_v28 = vadd.f32 %v8475_v4, %v8179_v22 }
0x1ccf   :  { %6829 = vpow2.f32 %v2665_v17 }
0x1cd0   :  { %v8515_v35 = vpop.f32.mrb[46].mxu1  ;;  %6831 = vpow2.f32 %v2663_v60 }
0x1cd1   :  { %v8517_v42 = vpop.f32.mrb[47].mxu1 }
0x1cd5   :  { %v6826_v10 = vpop.eup %6825 }
0x1cd6   :  { %v6828_v20 = vpop.eup %6827  ;;  %2681 = vrot.lane.b32.xlu1 %v6826_v10, %s7295_s22 }
0x1cd7   :  { %2679 = vrot.lane.b32.xlu0 %v6828_v20, %s7295_s22 }
0x1cd9   :  { %v6830_v18 = vpop.eup %6829 }
0x1cda   :  { %v6832_v61 = vpop.eup %6831  ;;  %v2668_v24 = vadd.f32 1.0, %v6830_v18 }
0x1cdb   :  { %v2667_v63 = vadd.f32 1.0, %v6832_v61 }
0x1cdc   :  { %6833 = vrcp.f32 %v2668_v24 }
0x1cdd   :  { %6835 = vrcp.f32 %v2667_v63 }
0x1ce6   :  { %v6834_v31 = vpop.eup %6833 }
0x1ce7   :  { %v6836_v12 = vpop.eup %6835  ;;  %v2676_v52 = vmul.f32 %v6834_v31, %v8491_v51 }
0x1ce8   :  { %v2675_v19 = vmul.f32 %v6836_v12, %v8493_v16 }
0x1d48   :  { %v2682_v27 = vpop.permute.xlu1 %2681 }
0x1d49   :  { %v2686_v11 = vmul.f32 %v6834_v31, %v2682_v27  ;;  %v2680_v8 = vpop.permute.xlu0 %2679 }
0x1d4a   :  { %v2685_v0 = vmul.f32 %v6836_v12, %v2680_v8 }
0x1d4b   :  { %2691 = vrot.lane.b32.xlu1 %v2686_v11, %s7296_s23 }
0x1d4c   :  { %2689 = vrot.lane.b32.xlu0 %v2685_v0, %s7296_s23 }
0x1dbd   :  { %v2692_v34 = vpop.permute.xlu1 %2691 }
0x1dbe   :  { %v8525_v59 = vadd.f32 %v2692_v34, %v2676_v52  ;;  %v2690_v29 = vpop.permute.xlu0 %2689 }
0x1dbf   :  { %v8527_v7 = vadd.f32 %v2690_v29, %v2675_v19 }
0x1dc0   :  { %6837 = vtanh.f32 %v8525_v59 }
0x1dc1   :  { %6839 = vtanh.f32 %v8527_v7 }
0x1dca   :  { %v6838_v40 = vpop.eup %6837 }
0x1dcb   :  { %v6840_v41 = vpop.eup %6839  ;;  %2703 = vrot.lane.b32.xlu1 %v6838_v40, %s7295_s22 }
0x1dcc   :  { %2701 = vrot.lane.b32.xlu0 %v6840_v41, %s7295_s22 }
0x1e3d   :  { %v2704_v43 = vpop.permute.xlu1 %2703 }
0x1e3e   :  { %v2708_v51 = vmul.f32 %v6834_v31, %v2704_v43  ;;  %v2702_v21 = vpop.permute.xlu0 %2701 }
0x1e3f   :  { %v2707_v2 = vmul.f32 %v6836_v12, %v2702_v21 }
0x1e40   :  { %2713 = vrot.lane.b32.xlu1 %v2708_v51, %s7296_s23 }
0x1e41   :  { %2711 = vrot.lane.b32.xlu0 %v2707_v2, %s7296_s23 }
0x1eb2   :  { %v2714_v16 = vpop.permute.xlu1 %2713 }
0x1eb3   :  { %2719 = vst.msk [vmem:[#allocation3 + $0xa8] sm:$0xff] %vm824_vm7, %v2714_v16  ;;  %v2712_v50 = vpop.permute.xlu0 %2711 }
0x1eb4   :  { %2718 = vst.msk [vmem:[#allocation3 + $0xa0] sm:$0xff] %vm824_vm7, %v2712_v50  ;;  %6234 = vmatprep.mubr.msk.f32.mxu0 %vm824_vm7, %v2712_v50 }
0x1eb5   :  { %6235 = vmatmul.mubr.msk.f32.vlgmr.msra.gmra.mrb[22].mxu0 %vm824_vm7, %v2714_v16 }
0x1eb6   :  { %6458 = vmatpush3.bf16.msra.mxu0 %v7499_v46 }
0x1eb7   :  { %6460 = vmatprep.subr.bf16.mxu0 %v7549_v48 }
0x1eba   :  { %6462 = vmatpush3.bf16.msra.mxu0 %v7549_v48  ;;  %v3456_v20 = vld [vmem:[#allocation3 + $0xa8] sm:$0xff] }
0x1ebb   :  { %v3455_v10 = vld [vmem:[#allocation3 + $0xa0] sm:$0xff]  ;;  %6464 = vmatprep.subr.bf16.mxu0 %v7499_v46 }
0x1ebc   :  { %6319 = vmatprep.mubr.msk.f32.mxu1 %vm824_vm7, %v3455_v10 }
0x1ebd   :  { %6320 = vmatmul.mubr.msk.f32.gmra.mrb[48].mxu1 %vm824_vm7, %v3456_v20 }
0x1f88   :  { %v6236_v17 = vpop.f32.mrb[22].mxu0 }
0x1f89   :  { %v2803_v60 = vadd.f32 %v6236_v17, %v1071_v62  ;;  %v2793_v18 = vpop.f32.mrb[23].mxu0 }
0x1f8a   :  { %v2802_v61 = vadd.f32 %v2793_v18, %v1066_v28 }
0x1f8b   :  { %6841 = vtanh.f32 %v2803_v60  ;;  %v2805_v45 = vsub.f32 0.0, %v2803_v60 }
0x1f8c   :  { %6843 = vtanh.f32 %v2802_v61  ;;  %v2804_v12 = vsub.f32 0.0, %v2802_v61 }
0x1f8d   :  { %v2808_v11 = vmul.f32 1.442695, %v2805_v45  ;;  %v1081_v45 = vadd.f32 %v8475_v4, %v8181_v25 }
0x1f8e   :  { %v2806_v22 = vmul.f32 1.442695, %v2804_v12  ;;  %v1076_v12 = vadd.f32 %v8475_v4, %v8183_v55 }
0x1f8f   :  { %6845 = vpow2.f32 %v2808_v11 }
0x1f90   :  { %v8549_v24 = vpop.f32.mrb[48].mxu1  ;;  %6847 = vpow2.f32 %v2806_v22 }
0x1f91   :  { %v8551_v63 = vpop.f32.mrb[49].mxu1 }
0x1f95   :  { %v6842_v31 = vpop.eup %6841 }
0x1f96   :  { %v6844_v27 = vpop.eup %6843  ;;  %2824 = vrot.lane.b32.xlu1 %v6842_v31, %s7295_s22 }
0x1f97   :  { %2822 = vrot.lane.b32.xlu0 %v6844_v27, %s7295_s22 }
0x1f99   :  { %v6846_v8 = vpop.eup %6845 }
0x1f9a   :  { %v6848_v0 = vpop.eup %6847  ;;  %v2811_v52 = vadd.f32 1.0, %v6846_v8 }
0x1f9b   :  { %v2810_v34 = vadd.f32 1.0, %v6848_v0 }
0x1f9c   :  { %6849 = vrcp.f32 %v2811_v52 }
0x1f9d   :  { %6851 = vrcp.f32 %v2810_v34 }
0x1fa6   :  { %v6850_v19 = vpop.eup %6849 }
0x1fa7   :  { %v6852_v40 = vpop.eup %6851  ;;  %v2819_v21 = vmul.f32 %v6850_v19, %v8525_v59 }
0x1fa8   :  { %v2818_v16 = vmul.f32 %v6852_v40, %v8527_v7 }
0x2008   :  { %v2825_v29 = vpop.permute.xlu1 %2824 }
0x2009   :  { %v2829_v41 = vmul.f32 %v6850_v19, %v2825_v29  ;;  %v2823_v43 = vpop.permute.xlu0 %2822 }
0x200a   :  { %v2828_v51 = vmul.f32 %v6852_v40, %v2823_v43 }
0x200b   :  { %2834 = vrot.lane.b32.xlu1 %v2829_v41, %s7296_s23 }
0x200c   :  { %2832 = vrot.lane.b32.xlu0 %v2828_v51, %s7296_s23 }
0x207d   :  { %v2835_v2 = vpop.permute.xlu1 %2834 }
0x207e   :  { %v8559_v50 = vadd.f32 %v2835_v2, %v2819_v21  ;;  %v2833_v10 = vpop.permute.xlu0 %2832 }
0x207f   :  { %v8561_v20 = vadd.f32 %v2833_v10, %v2818_v16 }
0x2080   :  { %6853 = vtanh.f32 %v8559_v50 }
0x2081   :  { %6855 = vtanh.f32 %v8561_v20 }
0x208a   :  { %v6854_v62 = vpop.eup %6853 }
0x208b   :  { %v6856_v28 = vpop.eup %6855  ;;  %2846 = vrot.lane.b32.xlu1 %v6854_v62, %s7295_s22 }
0x208c   :  { %2844 = vrot.lane.b32.xlu0 %v6856_v28, %s7295_s22 }
0x20fd   :  { %v2847_v17 = vpop.permute.xlu1 %2846 }
0x20fe   :  { %v2851_v59 = vmul.f32 %v6850_v19, %v2847_v17  ;;  %v2845_v60 = vpop.permute.xlu0 %2844 }
0x20ff   :  { %v2850_v18 = vmul.f32 %v6852_v40, %v2845_v60 }
0x2100   :  { %2856 = vrot.lane.b32.xlu1 %v2851_v59, %s7296_s23 }
0x2101   :  { %2854 = vrot.lane.b32.xlu0 %v2850_v18, %s7296_s23 }
0x2172   :  { %v2857_v7 = vpop.permute.xlu1 %2856 }
0x2173   :  { %2862 = vst.msk [vmem:[#allocation3 + $0xb8] sm:$0xff] %vm824_vm7, %v2857_v7  ;;  %v2855_v61 = vpop.permute.xlu0 %2854 }
0x2174   :  { %2861 = vst.msk [vmem:[#allocation3 + $0xb0] sm:$0xff] %vm824_vm7, %v2855_v61  ;;  %6245 = vmatprep.mubr.msk.f32.mxu0 %vm824_vm7, %v2855_v61 }
0x2175   :  { %6246 = vmatmul.mubr.msk.f32.vlgmr.msra.gmra.mrb[24].mxu0 %vm824_vm7, %v2857_v7 }
0x2176   :  { %6466 = vmatpush3.bf16.msra.mxu0 %v7499_v46 }
0x2177   :  { %6468 = vmatprep.subr.bf16.mxu0 %v7549_v48 }
0x217a   :  { %6470 = vmatpush3.bf16.msra.mxu0 %v7549_v48  ;;  %v3458_v27 = vld [vmem:[#allocation3 + $0xb8] sm:$0xff] }
0x217b   :  { %v3457_v31 = vld [vmem:[#allocation3 + $0xb0] sm:$0xff]  ;;  %6472 = vmatprep.subr.bf16.mxu0 %v7499_v46 }
0x217c   :  { %6322 = vmatprep.mubr.msk.f32.mxu1 %vm824_vm7, %v3457_v31 }
0x217d   :  { %6323 = vmatmul.mubr.msk.f32.gmra.mrb[50].mxu1 %vm824_vm7, %v3458_v27 }
0x2248   :  { %v6247_v11 = vpop.f32.mrb[24].mxu0 }
0x2249   :  { %v2946_v22 = vadd.f32 %v6247_v11, %v1081_v45  ;;  %v2936_v8 = vpop.f32.mrb[25].mxu0 }
0x224a   :  { %v2945_v0 = vadd.f32 %v2936_v8, %v1076_v12 }
0x224b   :  { %6857 = vtanh.f32 %v2946_v22  ;;  %v2948_v25 = vsub.f32 0.0, %v2946_v22 }
0x224c   :  { %6859 = vtanh.f32 %v2945_v0  ;;  %v2947_v40 = vsub.f32 0.0, %v2945_v0 }
0x224d   :  { %v2951_v41 = vmul.f32 1.442695, %v2948_v25  ;;  %v1091_v25 = vadd.f32 %v8475_v4, %v8185_v57 }
0x224e   :  { %v2949_v55 = vmul.f32 1.442695, %v2947_v40  ;;  %v1086_v40 = vadd.f32 %v8475_v4, %v8187_v39 }
0x224f   :  { %6861 = vpow2.f32 %v2951_v41 }
0x2250   :  { %v8583_v52 = vpop.f32.mrb[50].mxu1  ;;  %6863 = vpow2.f32 %v2949_v55 }
0x2251   :  { %v8585_v34 = vpop.f32.mrb[51].mxu1 }
0x2255   :  { %v6858_v19 = vpop.eup %6857 }
0x2256   :  { %v6860_v29 = vpop.eup %6859  ;;  %2967 = vrot.lane.b32.xlu1 %v6858_v19, %s7295_s22 }
0x2257   :  { %2965 = vrot.lane.b32.xlu0 %v6860_v29, %s7295_s22 }
0x2259   :  { %v6862_v43 = vpop.eup %6861 }
0x225a   :  { %v6864_v51 = vpop.eup %6863  ;;  %v2954_v21 = vadd.f32 1.0, %v6862_v43 }
0x225b   :  { %v2953_v2 = vadd.f32 1.0, %v6864_v51 }
0x225c   :  { %6865 = vrcp.f32 %v2954_v21 }
0x225d   :  { %6867 = vrcp.f32 %v2953_v2 }
0x2266   :  { %v6866_v16 = vpop.eup %6865 }
0x2267   :  { %v6868_v62 = vpop.eup %6867  ;;  %v2962_v60 = vmul.f32 %v6866_v16, %v8559_v50 }
0x2268   :  { %v2961_v7 = vmul.f32 %v6868_v62, %v8561_v20 }
0x22c8   :  { %v2968_v10 = vpop.permute.xlu1 %2967 }
0x22c9   :  { %v2972_v28 = vmul.f32 %v6866_v16, %v2968_v10  ;;  %v2966_v17 = vpop.permute.xlu0 %2965 }
0x22ca   :  { %v2971_v59 = vmul.f32 %v6868_v62, %v2966_v17 }
0x22cb   :  { %2977 = vrot.lane.b32.xlu1 %v2972_v28, %s7296_s23 }
0x22cc   :  { %2975 = vrot.lane.b32.xlu0 %v2971_v59, %s7296_s23 }
0x233d   :  { %v2978_v18 = vpop.permute.xlu1 %2977 }
0x233e   :  { %v8593_v61 = vadd.f32 %v2978_v18, %v2962_v60  ;;  %v2976_v31 = vpop.permute.xlu0 %2975 }
0x233f   :  { %v8595_v27 = vadd.f32 %v2976_v31, %v2961_v7 }
0x2340   :  { %6869 = vtanh.f32 %v8593_v61 }
0x2341   :  { %6871 = vtanh.f32 %v8595_v27 }
0x234a   :  { %v6870_v45 = vpop.eup %6869 }
0x234b   :  { %v6872_v12 = vpop.eup %6871  ;;  %2989 = vrot.lane.b32.xlu1 %v6870_v45, %s7295_s22 }
0x234c   :  { %2987 = vrot.lane.b32.xlu0 %v6872_v12, %s7295_s22 }
0x23bd   :  { %v2990_v11 = vpop.permute.xlu1 %2989 }
0x23be   :  { %v2994_v50 = vmul.f32 %v6866_v16, %v2990_v11  ;;  %v2988_v22 = vpop.permute.xlu0 %2987 }
0x23bf   :  { %v2993_v8 = vmul.f32 %v6868_v62, %v2988_v22 }
0x23c0   :  { %2999 = vrot.lane.b32.xlu1 %v2994_v50, %s7296_s23 }
0x23c1   :  { %2997 = vrot.lane.b32.xlu0 %v2993_v8, %s7296_s23 }
0x2432   :  { %v3000_v20 = vpop.permute.xlu1 %2999 }
0x2433   :  { %3005 = vst.msk [vmem:[#allocation3 + $0xc8] sm:$0xff] %vm824_vm7, %v3000_v20  ;;  %v2998_v0 = vpop.permute.xlu0 %2997 }
0x2434   :  { %3004 = vst.msk [vmem:[#allocation3 + $0xc0] sm:$0xff] %vm824_vm7, %v2998_v0  ;;  %6256 = vmatprep.mubr.msk.f32.mxu0 %vm824_vm7, %v2998_v0 }
0x2435   :  { %6257 = vmatmul.mubr.msk.f32.vlgmr.msra.gmra.mrb[26].mxu0 %vm824_vm7, %v3000_v20 }
0x2436   :  { %6474 = vmatpush3.bf16.msra.mxu0 %v7499_v46 }
0x2437   :  { %6476 = vmatprep.subr.bf16.mxu0 %v7549_v48 }
0x243a   :  { %6478 = vmatpush3.bf16.msra.mxu0 %v7549_v48  ;;  %v3460_v29 = vld [vmem:[#allocation3 + $0xc8] sm:$0xff] }
0x243b   :  { %v3459_v19 = vld [vmem:[#allocation3 + $0xc0] sm:$0xff]  ;;  %6480 = vmatprep.subr.bf16.mxu0 %v7499_v46 }
0x243c   :  { %6325 = vmatprep.mubr.msk.f32.mxu1 %vm824_vm7, %v3459_v19 }
0x243d   :  { %6326 = vmatmul.mubr.msk.f32.gmra.mrb[52].mxu1 %vm824_vm7, %v3460_v29 }
0x2508   :  { %v6258_v41 = vpop.f32.mrb[26].mxu0 }
0x2509   :  { %v3089_v55 = vadd.f32 %v6258_v41, %v1091_v25  ;;  %v3079_v43 = vpop.f32.mrb[27].mxu0 }
0x250a   :  { %v3088_v51 = vadd.f32 %v3079_v43, %v1086_v40 }
0x250b   :  { %6873 = vtanh.f32 %v3089_v55  ;;  %v3091_v57 = vsub.f32 0.0, %v3089_v55 }
0x250c   :  { %6875 = vtanh.f32 %v3088_v51  ;;  %v3090_v62 = vsub.f32 0.0, %v3088_v51 }
0x250d   :  { %v3094_v28 = vmul.f32 1.442695, %v3091_v57  ;;  %v1101_v57 = vadd.f32 %v8475_v4, %v8189_v56 }
0x250e   :  { %v3092_v39 = vmul.f32 1.442695, %v3090_v62  ;;  %v1096_v62 = vadd.f32 %v8475_v4, %v8191_v14 }
0x250f   :  { %6877 = vpow2.f32 %v3094_v28 }
0x2510   :  { %v8617_v21 = vpop.f32.mrb[52].mxu1  ;;  %6879 = vpow2.f32 %v3092_v39 }
0x2511   :  { %v8619_v2 = vpop.f32.mrb[53].mxu1 }
0x2515   :  { %v6874_v16 = vpop.eup %6873 }
0x2516   :  { %v6876_v10 = vpop.eup %6875  ;;  %3110 = vrot.lane.b32.xlu1 %v6874_v16, %s7295_s22 }
0x2517   :  { %3108 = vrot.lane.b32.xlu0 %v6876_v10, %s7295_s22 }
0x2519   :  { %v6878_v17 = vpop.eup %6877 }
0x251a   :  { %v6880_v59 = vpop.eup %6879  ;;  %v3097_v60 = vadd.f32 1.0, %v6878_v17 }
0x251b   :  { %v3096_v18 = vadd.f32 1.0, %v6880_v59 }
0x251c   :  { %6881 = vrcp.f32 %v3097_v60 }
0x251d   :  { %6883 = vrcp.f32 %v3096_v18 }
0x2526   :  { %v6882_v7 = vpop.eup %6881 }
0x2527   :  { %v6884_v45 = vpop.eup %6883  ;;  %v3105_v22 = vmul.f32 %v6882_v7, %v8593_v61 }
0x2528   :  { %v3104_v20 = vmul.f32 %v6884_v45, %v8595_v27 }
0x2588   :  { %v3111_v31 = vpop.permute.xlu1 %3110 }
0x2589   :  { %v3115_v12 = vmul.f32 %v6882_v7, %v3111_v31  ;;  %v3109_v11 = vpop.permute.xlu0 %3108 }
0x258a   :  { %v3114_v50 = vmul.f32 %v6884_v45, %v3109_v11 }
0x258b   :  { %3120 = vrot.lane.b32.xlu1 %v3115_v12, %s7296_s23 }
0x258c   :  { %3118 = vrot.lane.b32.xlu0 %v3114_v50, %s7296_s23 }
0x25fd   :  { %v3121_v8 = vpop.permute.xlu1 %3120 }
0x25fe   :  { %v3125_v0 = vadd.f32 %v3121_v8, %v3105_v22  ;;  %v3119_v19 = vpop.permute.xlu0 %3118 }
0x25ff   :  { %v3124_v29 = vadd.f32 %v3119_v19, %v3104_v20 }
0x2600   :  { %6885 = vtanh.f32 %v3125_v0 }
0x2601   :  { %6887 = vtanh.f32 %v3124_v29 }
0x260a   :  { %v6886_v25 = vpop.eup %6885 }
0x260b   :  { %v6888_v40 = vpop.eup %6887  ;;  %3132 = vrot.lane.b32.xlu1 %v6886_v25, %s7295_s22 }
0x260c   :  { %3130 = vrot.lane.b32.xlu0 %v6888_v40, %s7295_s22 }
0x267d   :  { %v3133_v41 = vpop.permute.xlu1 %3132 }
0x267e   :  { %v3137_v55 = vmul.f32 %v6882_v7, %v3133_v41  ;;  %v3131_v43 = vpop.permute.xlu0 %3130 }
0x267f   :  { %v3136_v51 = vmul.f32 %v6884_v45, %v3131_v43 }
0x2680   :  { %3142 = vrot.lane.b32.xlu1 %v3137_v55, %s7296_s23 }
0x2681   :  { %3140 = vrot.lane.b32.xlu0 %v3136_v51, %s7296_s23 }
0x26f2   :  { %v3143_v61 = vpop.permute.xlu1 %3142 }
0x26f3   :  { %3148 = vst.msk [vmem:[#allocation3 + $0xd8] sm:$0xff] %vm824_vm7, %v3143_v61  ;;  %v3141_v27 = vpop.permute.xlu0 %3140 }
0x26f4   :  { %3147 = vst.msk [vmem:[#allocation3 + $0xd0] sm:$0xff] %vm824_vm7, %v3141_v27  ;;  %6267 = vmatprep.mubr.msk.f32.mxu0 %vm824_vm7, %v3141_v27 }
0x26f5   :  { %6268 = vmatmul.mubr.msk.f32.vlgmr.msra.gmra.mrb[28].mxu0 %vm824_vm7, %v3143_v61 }
0x26f6   :  { %6482 = vmatpush3.bf16.msra.mxu0 %v7499_v46 }
0x26f7   :  { %6484 = vmatprep.subr.bf16.mxu0 %v7549_v48 }
0x26fa   :  { %6486 = vmatpush3.bf16.msra.mxu0 %v7549_v48  ;;  %v3462_v10 = vld [vmem:[#allocation3 + $0xd8] sm:$0xff] }
0x26fb   :  { %v3461_v16 = vld [vmem:[#allocation3 + $0xd0] sm:$0xff] }
0x26fc   :  { %6328 = vmatprep.mubr.msk.f32.mxu1 %vm824_vm7, %v3461_v16 }
0x26fd   :  { %6329 = vmatmul.mubr.msk.f32.gmra.mrb[54].mxu1 %vm824_vm7, %v3462_v10 }
0x27c8   :  { %v6269_v28 = vpop.f32.mrb[28].mxu0 }
0x27c9   :  { %v3232_v39 = vadd.f32 %v6269_v28, %v1101_v57  ;;  %v3222_v17 = vpop.f32.mrb[29].mxu0 }
0x27ca   :  { %v3231_v46 = vadd.f32 %v3222_v17, %v1096_v62 }
0x27cb   :  { %6889 = vtanh.f32 %v3232_v39  ;;  %v3234_v56 = vsub.f32 0.0, %v3232_v39 }
0x27cc   :  { %6891 = vtanh.f32 %v3231_v46  ;;  %v3233_v7 = vsub.f32 0.0, %v3231_v46 }
0x27cd   :  { %v3237_v31 = vmul.f32 1.442695, %v3234_v56 }
0x27ce   :  { %v3235_v14 = vmul.f32 1.442695, %v3233_v7 }
0x27cf   :  { %6893 = vpow2.f32 %v3237_v31 }
0x27d0   :  { %v8644_v59 = vpop.f32.mrb[54].mxu1  ;;  %6895 = vpow2.f32 %v3235_v14 }
0x27d1   :  { %v8646_v48 = vpop.f32.mrb[55].mxu1 }
0x27d5   :  { %v6890_v60 = vpop.eup %6889 }
0x27d6   :  { %v6892_v18 = vpop.eup %6891  ;;  %3253 = vrot.lane.b32.xlu1 %v6890_v60, %s7295_s22  ;;  %v1111_v60 = vadd.f32 %v8475_v4, %v8193_v23 }
0x27d7   :  { %3251 = vrot.lane.b32.xlu0 %v6892_v18, %s7295_s22  ;;  %v1106_v18 = vadd.f32 %v8475_v4, %v8195_v15 }
0x27d9   :  { %v6894_v45 = vpop.eup %6893 }
0x27da   :  { %v6896_v12 = vpop.eup %6895  ;;  %v3240_v11 = vadd.f32 1.0, %v6894_v45 }
0x27db   :  { %v3239_v50 = vadd.f32 1.0, %v6896_v12 }
0x27dc   :  { %6897 = vrcp.f32 %v3240_v11 }
0x27dd   :  { %6899 = vrcp.f32 %v3239_v50 }
0x27e6   :  { %v6898_v22 = vpop.eup %6897 }
0x27e7   :  { %v6900_v20 = vpop.eup %6899  ;;  %v3248_v41 = vmul.f32 %v6898_v22, %v3125_v0 }
0x27e8   :  { %v3247_v43 = vmul.f32 %v6900_v20, %v3124_v29 }
0x2848   :  { %v3254_v8 = vpop.permute.xlu1 %3253 }
0x2849   :  { %v3258_v19 = vmul.f32 %v6898_v22, %v3254_v8  ;;  %v3252_v25 = vpop.permute.xlu0 %3251 }
0x284a   :  { %v3257_v40 = vmul.f32 %v6900_v20, %v3252_v25 }
0x284b   :  { %3263 = vrot.lane.b32.xlu1 %v3258_v19, %s7296_s23 }
0x284c   :  { %3261 = vrot.lane.b32.xlu0 %v3257_v40, %s7296_s23 }
0x28bd   :  { %v3264_v55 = vpop.permute.xlu1 %3263 }
0x28be   :  { %v3268_v51 = vadd.f32 %v3264_v55, %v3248_v41  ;;  %v3262_v61 = vpop.permute.xlu0 %3261 }
0x28bf   :  { %v3267_v27 = vadd.f32 %v3262_v61, %v3247_v43 }
0x28c0   :  { %6901 = vtanh.f32 %v3268_v51 }
0x28c1   :  { %6903 = vtanh.f32 %v3267_v27 }
0x28ca   :  { %v6902_v16 = vpop.eup %6901 }
0x28cb   :  { %v6904_v10 = vpop.eup %6903  ;;  %3275 = vrot.lane.b32.xlu1 %v6902_v16, %s7295_s22 }
0x28cc   :  { %3273 = vrot.lane.b32.xlu0 %v6904_v10, %s7295_s22 }
0x293d   :  { %v3276_v57 = vpop.permute.xlu1 %3275 }
0x293e   :  { %v3280_v62 = vmul.f32 %v6898_v22, %v3276_v57  ;;  %v3274_v28 = vpop.permute.xlu0 %3273 }
0x293f   :  { %v3279_v39 = vmul.f32 %v6900_v20, %v3274_v28 }
0x2940   :  { %3285 = vrot.lane.b32.xlu1 %v3280_v62, %s7296_s23 }
0x2941   :  { %3283 = vrot.lane.b32.xlu0 %v3279_v39, %s7296_s23 }
0x29b2   :  { %v3286_v0 = vpop.permute.xlu1 %3285 }
0x29b3   :  { %3291 = vst.msk [vmem:[#allocation3 + $0xe8] sm:$0xff] %vm824_vm7, %v3286_v0  ;;  %v3284_v29 = vpop.permute.xlu0 %3283 }
0x29b4   :  { %3290 = vst.msk [vmem:[#allocation3 + $0xe0] sm:$0xff] %vm824_vm7, %v3284_v29  ;;  %6278 = vmatprep.mubr.msk.f32.mxu0 %vm824_vm7, %v3284_v29 }
0x29b5   :  { %6279 = vmatmul.mubr.msk.f32.vlgmr.msra.gmra.mrb[30].mxu0 %vm824_vm7, %v3286_v0 }
0x29ba   :  { %v3464_v46 = vld [vmem:[#allocation3 + $0xe8] sm:$0xff] }
0x29bb   :  { %v3463_v17 = vld [vmem:[#allocation3 + $0xe0] sm:$0xff] }
0x29bc   :  { %6331 = vmatprep.mubr.msk.f32.mxu1 %vm824_vm7, %v3463_v17 }
0x29bd   :  { %6332 = vmatmul.mubr.msk.f32.gmra.mrb[56].mxu1 %vm824_vm7, %v3464_v46 }
0x2a88   :  { %v6280_v56 = vpop.f32.mrb[30].mxu0 }
0x2a89   :  { %v3375_v7 = vadd.f32 %v6280_v56, %v1111_v60  ;;  %v3365_v31 = vpop.f32.mrb[31].mxu0 }
0x2a8a   :  { %v3374_v14 = vadd.f32 %v3365_v31, %v1106_v18 }
0x2a8b   :  { %6905 = vtanh.f32 %v3375_v7  ;;  %v3377_v23 = vsub.f32 0.0, %v3375_v7 }
0x2a8c   :  { %6907 = vtanh.f32 %v3374_v14  ;;  %v3376_v22 = vsub.f32 0.0, %v3374_v14 }
0x2a8d   :  { %v3380_v8 = vmul.f32 1.442695, %v3377_v23 }
0x2a8e   :  { %v3378_v15 = vmul.f32 1.442695, %v3376_v22 }
0x2a8f   :  { %6909 = vpow2.f32 %v3380_v8 }
0x2a90   :  { %v8666_v45 = vpop.f32.mrb[56].mxu1  ;;  %6911 = vpow2.f32 %v3378_v15 }
0x2a91   :  { %v8668_v12 = vpop.f32.mrb[57].mxu1 }
0x2a95   :  { %v6906_v11 = vpop.eup %6905 }
0x2a96   :  { %v6908_v50 = vpop.eup %6907  ;;  %3396 = vrot.lane.b32.xlu1 %v6906_v11, %s7295_s22 }
0x2a97   :  { %3394 = vrot.lane.b32.xlu0 %v6908_v50, %s7295_s22 }
0x2a99   :  { %v6910_v4 = vpop.eup %6909 }
0x2a9a   :  { %v6912_v20 = vpop.eup %6911  ;;  %v3383_v19 = vadd.f32 1.0, %v6910_v4 }
0x2a9b   :  { %v3382_v25 = vadd.f32 1.0, %v6912_v20 }
0x2a9c   :  { %6913 = vrcp.f32 %v3383_v19 }
0x2a9d   :  { %6915 = vrcp.f32 %v3382_v25 }
0x2aa6   :  { %v6914_v40 = vpop.eup %6913 }
0x2aa7   :  { %v6916_v55 = vpop.eup %6915  ;;  %v3391_v10 = vmul.f32 %v6914_v40, %v3268_v51  ;;  %v8681_v51 = vld [vmem:[%s9489_s6] ss:$0 sm:$0xff] }
0x2aa8   :  { %v3390_v62 = vmul.f32 %v6916_v55, %v3267_v27  ;;  %v3641_v27 = vadd.f32 %v8681_v51, %v8206_v54  ;;  %v3646_v7 = vadd.f32 %v8204_v47, %v8681_v51  ;;  %v3651_v31 = vadd.f32 %v8681_v51, %v8240_v37  ;;  %v8700_v37 = vld [vmem:[%s9490_s7] ss:$0 sm:$0xff]  ;;  %s7298_s7 = smov [#allocation13]  }
0x2aa9   :  { %v3656_v14 = vadd.f32 %v8238_v3, %v8681_v51  ;;  %v3661_v11 = vadd.f32 %v8681_v51, %v8274_v13  ;;  %v3666_v50 = vadd.f32 %v8272_v32, %v8681_v51  ;;  %v3671_v47 = vadd.f32 %v8681_v51, %v8308_v53  ;;  %s5586_s28 = sshll.u32 %s7298_s7, 4  ;;  %s5587_s28 = int_to_ptr.vmem [resolvable:$true] %s5586_s28 }
0x2aaa   :  { %v3676_v3 = vadd.f32 %v8306_v6, %v8681_v51  ;;  %v3681_v13 = vadd.f32 %v8681_v51, %v8342_v58  ;;  %v3686_v53 = vadd.f32 %v8340_v33, %v8681_v51  ;;  %v3691_v8 = vadd.f32 %v8681_v51, %v8376_v5  ;;  %s7257_s0 = scalar_lea.vmem %s5587_s28, 256  ;;  %p7262_p13 = scmp.lt.s32.totalorder %s5587_s28, %s5587_s28 }
0x2aab   :  { %v3696_v19 = vadd.f32 %v8374_v9, %v8681_v51  ;;  %v3701_v33 = vadd.f32 %v8681_v51, %v8410_v36  ;;  %v3706_v9 = vadd.f32 %v8408_v1, %v8681_v51  ;;  %v3711_v36 = vadd.f32 %v8681_v51, %v8444_v44  ;;  %p7258_p12 = scmp.ne.s32.totalorder %s5587_s28, %s7257_s0  ;;  %p7263_p0 = scmp.lt.s32.totalorder %s7257_s0, %s7257_s0 }
0x2aac   :  { %v3716_v1 = vadd.f32 %v8442_v26, %v8681_v51  ;;  %v3721_v44 = vadd.f32 %v8681_v51, %v8483_v49  ;;  %v3726_v26 = vadd.f32 %v8481_v38, %v8681_v51  ;;  %v3731_v49 = vadd.f32 %v8681_v51, %v8517_v42 }
0x2aad   :  { %v3736_v38 = vadd.f32 %v8515_v35, %v8681_v51  ;;  %v3741_v42 = vadd.f32 %v8681_v51, %v8551_v63  ;;  %v3746_v35 = vadd.f32 %v8549_v24, %v8681_v51  ;;  %v3751_v63 = vadd.f32 %v8681_v51, %v8585_v34  ;;  %p7264_p1 = por %p7263_p0, %p7262_p13 }
0x2aae   :  { %v3756_v24 = vadd.f32 %v8583_v52, %v8681_v51  ;;  %v3761_v34 = vadd.f32 %v8681_v51, %v8619_v2  ;;  %v3766_v52 = vadd.f32 %v8617_v21, %v8681_v51  ;;  %v3771_v2 = vadd.f32 %v8681_v51, %v8646_v48 }
0x2aaf   :  { %v3776_v21 = vadd.f32 %v8644_v59, %v8681_v51  ;;  %v3781_v48 = vadd.f32 %v8681_v51, %v8668_v12  ;;  %v3786_v59 = vadd.f32 %v8666_v45, %v8681_v51  ;;  %p7265_p2 = pnand %p7264_p1, %p7258_p12 }
0x2b08   :  { %v3397_v41 = vpop.permute.xlu1 %3396 }
0x2b09   :  { %v3401_v43 = vmul.f32 %v6914_v40, %v3397_v41  ;;  %v3395_v61 = vpop.permute.xlu0 %3394 }
0x2b0a   :  { %v3400_v16 = vmul.f32 %v6916_v55, %v3395_v61 }
0x2b0b   :  { %3406 = vrot.lane.b32.xlu1 %v3401_v43, %s7296_s23 }
0x2b0c   :  { %3404 = vrot.lane.b32.xlu0 %v3400_v16, %s7296_s23 }
0x2b7d   :  { %v3407_v57 = vpop.permute.xlu1 %3406 }
0x2b7e   :  { %v3411_v28 = vadd.f32 %v3407_v57, %v3391_v10  ;;  %v3405_v39 = vpop.permute.xlu0 %3404 }
0x2b7f   :  { %v3410_v0 = vadd.f32 %v3405_v39, %v3390_v62 }
0x2b80   :  { %6917 = vtanh.f32 %v3411_v28 }
0x2b81   :  { %6919 = vtanh.f32 %v3410_v0 }
0x2b82   :  { %6921 = vtanh.f32 %v3641_v27 }
0x2b83   :  { %6923 = vtanh.f32 %v3646_v7 }
0x2b84   :  { %6925 = vtanh.f32 %v3651_v31 }
0x2b85   :  { %6927 = vtanh.f32 %v3656_v14 }
0x2b86   :  { %6929 = vtanh.f32 %v3661_v11 }
0x2b87   :  { %6931 = vtanh.f32 %v3666_v50 }
0x2b88   :  { %6933 = vtanh.f32 %v3671_v47 }
0x2b89   :  { %6935 = vtanh.f32 %v3676_v3 }
0x2b8a   :  { %v6918_v29 = vpop.eup %6917  ;;  %6937 = vtanh.f32 %v3681_v13 }
0x2b8b   :  { %v6920_v17 = vpop.eup %6919  ;;  %3418 = vrot.lane.b32.xlu1 %v6918_v29, %s7295_s22  ;;  %6939 = vtanh.f32 %v3686_v53 }
0x2b8c   :  { %3416 = vrot.lane.b32.xlu0 %v6920_v17, %s7295_s22  ;;  %v6922_v54 = vpop.eup %6921  ;;  %6941 = vtanh.f32 %v3691_v8 }
0x2b8d   :  { %v6924_v23 = vpop.eup %6923  ;;  %v3838_v32 = vmul.f32 %v6922_v54, %v8700_v37  ;;  %6943 = vtanh.f32 %v3696_v19 }
0x2b8e   :  { %v6926_v22 = vpop.eup %6925  ;;  %v3839_v4 = vmul.f32 %v6924_v23, %v8700_v37  ;;  %6945 = vtanh.f32 %v3701_v33 }
0x2b8f   :  { %v6928_v15 = vpop.eup %6927  ;;  %v3871_v6 = vsel %vm3870_vm8, %v3838_v32, 0.0  ;;  %v3840_v58 = vmul.f32 %v6926_v22, %v8700_v37  ;;  %6947 = vtanh.f32 %v3706_v9 }
0x2b90   :  { %v6930_v20 = vpop.eup %6929  ;;  %v3874_v5 = vsel %vm3870_vm8, %v3839_v4, 0.0  ;;  %6949 = vtanh.f32 %v3711_v36 }
0x2b91   :  { %v6932_v25 = vpop.eup %6931  ;;  %v3842_v41 = vmul.f32 %v6930_v20, %v8700_v37  ;;  %6951 = vtanh.f32 %v3716_v1 }
0x2b92   :  { %v6934_v43 = vpop.eup %6933  ;;  %v3843_v62 = vmul.f32 %v6932_v25, %v8700_v37  ;;  %6953 = vtanh.f32 %v3721_v44 }
0x2b93   :  { %v6936_v61 = vpop.eup %6935  ;;  %v3883_v16 = vsel %vm3870_vm8, %v3842_v41, 0.0  ;;  %v3844_v57 = vmul.f32 %v6934_v43, %v8700_v37  ;;  %6955 = vtanh.f32 %v3726_v26 }
0x2b94   :  { %v6938_v28 = vpop.eup %6937  ;;  %v3886_v29 = vsel %vm3870_vm8, %v3843_v62, 0.0  ;;  %6957 = vtanh.f32 %v3731_v49 }
0x2b95   :  { %v6940_v39 = vpop.eup %6939  ;;  %v3889_v0 = vsel %vm3870_vm8, %v3844_v57, 0.0  ;;  %v3846_v17 = vmul.f32 %v6938_v28, %v8700_v37  ;;  %6959 = vtanh.f32 %v3736_v38 }
0x2b96   :  { %v3847_v31 = vmul.f32 %v6940_v39, %v8700_v37  ;;  %6961 = vtanh.f32 %v3741_v42 }
0x2b97   :  { %6963 = vtanh.f32 %v3746_v35 }
0x2b98   :  { %v3898_v47 = vsel %vm3870_vm8, %v3847_v31, 0.0  ;;  %6965 = vtanh.f32 %v3751_v63 }
0x2b99   :  { %6967 = vtanh.f32 %v3756_v24 }
0x2b9a   :  { %6969 = vtanh.f32 %v3761_v34 }
0x2b9b   :  { %6971 = vtanh.f32 %v3766_v52 }
0x2bfd   :  { %v3419_v46 = vpop.permute.xlu1 %3418 }
0x2bfe   :  { %v3423_v60 = vmul.f32 %v6914_v40, %v3419_v46  ;;  %v3417_v18 = vpop.permute.xlu0 %3416  ;;  %v3877_v40 = vsel %vm3870_vm8, %v3840_v58, 0.0  ;;  %v3845_v46 = vmul.f32 %v6936_v61, %v8700_v37 }
0x2bff   :  { %v3422_v56 = vmul.f32 %v6916_v55, %v3417_v18  ;;  %v3841_v55 = vmul.f32 %v6928_v15, %v8700_v37 }
0x2c00   :  { %3428 = vrot.lane.b32.xlu1 %v3423_v60, %s7296_s23  ;;  %v6942_v60 = vpop.eup %6941  ;;  %v3892_v27 = vsel %vm3870_vm8, %v3845_v46, 0.0  ;;  %6973 = vtanh.f32 %v3771_v2 }
0x2c01   :  { %3426 = vrot.lane.b32.xlu0 %v3422_v56, %s7296_s23  ;;  %v3880_v10 = vsel %vm3870_vm8, %v3841_v55, 0.0  ;;  %v6944_v18 = vpop.eup %6943  ;;  %v3895_v56 = vsel %vm3870_vm8, %v3846_v17, 0.0  ;;  %v3848_v7 = vmul.f32 %v6942_v60, %v8700_v37  ;;  %6975 = vtanh.f32 %v3776_v21 }
0x2c02   :  { %v6946_v14 = vpop.eup %6945  ;;  %v3849_v3 = vmul.f32 %v6944_v18, %v8700_v37  ;;  %6977 = vtanh.f32 %v3781_v48  ;;  %v4654_v48 = vld [vmem:[#allocation7] sm:$0xff] }
0x2c03   :  { %v6948_v11 = vpop.eup %6947  ;;  %v3901_v50 = vsel %vm3870_vm8, %v3848_v7, 0.0  ;;  %v3850_v54 = vmul.f32 %v6946_v14, %v8700_v37  ;;  %6979 = vtanh.f32 %v3786_v59 }
0x2c04   :  { %v6950_v13 = vpop.eup %6949  ;;  %v3904_v22 = vsel %vm3870_vm8, %v3849_v3, 0.0  ;;  %v3851_v8 = vmul.f32 %v6948_v11, %v8700_v37 }
0x2c05   :  { %v6952_v23 = vpop.eup %6951  ;;  %v3907_v32 = vsel %vm3870_vm8, %v3850_v54, 0.0  ;;  %v3852_v53 = vmul.f32 %v6950_v13, %v8700_v37 }
0x2c06   :  { %v6954_v15 = vpop.eup %6953  ;;  %v3910_v58 = vsel %vm3870_vm8, %v3851_v8, 0.0  ;;  %v3853_v19 = vmul.f32 %v6952_v23, %v8700_v37 }
0x2c07   :  { %v3913_v4 = vsel %vm3870_vm8, %v3852_v53, 0.0  ;;  %v3854_v20 = vmul.f32 %v6954_v15, %v8700_v37 }
0x2c20   :  { %3872 = vadd.xlane.f32.xlu0 %v3871_v6  ;;  %v6956_v6 = vpop.eup %6955 }
0x2c21   :  { %v6958_v33 = vpop.eup %6957  ;;  %v3855_v55 = vmul.f32 %v6956_v6, %v8700_v37 }
0x2c22   :  { %v6960_v25 = vpop.eup %6959  ;;  %v3856_v41 = vmul.f32 %v6958_v33, %v8700_v37 }
0x2c23   :  { %v6962_v43 = vpop.eup %6961  ;;  %v3922_v61 = vsel %vm3870_vm8, %v3855_v55, 0.0 }
0x2c24   :  { %3875 = vadd.xlane.f32.xlu1 %v3874_v5  ;;  %3878 = vadd.xlane.f32.xlu0 %v3877_v40  ;;  %v3919_v5 = vsel %vm3870_vm8, %v3854_v20, 0.0  ;;  %v3916_v40 = vsel %vm3870_vm8, %v3853_v19, 0.0  ;;  %v6964_v9 = vpop.eup %6963  ;;  %v3925_v36 = vsel %vm3870_vm8, %v3856_v41, 0.0 }
0x2c25   :  { %v6966_v57 = vpop.eup %6965  ;;  %v3859_v44 = vmul.f32 %v6964_v9, %v8700_v37  ;;  %v4655_v9 = vld [vmem:[#allocation7 + $0x8] sm:$0xff] }
0x2c26   :  { %v6968_v62 = vpop.eup %6967  ;;  %v3860_v1 = vmul.f32 %v6966_v57, %v8700_v37 }
0x2c27   :  { %v6970_v39 = vpop.eup %6969  ;;  %v3934_v17 = vsel %vm3870_vm8, %v3859_v44, 0.0  ;;  %v3861_v46 = vmul.f32 %v6968_v62, %v8700_v37 }
0x2c28   :  { %3884 = vadd.xlane.f32.xlu1 %v3883_v16  ;;  %3881 = vadd.xlane.f32.xlu0 %v3880_v10  ;;  %v3858_v16 = vmul.f32 %v6962_v43, %v8700_v37  ;;  %v3857_v10 = vmul.f32 %v6960_v25, %v8700_v37  ;;  %v3862_v45 = vmul.f32 %v6970_v39, %v8700_v37 }
0x2c29   :  { %v3940_v18 = vsel %vm3870_vm8, %v3861_v46, 0.0 }
0x2c2a   :  { %v3931_v12 = vsel %vm3870_vm8, %v3858_v16, 0.0  ;;  %v3928_v28 = vsel %vm3870_vm8, %v3857_v10, 0.0  ;;  %v3943_v49 = vsel %vm3870_vm8, %v3862_v45, 0.0 }
0x2c2c   :  { %3890 = vadd.xlane.f32.xlu1 %v3889_v0  ;;  %3887 = vadd.xlane.f32.xlu0 %v3886_v29  ;;  %v6972_v0 = vpop.eup %6971  ;;  %v3937_v29 = vsel %vm3870_vm8, %v3860_v1, 0.0 }
0x2c2d   :  { %v6974_v60 = vpop.eup %6973 }
0x2c2e   :  { %v6976_v26 = vpop.eup %6975 }
0x2c2f   :  { %v6978_v7 = vpop.eup %6977  ;;  %v3865_v42 = vmul.f32 %v6976_v26, %v8700_v37 }
0x2c30   :  { %3896 = vadd.xlane.f32.xlu1 %v3895_v56  ;;  %3893 = vadd.xlane.f32.xlu0 %v3892_v27  ;;  %v3864_v56 = vmul.f32 %v6974_v60, %v8700_v37  ;;  %v3863_v27 = vmul.f32 %v6972_v0, %v8700_v37  ;;  %v3866_v38 = vmul.f32 %v6978_v7, %v8700_v37  ;;  %v6980_v11 = vpop.eup %6979 }
0x2c31   :  { %v3867_v54 = vmul.f32 %v6980_v11, %v8700_v37 }
0x2c32   :  { %v3949_v31 = vsel %vm3870_vm8, %v3864_v56, 0.0  ;;  %v3946_v14 = vsel %vm3870_vm8, %v3863_v27, 0.0 }
0x2c33   :  { %v3958_v3 = vsel %vm3870_vm8, %v3867_v54, 0.0 }
0x2c34   :  { %3902 = vadd.xlane.f32.xlu1 %v3901_v50  ;;  %3899 = vadd.xlane.f32.xlu0 %v3898_v47  ;;  %v3955_v50 = vsel %vm3870_vm8, %v3866_v38, 0.0  ;;  %v3952_v47 = vsel %vm3870_vm8, %v3865_v42, 0.0 }
0x2c38   :  { %3908 = vadd.xlane.f32.xlu1 %v3907_v32  ;;  %3905 = vadd.xlane.f32.xlu0 %v3904_v22 }
0x2c3c   :  { %3914 = vadd.xlane.f32.xlu1 %v3913_v4  ;;  %3911 = vadd.xlane.f32.xlu0 %v3910_v58 }
0x2c40   :  { %3920 = vadd.xlane.f32.xlu1 %v3919_v5  ;;  %3917 = vadd.xlane.f32.xlu0 %v3916_v40 }
0x2c44   :  { %3926 = vadd.xlane.f32.xlu1 %v3925_v36  ;;  %3923 = vadd.xlane.f32.xlu0 %v3922_v61 }
0x2c48   :  { %3932 = vadd.xlane.f32.xlu1 %v3931_v12  ;;  %3929 = vadd.xlane.f32.xlu0 %v3928_v28 }
0x2c4c   :  { %3938 = vadd.xlane.f32.xlu1 %v3937_v29  ;;  %3935 = vadd.xlane.f32.xlu0 %v3934_v17 }
0x2c50   :  { %3944 = vadd.xlane.f32.xlu1 %v3943_v49  ;;  %3941 = vadd.xlane.f32.xlu0 %v3940_v18 }
0x2c54   :  { %3950 = vadd.xlane.f32.xlu1 %v3949_v31  ;;  %3947 = vadd.xlane.f32.xlu0 %v3946_v14 }
0x2c58   :  { %3956 = vadd.xlane.f32.xlu1 %v3955_v50  ;;  %3953 = vadd.xlane.f32.xlu0 %v3952_v47 }
0x2c5c   :  { %3959 = vadd.xlane.f32.xlu0 %v3958_v3 }
0x2c72   :  { %v3429_v13 = vpop.permute.xlu1 %3428 }
0x2c73   :  { %3434 = vst.msk [vmem:[#allocation3 + $0xf8] sm:$0xff] %vm824_vm7, %v3429_v13  ;;  %v3427_v35 = vpop.permute.xlu0 %3426 }
0x2c74   :  { %3433 = vst.msk [vmem:[#allocation3 + $0xf0] sm:$0xff] %vm824_vm7, %v3427_v35 }
0x2c7a   :  { %v3466_v23 = vld [vmem:[#allocation3 + $0xf8] sm:$0xff] }
0x2c7b   :  { %v3465_v63 = vld [vmem:[#allocation3 + $0xf0] sm:$0xff] }
0x2c7c   :  { %6334 = vmatprep.mubr.msk.f32.mxu1 %vm824_vm7, %v3465_v63 }
0x2c7d   :  { %6335 = vmatmul.mubr.msk.f32.gmra.mrb[58].mxu1 %vm824_vm7, %v3466_v23 }
0x2cad   :  { %v8818_v20 = vpop.xlane.xlu0 %3872 }
0x2cb1   :  { %v8820_v19 = vpop.xlane.xlu0 %3878 }
0x2cb5   :  { %v8822_v33 = vpop.xlane.xlu0 %3881 }
0x2cb9   :  { %v8826_v52 = vpop.xlane.xlu0 %3887 }
0x2cbd   :  { %v8830_v25 = vpop.xlane.xlu0 %3893 }
0x2cbe   :  { %v3983_v60 = vmax.f32 %v8822_v33, %v8830_v25 }
0x2cc1   :  { %v8838_v55 = vpop.xlane.xlu0 %3899 }
0x2cc5   :  { %v8846_v36 = vpop.xlane.xlu0 %3905 }
0x2cc6   :  { %v3985_v27 = vmax.f32 %v3983_v60, %v8846_v36 }
0x2cc9   :  { %v8850_v16 = vpop.xlane.xlu0 %3911 }
0x2ccd   :  { %v8854_v57 = vpop.xlane.xlu0 %3917 }
0x2cce   :  { %v3987_v42 = vmax.f32 %v3985_v27, %v8854_v57 }
0x2cd1   :  { %v8858_v62 = vpop.xlane.xlu0 %3923 }
0x2cd5   :  { %v8862_v28 = vpop.xlane.xlu0 %3929 }
0x2cd6   :  { %v3989_v54 = vmax.f32 %v3987_v42, %v8862_v28 }
0x2cd9   :  { %v8866_v44 = vpop.xlane.xlu0 %3935 }
0x2cdd   :  { %v8870_v0 = vpop.xlane.xlu0 %3941 }
0x2cde   :  { %v3991_v23 = vmax.f32 %v3989_v54, %v8870_v0 }
0x2ce1   :  { %v8874_v17 = vpop.xlane.xlu0 %3947 }
0x2ce5   :  { %v8886_v18 = vpop.xlane.xlu0 %3953 }
0x2ce9   :  { %v8902_v35 = vpop.xlane.xlu0 %3959 }
0x2d50   :  { %v6336_v32 = vpop.f32.mrb[58].mxu1 }
0x2d51   :  { %v3796_v22 = vadd.f32 %v6336_v32, %v8681_v51  ;;  %v3790_v53 = vpop.f32.mrb[59].mxu1 }
0x2d52   :  { %v3791_v8 = vadd.f32 %v8681_v51, %v3790_v53  ;;  %v8824_v51 = vpop.xlane.xlu1 %3875 }
0x2d53   :  { %6981 = vtanh.f32 %v3796_v22  ;;  %v3982_v46 = vmax.f32 %v8824_v51, %v8826_v52 }
0x2d54   :  { %6983 = vtanh.f32 %v3791_v8 }
0x2d55   :  { %v3984_v56 = vmax.f32 %v3982_v46, %v8838_v55 }
0x2d56   :  { %v8828_v2 = vpop.xlane.xlu1 %3884 }
0x2d57   :  { %v3967_v26 = vmax.f32 %v8818_v20, %v8828_v2  ;;  %v3986_v38 = vmax.f32 %v3984_v56, %v8850_v16 }
0x2d59   :  { %v3988_v47 = vmax.f32 %v3986_v38, %v8858_v62 }
0x2d5a   :  { %v8832_v5 = vpop.xlane.xlu1 %3890 }
0x2d5b   :  { %v3968_v49 = vmax.f32 %v8820_v19, %v8832_v5  ;;  %v3990_v63 = vmax.f32 %v3988_v47, %v8866_v44 }
0x2d5d   :  { %v6982_v15 = vpop.eup %6981  ;;  %v3992_v8 = vmax.f32 %v3990_v63, %v8874_v17 }
0x2d5e   :  { %v6984_v24 = vpop.eup %6983  ;;  %v3869_v34 = vmul.f32 %v6982_v15, %v8700_v37  ;;  %v8842_v43 = vpop.xlane.xlu1 %3896  ;;  %v3993_v15 = vmax.f32 %v3991_v23, %v8886_v18 }
0x2d5f   :  { %v3868_v6 = vmul.f32 %v6984_v24, %v8700_v37  ;;  %v4093_v37 = vlaneseq  ;;  %v3969_v31 = vmax.f32 %v3967_v26, %v8842_v43 }
0x2d60   :  { %v3964_v4 = vsel %vm3870_vm8, %v3869_v34, 0.0 }
0x2d61   :  { %3965 = vadd.xlane.f32.xlu0 %v3964_v4  ;;  %v3961_v58 = vsel %vm3870_vm8, %v3868_v6, 0.0  ;;  %v8834_v40 = vshrl.u32 %v4093_v37, 7  ;;  %v8836_v41 = vand.u32 127, %v4093_v37  ;;  %v3994_v4 = vmax.f32 %v3992_v8, %v8902_v35 }
0x2d62   :  { %3962 = vadd.xlane.f32.xlu1 %v3961_v58  ;;  %v8848_v61 = vpop.xlane.xlu1 %3902 }
0x2d63   :  { %9526 = vst [vmem:[#allocation18_spill] sm:$0xff] %v8834_v40  ;;  %9527 = vst [vmem:[#allocation19_spill] sm:$0xff] %v8836_v41  ;;  %vm4098_vm9 = vcmp.le.s32.totalorder %v8836_v41, %v8834_v40  ;;  %v3970_v14 = vmax.f32 %v3968_v49, %v8848_v61 }
0x2d64   :  { %v5865_v21 = vsel %vm4098_vm9, 1.0, %v9492_v30 }
0x2d65   :  { %6341 = vmatprep.mubr.msk.f32.mxu1 %vm4298_vm10, %v5865_v21 }
0x2d66   :  { %v8852_v10 = vpop.xlane.xlu1 %3908 }
0x2d67   :  { %v3971_v11 = vmax.f32 %v3969_v31, %v8852_v10 }
0x2d6a   :  { %v8856_v59 = vpop.xlane.xlu1 %3914 }
0x2d6b   :  { %v3972_v50 = vmax.f32 %v3970_v14, %v8856_v59 }
0x2d6e   :  { %v8860_v12 = vpop.xlane.xlu1 %3920 }
0x2d6f   :  { %v3973_v3 = vmax.f32 %v3971_v11, %v8860_v12 }
0x2d72   :  { %v8864_v1 = vpop.xlane.xlu1 %3926 }
0x2d73   :  { %v3974_v13 = vmax.f32 %v3972_v50, %v8864_v1 }
0x2d76   :  { %v8868_v39 = vpop.xlane.xlu1 %3932 }
0x2d77   :  { %v3975_v22 = vmax.f32 %v3973_v3, %v8868_v39 }
0x2d7a   :  { %v8872_v29 = vpop.xlane.xlu1 %3938 }
0x2d7b   :  { %v3976_v53 = vmax.f32 %v3974_v13, %v8872_v29 }
0x2d7e   :  { %v8876_v45 = vpop.xlane.xlu1 %3944 }
0x2d7f   :  { %v3977_v24 = vmax.f32 %v3975_v22, %v8876_v45 }
0x2d82   :  { %v8890_v7 = vpop.xlane.xlu1 %3950 }
0x2d83   :  { %v3978_v34 = vmax.f32 %v3976_v53, %v8890_v7 }
0x2d86   :  { %v8906_v32 = vpop.xlane.xlu1 %3956 }
0x2d87   :  { %v3979_v21 = vmax.f32 %v3977_v24, %v8906_v32 }
0x2d95   :  { %4656 = vxpose.xlu1.b32.start [1/2] (short) (narrow) %v4654_v48, 16 }
0x2d99   :  { %4657 = vxpose.xlu1.b32.end [2/2] (short) (narrow) %v4655_v9, 16 }
0x2dee   :  { %v3966_v6 = vpop.xlane.xlu0 %3965 }
0x2def   :  { %v3995_v58 = vmax.f32 %v3993_v15, %v3966_v6  ;;  %v3963_v37 = vpop.xlane.xlu1 %3962 }
0x2df0   :  { %v3980_v48 = vmax.f32 %v3978_v34, %v3963_v37 }
0x2df1   :  { %v8916_v9 = vmax.f32 %v3994_v4, %v3995_v58 }
0x2df2   :  { %v8918_v46 = vmax.f32 %v3979_v21, %v3980_v48 }
0x2df3   :  { %v4028_v60 = vsub.f32 %v3966_v6, %v8916_v9  ;;  %v3998_v27 = vsub.f32 %v8824_v51, %v8916_v9  ;;  %v4000_v38 = vsub.f32 %v8822_v33, %v8916_v9  ;;  %v4002_v11 = vsub.f32 %v8826_v52, %v8916_v9 }
0x2df4   :  { %v4027_v26 = vsub.f32 %v3963_v37, %v8918_v46  ;;  %v3997_v56 = vsub.f32 %v8818_v20, %v8918_v46  ;;  %v3999_v31 = vsub.f32 %v8820_v19, %v8918_v46  ;;  %v4001_v42 = vsub.f32 %v8828_v2, %v8918_v46 }
0x2df5   :  { %v4091_v49 = vmul.f32 1.442695, %v4028_v60  ;;  %v4003_v50 = vsub.f32 %v8832_v5, %v8918_v46  ;;  %v4031_v47 = vmul.f32 1.442695, %v3998_v27  ;;  %v4004_v19 = vsub.f32 %v8830_v25, %v8916_v9 }
0x2df6   :  { %v4089_v14 = vmul.f32 1.442695, %v4027_v26  ;;  %v4029_v20 = vmul.f32 1.442695, %v3997_v56  ;;  %v4033_v51 = vmul.f32 1.442695, %v3999_v31  ;;  %v4005_v33 = vsub.f32 %v8842_v43, %v8918_v46 }
0x2df7   :  { %6985 = vpow2.f32 %v4091_v49  ;;  %v4035_v54 = vmul.f32 1.442695, %v4000_v38  ;;  %v4037_v2 = vmul.f32 1.442695, %v4001_v42  ;;  %v4006_v52 = vsub.f32 %v8838_v55, %v8916_v9 }
0x2df8   :  { %6987 = vpow2.f32 %v4089_v14  ;;  %v4039_v3 = vmul.f32 1.442695, %v4002_v11  ;;  %v4007_v5 = vsub.f32 %v8848_v61, %v8918_v46  ;;  %v4041_v13 = vmul.f32 1.442695, %v4003_v50 }
0x2df9   :  { %6989 = vpow2.f32 %v4029_v20  ;;  %v4008_v63 = vsub.f32 %v8846_v36, %v8916_v9  ;;  %v4043_v25 = vmul.f32 1.442695, %v4004_v19  ;;  %v4009_v43 = vsub.f32 %v8852_v10, %v8918_v46 }
0x2dfa   :  { %6991 = vpow2.f32 %v4031_v47  ;;  %v4045_v23 = vmul.f32 1.442695, %v4005_v33  ;;  %v4010_v55 = vsub.f32 %v8850_v16, %v8916_v9  ;;  %v4047_v22 = vmul.f32 1.442695, %v4006_v52 }
0x2dfb   :  { %6993 = vpow2.f32 %v4033_v51  ;;  %v4011_v61 = vsub.f32 %v8856_v59, %v8918_v46  ;;  %v4049_v53 = vmul.f32 1.442695, %v4007_v5  ;;  %v4012_v36 = vsub.f32 %v8854_v57, %v8916_v9 }
0x2dfc   :  { %6995 = vpow2.f32 %v4035_v54  ;;  %v4051_v8 = vmul.f32 1.442695, %v4008_v63  ;;  %v4013_v10 = vsub.f32 %v8860_v12, %v8918_v46  ;;  %v4053_v24 = vmul.f32 1.442695, %v4009_v43 }
0x2dfd   :  { %6997 = vpow2.f32 %v4037_v2  ;;  %v4014_v34 = vsub.f32 %v8858_v62, %v8916_v9  ;;  %v4055_v59 = vmul.f32 1.442695, %v4010_v55  ;;  %v4140_v6 = vadd.s32 4294967288, %v8836_v41 }
0x2dfe   :  { %6999 = vpow2.f32 %v4039_v3  ;;  %v4015_v57 = vsub.f32 %v8864_v1, %v8918_v46  ;;  %v4057_v58 = vmul.f32 1.442695, %v4011_v61  ;;  %v4016_v12 = vsub.f32 %v8862_v28, %v8916_v9 }
0x2dff   :  { %7001 = vpow2.f32 %v4041_v13  ;;  %v4059_v21 = vmul.f32 1.442695, %v4012_v36  ;;  %v8973_v62 = vsub.s32 %v8836_v41, %v8834_v40  ;;  %v4017_v60 = vsub.f32 %v8868_v39, %v8918_v46 }
0x2e00   :  { %7003 = vpow2.f32 %v4043_v25  ;;  %v4018_v1 = vsub.f32 %v8866_v44, %v8916_v9  ;;  %v4061_v26 = vmul.f32 1.442695, %v4013_v10  ;;  %v4063_v28 = vmul.f32 1.442695, %v4014_v34 }
0x2e01   :  { %v8954_v15 = vpop.eup %6985  ;;  %7005 = vpow2.f32 %v4045_v23  ;;  %9530 = vst [vmem:[#allocation22_spill] sm:$0xff] %v8973_v62  ;;  %v8984_v56 = vsub.s32 %v4140_v6, %v8834_v40  ;;  %v4019_v31 = vsub.f32 %v8872_v29, %v8918_v46  ;;  %v4020_v39 = vsub.f32 %v8870_v0, %v8916_v9 }
0x2e02   :  { %9528 = vst [vmem:[#allocation20_spill] sm:$0xff] %v8954_v15  ;;  %v8958_v16 = vpop.eup %6987  ;;  %7007 = vpow2.f32 %v4047_v22  ;;  %v4065_v44 = vmul.f32 1.442695, %v4015_v57  ;;  %v4021_v38 = vsub.f32 %v8876_v45, %v8918_v46  ;;  %v4022_v42 = vsub.f32 %v8874_v17, %v8916_v9 }
0x2e03   :  { %9529 = vst [vmem:[#allocation21_spill] sm:$0xff] %v8958_v16  ;;  %v8963_v4 = vpop.eup %6989  ;;  %7009 = vpow2.f32 %v4049_v53  ;;  %9531 = vst [vmem:[#allocation23_spill] sm:$0xff] %v8984_v56  ;;  %v4067_v11 = vmul.f32 1.442695, %v4016_v12  ;;  %v4069_v20 = vmul.f32 1.442695, %v4017_v60  ;;  %v4023_v54 = vsub.f32 %v8890_v7, %v8918_v46 }
0x2e04   :  { %v8967_v37 = vpop.eup %6991  ;;  %7011 = vpow2.f32 %v4051_v8  ;;  %v4071_v29 = vmul.f32 1.442695, %v4018_v1  ;;  %v4139_v0 = vrot.slane %v8963_v4, %v8973_v62  ;;  %v4024_v33 = vsub.f32 %v8886_v18, %v8916_v9 }
0x2e05   :  { %v8975_v48 = vpop.eup %6993  ;;  %7013 = vpow2.f32 %v4053_v24  ;;  %v4144_v51 = vrot.slane %v8967_v37, %v8984_v56  ;;  %v4073_v2 = vmul.f32 1.442695, %v4019_v31  ;;  %v4025_v3 = vsub.f32 %v8906_v32, %v8918_v46 }
0x2e06   :  { %v8981_v49 = vpop.eup %6995  ;;  %7015 = vpow2.f32 %v4055_v59  ;;  %v4150_v45 = vrot.slane %v8975_v48, %v8973_v62  ;;  %v4026_v5 = vsub.f32 %v8902_v35, %v8916_v9  ;;  %v4075_v13 = vmul.f32 1.442695, %v4020_v39 }
0x2e07   :  { %v8986_v27 = vpop.eup %6997  ;;  %7017 = vpow2.f32 %v4057_v58  ;;  %v4154_v17 = vrot.slane %v8981_v49, %v8984_v56  ;;  %v4077_v25 = vmul.f32 1.442695, %v4021_v38  ;;  %v4079_v23 = vmul.f32 1.442695, %v4022_v42 }
0x2e08   :  { %v8992_v14 = vpop.eup %6999  ;;  %7019 = vpow2.f32 %v4059_v21  ;;  %v4159_v7 = vrot.slane %v8986_v27, %v8973_v62  ;;  %v4146_v32 = vsel %vm4145_vm11, %v4144_v51, %v4139_v0  ;;  %v4081_v46 = vmul.f32 1.442695, %v4023_v54 }
0x2e09   :  { %v8998_v50 = vpop.eup %7001  ;;  %7021 = vpow2.f32 %v4061_v26  ;;  %v4163_v18 = vrot.slane %v8992_v14, %v8984_v56  ;;  %v4155_v35 = vsel %vm4145_vm11, %v4154_v17, %v4150_v45  ;;  %v4083_v22 = vmul.f32 1.442695, %v4024_v33 }
0x2e0a   :  { %v9002_v47 = vpop.eup %7003  ;;  %7023 = vpow2.f32 %v4063_v28  ;;  %v4085_v53 = vmul.f32 1.442695, %v4025_v3  ;;  %v4282_v8 = vsel %vm397_vm0, %v4155_v35, %v4146_v32  ;;  %v4087_v24 = vmul.f32 1.442695, %v4026_v5 }
0x2e0b   :  { %v9010_v19 = vpop.eup %7005  ;;  %7025 = vpow2.f32 %v4065_v44  ;;  %v4164_v36 = vsel %vm4145_vm11, %v4163_v18, %v4159_v7  ;;  %v4168_v34 = vrot.slane %v8998_v50, %v8973_v62  ;;  %v4172_v59 = vrot.slane %v9002_v47, %v8984_v56 }
0x2e0c   :  { %v9016_v52 = vpop.eup %7007  ;;  %7027 = vpow2.f32 %v4067_v11  ;;  %v4283_v12 = vsel %vm399_vm1, %v4164_v36, %v4282_v8  ;;  %v4177_v60 = vrot.slane %v9010_v19, %v8973_v62 }
0x2e0d   :  { %v9022_v63 = vpop.eup %7009  ;;  %7029 = vpow2.f32 %v4069_v20  ;;  %v4181_v1 = vrot.slane %v9016_v52, %v8984_v56  ;;  %v4173_v31 = vsel %vm4145_vm11, %v4172_v59, %v4168_v34 }
0x2e0e   :  { %v9028_v43 = vpop.eup %7011  ;;  %7031 = vpow2.f32 %v4071_v29  ;;  %v4284_v11 = vsel %vm401_vm2, %v4173_v31, %v4283_v12  ;;  %v4186_v29 = vrot.slane %v9022_v63, %v8973_v62 }
0x2e0f   :  { %v9032_v9 = vpop.eup %7013  ;;  %7033 = vpow2.f32 %v4073_v2  ;;  %v4190_v0 = vrot.slane %v9028_v43, %v8984_v56  ;;  %v4182_v17 = vsel %vm4145_vm11, %v4181_v1, %v4177_v60 }
0x2e10   :  { %v9034_v55 = vpop.eup %7015  ;;  %7035 = vpow2.f32 %v4075_v13  ;;  %v4285_v5 = vsel %vm403_vm3, %v4182_v17, %v4284_v11  ;;  %v4195_v7 = vrot.slane %v9032_v9, %v8973_v62 }
0x2e11   :  { %9532 = vst [vmem:[#allocation24_spill] sm:$0xff] %v9034_v55  ;;  %v9036_v61 = vpop.eup %7017  ;;  %7037 = vpow2.f32 %v4077_v25  ;;  %v4199_v18 = vrot.slane %v9034_v55, %v8984_v56 }
0x2e12   :  { %9533 = vst [vmem:[#allocation25_spill] sm:$0xff] %v9036_v61  ;;  %v9040_v10 = vpop.eup %7019  ;;  %7039 = vpow2.f32 %v4079_v23 }
0x2e13   :  { %9534 = vst [vmem:[#allocation26_spill] sm:$0xff] %v9040_v10  ;;  %v9046_v6 = vpop.eup %7021  ;;  %7041 = vpow2.f32 %v4081_v46  ;;  %v4191_v46 = vsel %vm4145_vm11, %v4190_v0, %v4186_v29  ;;  %v4208_v12 = vrot.slane %v9040_v10, %v8984_v56  ;;  %v4200_v31 = vsel %vm4145_vm11, %v4199_v18, %v4195_v7 }
0x2e14   :  { %v9048_v57 = vpop.eup %7023  ;;  %7043 = vpow2.f32 %v4083_v22  ;;  %v4213_v58 = vrot.slane %v9046_v6, %v8973_v62  ;;  %v4286_v34 = vsel %vm405_vm4, %v4191_v46, %v4285_v5  ;;  %v4280_v0 = vrot.slane %v8954_v15, %v8984_v56 }
0x2e15   :  { %v9053_v21 = vpop.eup %7025  ;;  %7045 = vpow2.f32 %v4085_v53  ;;  %v4217_v26 = vrot.slane %v9048_v57, %v8984_v56 }
0x2e16   :  { %v9061_v28 = vpop.eup %7027  ;;  %7047 = vpow2.f32 %v4087_v24  ;;  %v4222_v39 = vrot.slane %v9053_v21, %v8973_v62 }
0x2e17   :  { %v9066_v44 = vpop.eup %7029  ;;  %v4218_v38 = vsel %vm4145_vm11, %v4217_v26, %v4213_v58  ;;  %v4226_v42 = vrot.slane %v9061_v28, %v8984_v56  ;;  %v4204_v58 = vrot.slane %v9036_v61, %v8973_v62 }
0x2e18   :  { %v9072_v20 = vpop.eup %7031  ;;  %v4231_v51 = vrot.slane %v9066_v44, %v8973_v62 }
0x2e19   :  { %v9080_v45 = vpop.eup %7033  ;;  %v4227_v54 = vsel %vm4145_vm11, %v4226_v42, %v4222_v39  ;;  %v4235_v33 = vrot.slane %v9072_v20, %v8984_v56  ;;  %v4276_v42 = vrot.slane %v8958_v16, %v8973_v62 }
0x2e1a   :  { %v9086_v2 = vpop.eup %7035  ;;  %v4240_v3 = vrot.slane %v9080_v45, %v8973_v62  ;;  %v4289_v13 = vsel %vm397_vm0, %v4227_v54, %v4218_v38 }
0x2e1b   :  { %v9092_v25 = vpop.eup %7037  ;;  %v4236_v23 = vsel %vm4145_vm11, %v4235_v33, %v4231_v51  ;;  %v4244_v32 = vrot.slane %v9086_v2, %v8984_v56  ;;  %v4287_v51 = vsel %vm407_vm5, %v4200_v31, %v4286_v34  ;;  %v9161_v34 = vpop.trf.xlu1 }
0x2e1c   :  { %v9101_v35 = vpop.eup %7039  ;;  %v4249_v22 = vrot.slane %v9092_v25, %v8973_v62  ;;  %v4290_v53 = vsel %vm399_vm1, %v4236_v23, %v4289_v13  ;;  %v9144_v13 = vadd.s32 8, %v8834_v40  ;;  %v4281_v23 = vsel %vm4145_vm11, %v4280_v0, %v4276_v42 }
0x2e1d   :  { %v9107_v36 = vpop.eup %7041  ;;  %v4245_v8 = vsel %vm4145_vm11, %v4244_v32, %v4240_v3  ;;  %v4253_v24 = vrot.slane %v9101_v35, %v8984_v56  ;;  %v4209_v3 = vsel %vm4145_vm11, %v4208_v12, %v4204_v58 }
0x2e1e   :  { %v9113_v59 = vpop.eup %7043  ;;  %v4258_v60 = vrot.slane %v9107_v36, %v8973_v62  ;;  %v4291_v1 = vsel %vm401_vm2, %v4245_v8, %v4290_v53  ;;  %9537 = vst [vmem:[#allocation29_spill] sm:$0xff] %v9144_v13  ;;  %v4288_v18 = vsel %vm409_vm6, %v4209_v3, %v4287_v51  ;;  %vm4099_vm12 = vcmp.le.s32.totalorder %v8836_v41, %v9144_v13 }
0x2e1f   :  { %v9122_v26 = vpop.eup %7045  ;;  %v4254_v39 = vsel %vm4145_vm11, %v4253_v24, %v4249_v22  ;;  %v4262_v38 = vrot.slane %v9113_v59, %v8984_v56  ;;  %v5866_v53 = vsel %vm4099_vm12, 1.0, %v9492_v30  ;;  %v9155_v8 = vsub.s32 0, %v8834_v40 }
0x2e20   :  { %9535 = vst [vmem:[#allocation27_spill] sm:$0xff] %v9122_v26  ;;  %v9130_v11 = vpop.eup %7047  ;;  %v4267_v29 = vrot.slane %v9122_v26, %v8973_v62  ;;  %v4292_v17 = vsel %vm403_vm3, %v4254_v39, %v4291_v1  ;;  %v9159_v24 = vsub.s32 1, %v8834_v40  ;;  %v9174_v39 = vsub.s32 2, %v8834_v40 }
0x2e21   :  { %9536 = vst [vmem:[#allocation28_spill] sm:$0xff] %v9130_v11  ;;  %v4263_v54 = vsel %vm4145_vm11, %v4262_v38, %v4258_v60  ;;  %v4271_v33 = vrot.slane %v9130_v11, %v8984_v56  ;;  %9538 = vst [vmem:[#allocation30_spill] sm:$0xff] %v9155_v8  ;;  %v4693_v58 = vrot.slane %v9161_v34, %v9155_v8  ;;  %v9167_v60 = vpop.trf.xlu1  ;;  %v9195_v3 = vsub.s32 5, %v8834_v40 }
0x2e22   :  { %v4293_v5 = vsel %vm405_vm4, %v4263_v54, %v4292_v17  ;;  %9539 = vst [vmem:[#allocation31_spill] sm:$0xff] %v9159_v24  ;;  %v4704_v12 = vrot.slane %v9161_v34, %v9159_v24  ;;  %v4781_v1 = vrot.slane %v9167_v60, %v9155_v8  ;;  %v4792_v31 = vrot.slane %v9167_v60, %v9159_v24 }
0x2e23   :  { %v4272_v7 = vsel %vm4145_vm11, %v4271_v33, %v4267_v29  ;;  %4695 = vbcast.lane.b32.xlu1 %v4693_v58, 256  ;;  %4699 = vbcast.lane.b32.xlu0 %v4693_v58, 264  ;;  %9540 = vst [vmem:[#allocation32_spill] sm:$0xff] %v9174_v39  ;;  %v4715_v38 = vrot.slane %v9161_v34, %v9174_v39  ;;  %v9181_v29 = vsub.s32 3, %v8834_v40  ;;  %v9188_v17 = vsub.s32 4, %v8834_v40 }
0x2e24   :  { %v4294_v32 = vsel %vm407_vm5, %v4272_v7, %v4293_v5  ;;  %v4803_v42 = vrot.slane %v9167_v60, %v9174_v39  ;;  %9543 = vst [vmem:[#allocation35_spill] sm:$0xff] %v9195_v3  ;;  %v4748_v5 = vrot.slane %v9161_v34, %v9195_v3  ;;  %v4836_v7 = vrot.slane %v9167_v60, %v9195_v3 }
0x2e25   :  { %v4295_v46 = vsel %vm409_vm6, %v4281_v23, %v4294_v32  ;;  %9541 = vst [vmem:[#allocation33_spill] sm:$0xff] %v9181_v29  ;;  %v4726_v0 = vrot.slane %v9161_v34, %v9181_v29  ;;  %v4814_v51 = vrot.slane %v9167_v60, %v9181_v29  ;;  %9542 = vst [vmem:[#allocation34_spill] sm:$0xff] %v9188_v17 }
0x2e26   :  { %v6495_v22 = vpack.c.bf16 %v4295_v46, %v4288_v18  ;;  %v4737_v54 = vrot.slane %v9161_v34, %v9188_v17  ;;  %v4825_v33 = vrot.slane %v9167_v60, %v9188_v17 }
0x2e27   :  { %4706 = vbcast.lane.b32.xlu1 %v4704_v12, 256  ;;  %4710 = vbcast.lane.b32.xlu0 %v4704_v12, 264 }
0x2e28   :  { %6496 = vmatprep.subr.bf16.mxu1 %v6495_v22 }
0x2e29   :  { %6498 = vmatpush3.bf16.msra.mxu1 %v6495_v22 }
0x2e2b   :  { %4783 = vbcast.lane.b32.xlu1 %v4781_v1, 256  ;;  %4787 = vbcast.lane.b32.xlu0 %v4781_v1, 264  ;;  %v9210_v1 = vsub.s32 7, %v8834_v40 }
0x2e2c   :  { %6342 = vmatmul.mubr.msk.f32.vlgmr.msra.gmra.mrb[60].mxu1 %vm4298_vm10, %v5866_v53  ;;  %v9205_v53 = vsub.s32 6, %v8834_v40 }
0x2e2d   :  { %9545 = vst [vmem:[#allocation37_spill] sm:$0xff] %v9210_v1 }
0x2e2e   :  { %9544 = vst [vmem:[#allocation36_spill] sm:$0xff] %v9205_v53 }
0x2e2f   :  { %4794 = vbcast.lane.b32.xlu1 %v4792_v31, 256  ;;  %4798 = vbcast.lane.b32.xlu0 %v4792_v31, 264  ;;  %v7297_v31 = vmov 0  }
0x2e30   :  { %6583 = vset.pattern.permute.xlu1 %v7297_v31  ;;  %6624 = vset.pattern.permute.xlu0 %v7297_v31 }
0x2e33   :  { %4717 = vbcast.lane.b32.xlu1 %v4715_v38, 256  ;;  %4721 = vbcast.lane.b32.xlu0 %v4715_v38, 264 }
0x2e37   :  { %4805 = vbcast.lane.b32.xlu1 %v4803_v42, 256  ;;  %4809 = vbcast.lane.b32.xlu0 %v4803_v42, 264 }
0x2e3b   :  { %4728 = vbcast.lane.b32.xlu1 %v4726_v0, 256  ;;  %4732 = vbcast.lane.b32.xlu0 %v4726_v0, 264 }
0x2e3f   :  { %4816 = vbcast.lane.b32.xlu1 %v4814_v51, 256  ;;  %4820 = vbcast.lane.b32.xlu0 %v4814_v51, 264 }
0x2e43   :  { %4739 = vbcast.lane.b32.xlu1 %v4737_v54, 256  ;;  %4743 = vbcast.lane.b32.xlu0 %v4737_v54, 264 }
0x2e47   :  { %4827 = vbcast.lane.b32.xlu1 %v4825_v33, 256  ;;  %4831 = vbcast.lane.b32.xlu0 %v4825_v33, 264 }
0x2e4b   :  { %4750 = vbcast.lane.b32.xlu1 %v4748_v5, 256  ;;  %4754 = vbcast.lane.b32.xlu0 %v4748_v5, 264 }
0x2e4f   :  { %4838 = vbcast.lane.b32.xlu1 %v4836_v7, 256  ;;  %4842 = vbcast.lane.b32.xlu0 %v4836_v7, 264  ;;  %v4759_v7 = vrot.slane %v9161_v34, %v9205_v53 }
0x2eff   :  { %v6343_v18 = vpop.f32.mrb[60].mxu1 }
0x2f00   :  { %v4517_v23 = vrot.slane %v6343_v18, %v9188_v17  ;;  %v4473_v32 = vrot.slane %v6343_v18, %v9155_v8  ;;  %v4371_v46 = vpop.f32.mrb[61].mxu1  ;;  %v4528_v22 = vrot.slane %v6343_v18, %v9195_v3  ;;  %v4539_v58 = vrot.slane %v6343_v18, %v9205_v53 }
0x2f01   :  { %v4484_v12 = vrot.slane %v6343_v18, %v9159_v24  ;;  %v4550_v38 = vrot.slane %v6343_v18, %v9210_v1  ;;  %v4495_v42 = vrot.slane %v6343_v18, %v9174_v39  ;;  %v4407_v0 = vrot.slane %v4371_v46, %v9174_v39 }
0x2f02   :  { %4519 = vbcast.lane.b32.xlu1 %v4517_v23, 256  ;;  %4475 = vbcast.lane.b32.xlu0 %v4473_v32, 256  ;;  %v4440_v51 = vrot.slane %v4371_v46, %v9195_v3  ;;  %v4506_v54 = vrot.slane %v6343_v18, %v9181_v29  ;;  %v4451_v33 = vrot.slane %v4371_v46, %v9205_v53 }
0x2f03   :  { %v4462_v5 = vrot.slane %v4371_v46, %v9210_v1  ;;  %v4770_v18 = vrot.slane %v9161_v34, %v9210_v1  ;;  %v4385_v31 = vrot.slane %v4371_v46, %v9155_v8  ;;  %v4429_v30 = vrot.slane %v4371_v46, %v9188_v17 }
0x2f06   :  { %4530 = vbcast.lane.b32.xlu1 %v4528_v22, 256  ;;  %4479 = vbcast.lane.b32.xlu0 %v4473_v32, 264  ;;  %v4847_v32 = vrot.slane %v9167_v60, %v9205_v53 }
0x2f0a   :  { %4541 = vbcast.lane.b32.xlu1 %v4539_v58, 256  ;;  %4486 = vbcast.lane.b32.xlu0 %v4484_v12, 256 }
0x2f0e   :  { %4552 = vbcast.lane.b32.xlu1 %v4550_v38, 256  ;;  %4490 = vbcast.lane.b32.xlu0 %v4484_v12, 264  ;;  %v4858_v12 = vrot.slane %v9167_v60, %v9210_v1  ;;  %v9234_v60 = vpop.permute.xlu1 %4695 }
0x2f12   :  { %4497 = vbcast.lane.b32.xlu0 %v4495_v42, 256  ;;  %4413 = vbcast.lane.b32.xlu1 %v4407_v0, 264 }
0x2f16   :  { %4501 = vbcast.lane.b32.xlu0 %v4495_v42, 264  ;;  %4442 = vbcast.lane.b32.xlu1 %v4440_v51, 256  ;;  %v9228_v42 = vpop.permute.xlu0 %4699 }
0x2f1a   :  { %4508 = vbcast.lane.b32.xlu0 %v4506_v54, 256  ;;  %4453 = vbcast.lane.b32.xlu1 %v4451_v33, 256 }
0x2f1e   :  { %4512 = vbcast.lane.b32.xlu0 %v4506_v54, 264  ;;  %4464 = vbcast.lane.b32.xlu1 %v4462_v5, 256 }
0x2f22   :  { %4523 = vbcast.lane.b32.xlu0 %v4517_v23, 264  ;;  %4761 = vbcast.lane.b32.xlu1 %v4759_v7, 256  ;;  %v9230_v23 = vpop.permute.xlu0 %4710 }
0x2f26   :  { %4534 = vbcast.lane.b32.xlu0 %v4528_v22, 264  ;;  %4849 = vbcast.lane.b32.xlu1 %v4847_v32, 256  ;;  %v4396_v22 = vrot.slane %v4371_v46, %v9159_v24  ;;  %v4788_v54 = vpop.permute.xlu0 %4787 }
0x2f2a   :  { %4545 = vbcast.lane.b32.xlu0 %v4539_v58, 264  ;;  %4772 = vbcast.lane.b32.xlu1 %v4770_v18, 256  ;;  %v4799_v34 = vpop.permute.xlu0 %4798  ;;  %v4418_v58 = vrot.slane %v4371_v46, %v9181_v29 }
0x2f2e   :  { %4556 = vbcast.lane.b32.xlu0 %v4550_v38, 264  ;;  %4860 = vbcast.lane.b32.xlu1 %v4858_v12, 256  ;;  %v9236_v38 = vpop.permute.xlu0 %4721 }
0x2f32   :  { %4387 = vbcast.lane.b32.xlu0 %v4385_v31, 256  ;;  %v9241_v1 = vpop.permute.xlu0 %4809 }
0x2f36   :  { %4391 = vbcast.lane.b32.xlu0 %v4385_v31, 264  ;;  %v9239_v31 = vpop.permute.xlu1 %4706 }
0x2f3a   :  { %4398 = vbcast.lane.b32.xlu0 %v4396_v22, 256  ;;  %v4784_v53 = vpop.permute.xlu1 %4783 }
0x2f3e   :  { %4402 = vbcast.lane.b32.xlu0 %v4396_v22, 264  ;;  %v9243_v22 = vpop.permute.xlu0 %4732 }
0x2f42   :  { %4409 = vbcast.lane.b32.xlu0 %v4407_v0, 256  ;;  %v4795_v0 = vpop.permute.xlu1 %4794  ;;  %v9245_v3 = vpop.permute.xlu0 %4820 }
0x2f46   :  { %4420 = vbcast.lane.b32.xlu0 %v4418_v58, 256  ;;  %v9247_v29 = vpop.permute.xlu1 %4717 }
0x2f4a   :  { %4424 = vbcast.lane.b32.xlu0 %v4418_v58, 264  ;;  %v9249_v58 = vpop.permute.xlu0 %4743  ;;  %v4806_v46 = vpop.permute.xlu1 %4805 }
0x2f4e   :  { %4431 = vbcast.lane.b32.xlu0 %v4429_v30, 256  ;;  %v9251_v17 = vpop.permute.xlu0 %4831 }
0x2f52   :  { %4435 = vbcast.lane.b32.xlu0 %v4429_v30, 264  ;;  %v9253_v30 = vpop.permute.xlu1 %4728  ;;  %v9255_v39 = vpop.permute.xlu0 %4754 }
0x2f56   :  { %4446 = vbcast.lane.b32.xlu0 %v4440_v51, 264  ;;  %v9257_v51 = vpop.permute.xlu0 %4842 }
0x2f5a   :  { %4457 = vbcast.lane.b32.xlu0 %v4451_v33, 264  ;;  %v4817_v33 = vpop.permute.xlu1 %4816 }
0x2f5e   :  { %4468 = vbcast.lane.b32.xlu0 %v4462_v5, 264  ;;  %v9259_v5 = vpop.permute.xlu1 %4739 }
0x2f62   :  { %4765 = vbcast.lane.b32.xlu0 %v4759_v7, 264  ;;  %v4828_v13 = vpop.permute.xlu1 %4827 }
0x2f66   :  { %4853 = vbcast.lane.b32.xlu0 %v4847_v32, 264 }
0x2f6a   :  { %4776 = vbcast.lane.b32.xlu0 %v4770_v18, 264  ;;  %v9261_v18 = vpop.permute.xlu1 %4750 }
0x2f6e   :  { %4864 = vbcast.lane.b32.xlu0 %v4858_v12, 264 }
0x2f74   :  { %v4476_v24 = vpop.permute.xlu0 %4475 }
0x2f75   :  { %7049 = vrcp.f32 %v4476_v24  ;;  %v4839_v24 = vpop.permute.xlu1 %4838 }
0x2f78   :  { %v4480_v8 = vpop.permute.xlu0 %4479 }
0x2f79   :  { %7051 = vrcp.f32 %v4480_v8 }
0x2f7c   :  { %v4487_v7 = vpop.permute.xlu0 %4486 }
0x2f7d   :  { %7053 = vrcp.f32 %v4487_v7  ;;  %v4520_v7 = vpop.permute.xlu1 %4519 }
0x2f7f   :  { %v7050_v32 = vpop.eup %7049 }
0x2f80   :  { %v4491_v62 = vpop.permute.xlu0 %4490  ;;  %v4623_v56 = vmul.f32 %v7050_v32, %v9046_v6 }
0x2f81   :  { %7055 = vrcp.f32 %v4491_v62 }
0x2f82   :  { %v4914_v15 = vmul.f32 %v4784_v53, %v4623_v56  ;;  %v4531_v56 = vpop.permute.xlu1 %4530 }
0x2f83   :  { %v7052_v12 = vpop.eup %7051 }
0x2f84   :  { %v4498_v41 = vpop.permute.xlu0 %4497  ;;  %v4625_v40 = vmul.f32 %v7052_v12, %v9048_v57 }
0x2f85   :  { %7057 = vrcp.f32 %v4498_v41 }
0x2f86   :  { %v4915_v16 = vmul.f32 %v4788_v54, %v4625_v40 }
0x2f87   :  { %v7054_v10 = vpop.eup %7053 }
0x2f88   :  { %v4502_v8 = vpop.permute.xlu0 %4501  ;;  %v6584_v61 = vpack.i.bf16 %v4915_v16, %v4914_v15  ;;  %v4627_v62 = vmul.f32 %v7054_v10, %v9053_v21 }
0x2f89   :  { %7059 = vrcp.f32 %v4502_v8 }
0x2f8a   :  { %6585 = vperm.xlu1 %6583, %v6584_v61   ;;  %v4916_v32 = vmul.f32 %v4795_v0, %v4627_v62 }
0x2f8b   :  { %v7056_v55 = vpop.eup %7055 }
0x2f8c   :  { %v4509_v11 = vpop.permute.xlu0 %4508  ;;  %v4629_v6 = vmul.f32 %v7056_v55, %v9061_v28 }
0x2f8d   :  { %7061 = vrcp.f32 %v4509_v11 }
0x2f8e   :  { %v4917_v26 = vmul.f32 %v4799_v34, %v4629_v6  ;;  %7063 = vrcp.f32 %v4520_v7  ;;  %v9279_v6 = vpop.permute.xlu1 %4541 }
0x2f8f   :  { %v7058_v57 = vpop.eup %7057 }
0x2f90   :  { %v4513_v41 = vpop.permute.xlu0 %4512  ;;  %v6589_v40 = vpack.i.bf16 %v4917_v26, %v4916_v32  ;;  %v4631_v15 = vmul.f32 %v7058_v57, %v9066_v44 }
0x2f91   :  { %7065 = vrcp.f32 %v4513_v41 }
0x2f92   :  { %6590 = vperm.xlu1 %6583, %v6589_v40   ;;  %7067 = vrcp.f32 %v4531_v56  ;;  %v4918_v21 = vmul.f32 %v4806_v46, %v4631_v15  ;;  %v9285_v15 = vpop.permute.xlu1 %4552 }
0x2f93   :  { %v7060_v16 = vpop.eup %7059 }
0x2f94   :  { %v4524_v61 = vpop.permute.xlu0 %4523  ;;  %v4633_v10 = vmul.f32 %v7060_v16, %v9072_v20 }
0x2f95   :  { %7069 = vrcp.f32 %v4524_v61 }
0x2f96   :  { %v4919_v55 = vmul.f32 %v9241_v1, %v4633_v10 }
0x2f97   :  { %v7062_v28 = vpop.eup %7061 }
0x2f98   :  { %v4535_v11 = vpop.permute.xlu0 %4534  ;;  %v6594_v53 = vpack.i.bf16 %v4919_v55, %v4918_v21  ;;  %v7064_v54 = vpop.eup %7063  ;;  %v4635_v26 = vmul.f32 %v7062_v28, %v9080_v45 }
0x2f99   :  { %7071 = vrcp.f32 %v4535_v11  ;;  %v4639_v8 = vmul.f32 %v7064_v54, %v9092_v25 }
0x2f9a   :  { %6595 = vperm.xlu1 %6583, %v6594_v53   ;;  %v4920_v46 = vmul.f32 %v4817_v33, %v4635_v26 }
0x2f9b   :  { %v7066_v34 = vpop.eup %7065  ;;  %v4922_v45 = vmul.f32 %v4828_v13, %v4639_v8 }
0x2f9c   :  { %v9271_v0 = vpop.permute.xlu0 %4545  ;;  %v4637_v44 = vmul.f32 %v7066_v34, %v9086_v2  ;;  %v7068_v12 = vpop.eup %7067 }
0x2f9d   :  { %v4643_v41 = vmul.f32 %v7068_v12, %v9107_v36 }
0x2f9e   :  { %v4921_v1 = vmul.f32 %v9245_v3, %v4637_v44 }
0x2f9f   :  { %v7070_v20 = vpop.eup %7069  ;;  %v4924_v3 = vmul.f32 %v4839_v24, %v4643_v41 }
0x2fa0   :  { %v9276_v7 = vpop.permute.xlu0 %4556  ;;  %v4641_v62 = vmul.f32 %v7070_v20, %v9101_v35  ;;  %v6599_v32 = vpack.i.bf16 %v4921_v1, %v4920_v46 }
0x2fa2   :  { %v4923_v57 = vmul.f32 %v9251_v17, %v4641_v62  ;;  %6600 = vperm.xlu1 %6583, %v6599_v32   ;;  %v4414_v17 = vpop.permute.xlu1 %4413 }
0x2fa3   :  { %v7072_v2 = vpop.eup %7071 }
0x2fa4   :  { %v4388_v56 = vpop.permute.xlu0 %4387  ;;  %v6604_v25 = vpack.i.bf16 %v4923_v57, %v4922_v45  ;;  %v4645_v33 = vmul.f32 %v7072_v2, %v9113_v59 }
0x2fa5   :  { %7073 = vrcp.f32 %v4388_v56 }
0x2fa6   :  { %v4925_v40 = vmul.f32 %v9257_v51, %v4645_v33  ;;  %6605 = vperm.xlu1 %6583, %v6604_v25   ;;  %v4443_v26 = vpop.permute.xlu1 %4442 }
0x2fa8   :  { %v4392_v35 = vpop.permute.xlu0 %4391  ;;  %v6609_v16 = vpack.i.bf16 %v4925_v40, %v4924_v3 }
0x2fa9   :  { %7075 = vrcp.f32 %v4392_v35 }
0x2faa   :  { %6610 = vperm.xlu1 %6583, %v6609_v16   ;;  %v4454_v20 = vpop.permute.xlu1 %4453 }
0x2fac   :  { %v4399_v13 = vpop.permute.xlu0 %4398 }
0x2fad   :  { %7077 = vrcp.f32 %v4399_v13 }
0x2fae   :  { %7079 = vrcp.f32 %v4414_v17 }
0x2faf   :  { %v7074_v36 = vpop.eup %7073 }
0x2fb0   :  { %v4403_v61 = vpop.permute.xlu0 %4402  ;;  %v4591_v59 = vmul.f32 %v7074_v36, %v8963_v4 }
0x2fb1   :  { %7081 = vrcp.f32 %v4403_v61 }
0x2fb2   :  { %v4898_v21 = vmul.f32 %v9234_v60, %v4591_v59 }
0x2fb3   :  { %v7076_v10 = vpop.eup %7075 }
0x2fb4   :  { %v4410_v24 = vpop.permute.xlu0 %4409  ;;  %v4593_v51 = vmul.f32 %v7076_v10, %v8967_v37 }
0x2fb5   :  { %7083 = vrcp.f32 %v4410_v24 }
0x2fb6   :  { %v4899_v55 = vmul.f32 %v9228_v42, %v4593_v51 }
0x2fb7   :  { %v7078_v28 = vpop.eup %7077 }
0x2fb8   :  { %v4421_v11 = vpop.permute.xlu0 %4420  ;;  %v6614_v53 = vpack.i.bf16 %v4899_v55, %v4898_v21  ;;  %v7080_v54 = vpop.eup %7079  ;;  %v4595_v34 = vmul.f32 %v7078_v28, %v8975_v48  ;;  %v9548_v55 = vld [vmem:[#allocation24_spill] sm:$0xff] }
0x2fb9   :  { %7085 = vrcp.f32 %v4421_v11  ;;  %v4601_v42 = vmul.f32 %v7080_v54, %v8992_v14 }
0x2fba   :  { %6615 = vperm.xlu1 %6583, %v6614_v53   ;;  %v4900_v37 = vmul.f32 %v9239_v31, %v4595_v34 }
0x2fbb   :  { %v7082_v44 = vpop.eup %7081  ;;  %v4903_v32 = vmul.f32 %v9236_v38, %v4601_v42 }
0x2fbc   :  { %v4425_v4 = vpop.permute.xlu0 %4424  ;;  %v4597_v12 = vmul.f32 %v7082_v44, %v8981_v49 }
0x2fbd   :  { %7087 = vrcp.f32 %v4425_v4 }
0x2fbe   :  { %v4901_v60 = vmul.f32 %v9230_v23, %v4597_v12  ;;  %v4465_v23 = vpop.permute.xlu1 %4464 }
0x2fbf   :  { %v7084_v8 = vpop.eup %7083 }
0x2fc0   :  { %v4432_v46 = vpop.permute.xlu0 %4431  ;;  %v6625_v1 = vpack.i.bf16 %v4901_v60, %v4900_v37  ;;  %v4599_v62 = vmul.f32 %v7084_v8, %v8986_v27  ;;  %v9550_v60 = vld [vmem:[#allocation26_spill] sm:$0xff] }
0x2fc1   :  { %7089 = vrcp.f32 %v4432_v46 }
0x2fc2   :  { %6626 = vperm.xlu0 %6624, %v6625_v1   ;;  %v4902_v48 = vmul.f32 %v9247_v29, %v4599_v62  ;;  %7091 = vrcp.f32 %v4443_v26  ;;  %v4762_v56 = vpop.permute.xlu1 %4761  ;;  %v9551_v62 = vld [vmem:[#allocation21_spill] sm:$0xff] }
0x2fc3   :  { %v7086_v49 = vpop.eup %7085 }
0x2fc4   :  { %v4436_v45 = vpop.permute.xlu0 %4435  ;;  %v6630_v31 = vpack.i.bf16 %v4903_v32, %v4902_v48  ;;  %v4603_v14 = vmul.f32 %v7086_v49, %v8998_v50  ;;  %v9552_v32 = vld [vmem:[#allocation20_spill] sm:$0xff] }
0x2fc5   :  { %7093 = vrcp.f32 %v4436_v45 }
0x2fc6   :  { %6631 = vperm.xlu0 %6624, %v6630_v31   ;;  %7095 = vrcp.f32 %v9279_v6  ;;  %v4904_v29 = vmul.f32 %v9253_v30, %v4603_v14 }
0x2fc7   :  { %v7088_v57 = vpop.eup %7087  ;;  %7097 = vrcp.f32 %v4454_v20 }
0x2fc8   :  { %v4447_v27 = vpop.permute.xlu0 %4446  ;;  %v4605_v41 = vmul.f32 %v7088_v57, %v9002_v47 }
0x2fc9   :  { %7099 = vrcp.f32 %v4447_v27  ;;  %v9553_v27 = vld [vmem:[#allocation18_spill] sm:$0xff] }
0x2fca   :  { %7101 = vrcp.f32 %v9271_v0  ;;  %v4905_v38 = vmul.f32 %v9243_v22, %v4605_v41  ;;  %v4850_v22 = vpop.permute.xlu1 %4849  ;;  %vm4930_vm13 = vcmp.ge.s32.totalorder %v9553_v27, 1  ;;  %v9554_v41 = vld [vmem:[#allocation19_spill] sm:$0xff] }
0x2fcb   :  { %v7090_v2 = vpop.eup %7089  ;;  %7103 = vrcp.f32 %v4465_v23  ;;  %vm4932_vm14 = vcmp.le.s32.totalorder %v9553_v27, %v9554_v41 }
0x2fcc   :  { %v4458_v25 = vpop.permute.xlu0 %4457  ;;  %v6635_v33 = vpack.i.bf16 %v4905_v38, %v4904_v29  ;;  %v7092_v50 = vpop.eup %7091  ;;  %v4607_v6 = vmul.f32 %v7090_v2, %v9010_v19  ;;  %vm4934_vm15 = vmand %vm4930_vm13, %vm4932_vm14  ;;  %v9555_v29 = vmov 0.0  }
0x2fcd   :  { %7105 = vrcp.f32 %v4458_v25  ;;  %v4611_v13 = vmul.f32 %v7092_v50, %v9022_v63  ;;  %v5869_v38 = vsel %vm4934_vm15, 1.0, %v9555_v29 }
0x2fce   :  { %6636 = vperm.xlu0 %6624, %v6635_v33   ;;  %7107 = vrcp.f32 %v9285_v15  ;;  %v4906_v35 = vmul.f32 %v9259_v5, %v4607_v6  ;;  %v9546_v5 = vld [vmem:[#allocation27_spill] sm:$0xff]  ;;  %v4773_v63 = vpop.permute.xlu1 %4772  ;;  %6348 = vmatprep.mubr.msk.f32.mxu1 %vm4298_vm10, %v5869_v38 }
0x2fcf   :  { %v7094_v3 = vpop.eup %7093  ;;  %v4908_v10 = vmul.f32 %v9261_v18, %v4611_v13 }
0x2fd0   :  { %v4469_v47 = vpop.permute.xlu0 %4468  ;;  %v4609_v0 = vmul.f32 %v7094_v3, %v9016_v52  ;;  %v7096_v40 = vpop.eup %7095 }
0x2fd1   :  { %7109 = vrcp.f32 %v4469_v47  ;;  %v7098_v30 = vpop.eup %7097  ;;  %v4647_v51 = vmul.f32 %v7096_v40, %v9546_v5 }
0x2fd2   :  { %7111 = vrcp.f32 %v9276_v7  ;;  %v4907_v16 = vmul.f32 %v9249_v58, %v4609_v0  ;;  %v4615_v52 = vmul.f32 %v7098_v30, %v9032_v9  ;;  %v9547_v58 = vld [vmem:[#allocation28_spill] sm:$0xff]  ;;  %v9549_v9 = vld [vmem:[#allocation25_spill] sm:$0xff]  ;;  %v4861_v46 = vpop.permute.xlu1 %4860 }
0x2fd3   :  { %v7100_v17 = vpop.eup %7099  ;;  %v4926_v54 = vmul.f32 %v4850_v22, %v4647_v51 }
0x2fd4   :  { %v7102_v19 = vpop.eup %7101  ;;  %v4766_v36 = vpop.permute.xlu0 %4765  ;;  %v6640_v61 = vpack.i.bf16 %v4907_v16, %v4906_v35  ;;  %v4613_v15 = vmul.f32 %v7100_v17, %v9028_v43  ;;  %v4910_v34 = vmul.f32 %v4762_v56, %v4615_v52  ;;  %v9556_v17 = vld [vmem:[#allocation23_spill] sm:$0xff] }
0x2fd5   :  { %v7104_v59 = vpop.eup %7103  ;;  %v4649_v21 = vmul.f32 %v7102_v19, %v9547_v58 }
0x2fd6   :  { %6641 = vperm.xlu0 %6624, %v6640_v61   ;;  %v4909_v7 = vmul.f32 %v9255_v39, %v4613_v15  ;;  %v4619_v44 = vmul.f32 %v7104_v59, %v9549_v9 }
0x2fd7   :  { %v7106_v24 = vpop.eup %7105 }
0x2fd8   :  { %v4617_v28 = vmul.f32 %v7106_v24, %v9548_v55  ;;  %v4854_v11 = vpop.permute.xlu0 %4853  ;;  %v6645_v53 = vpack.i.bf16 %v4909_v7, %v4908_v10  ;;  %v7108_v26 = vpop.eup %7107  ;;  %v4912_v20 = vmul.f32 %v4773_v63, %v4619_v44 }
0x2fd9   :  { %v4927_v43 = vmul.f32 %v4854_v11, %v4649_v21  ;;  %v4651_v48 = vmul.f32 %v7108_v26, %v9551_v62 }
0x2fda   :  { %v4911_v4 = vmul.f32 %v4766_v36, %v4617_v28  ;;  %6646 = vperm.xlu0 %6624, %v6645_v53   ;;  %v9557_v36 = vld [vmem:[#allocation22_spill] sm:$0xff] }
0x2fdb   :  { %v7110_v18 = vpop.eup %7109  ;;  %v6619_v39 = vpack.i.bf16 %v4927_v43, %v4926_v54  ;;  %v4928_v23 = vmul.f32 %v4861_v46, %v4651_v48 }
0x2fdc   :  { %v7112_v12 = vpop.eup %7111  ;;  %v6650_v37 = vpack.i.bf16 %v4911_v4, %v4910_v34  ;;  %v4621_v42 = vmul.f32 %v7110_v18, %v9550_v60  ;;  %v4777_v8 = vpop.permute.xlu0 %4776 }
0x2fdd   :  { %6620 = vperm.xlu1 %6583, %v6619_v39   ;;  %v4653_v49 = vmul.f32 %v7112_v12, %v9552_v32 }
0x2fde   :  { %v4913_v1 = vmul.f32 %v4777_v8, %v4621_v42  ;;  %6651 = vperm.xlu0 %6624, %v6650_v37  }
0x2fe0   :  { %v6655_v45 = vpack.i.bf16 %v4913_v1, %v4912_v20  ;;  %v4865_v31 = vpop.permute.xlu0 %4864 }
0x2fe1   :  { %v4929_v14 = vmul.f32 %v4865_v31, %v4653_v49 }
0x2fe2   :  { %6656 = vperm.xlu0 %6624, %v6655_v45  }
0x2fe3   :  { %v6660_v57 = vpack.i.bf16 %v4929_v14, %v4928_v23 }
0x2fe5   :  { %6661 = vperm.xlu1 %6583, %v6660_v57  }
0x3009   :  { %v6586_v2 = vpop.permute.xlu1 %6585 }
0x300a   :  { %v6588_v22 = vunpack.i.h.bf16 %v6586_v2  ;;  %v6587_v35 = vunpack.i.l.bf16 %v6586_v2 }
0x300c   :  { %v5147_v10 = vrot.slane %v6588_v22, %v9556_v17  ;;  %v5143_v7 = vrot.slane %v6587_v35, %v9557_v36 }
0x300e   :  { %v5148_v11 = vsel %vm4145_vm11, %v5147_v10, %v5143_v7 }
0x3011   :  { %v6591_v56 = vpop.permute.xlu1 %6590 }
0x3012   :  { %v6593_v6 = vunpack.i.h.bf16 %v6591_v56  ;;  %v6592_v3 = vunpack.i.l.bf16 %v6591_v56 }
0x3014   :  { %v5156_v19 = vrot.slane %v6593_v6, %v9556_v17  ;;  %v5152_v61 = vrot.slane %v6592_v3, %v9557_v36 }
0x3016   :  { %v5157_v58 = vsel %vm4145_vm11, %v5156_v19, %v5152_v61 }
0x3017   :  { %v5219_v54 = vsel %vm397_vm0, %v5157_v58, %v5148_v11 }
0x3019   :  { %v6596_v25 = vpop.permute.xlu1 %6595 }
0x301a   :  { %v6598_v47 = vunpack.i.h.bf16 %v6596_v25  ;;  %v6597_v0 = vunpack.i.l.bf16 %v6596_v25 }
0x301c   :  { %v5165_v15 = vrot.slane %v6598_v47, %v9556_v17  ;;  %v5161_v59 = vrot.slane %v6597_v0, %v9557_v36 }
0x301e   :  { %v5166_v21 = vsel %vm4145_vm11, %v5165_v15, %v5161_v59 }
0x301f   :  { %v5220_v9 = vsel %vm399_vm1, %v5166_v21, %v5219_v54 }
0x3021   :  { %v6601_v33 = vpop.permute.xlu1 %6600 }
0x3022   :  { %v6603_v16 = vunpack.i.h.bf16 %v6601_v33  ;;  %v6602_v13 = vunpack.i.l.bf16 %v6601_v33 }
0x3024   :  { %v5174_v24 = vrot.slane %v6603_v16, %v9556_v17  ;;  %v5170_v5 = vrot.slane %v6602_v13, %v9557_v36 }
0x3025   :  { %v6606_v40 = vpop.permute.xlu1 %6605 }
0x3026   :  { %v6608_v63 = vunpack.i.h.bf16 %v6606_v40  ;;  %v6607_v55 = vunpack.i.l.bf16 %v6606_v40  ;;  %v5175_v53 = vsel %vm4145_vm11, %v5174_v24, %v5170_v5 }
0x3027   :  { %v5221_v18 = vsel %vm401_vm2, %v5175_v53, %v5220_v9 }
0x3028   :  { %v5183_v39 = vrot.slane %v6608_v63, %v9556_v17  ;;  %v5179_v12 = vrot.slane %v6607_v55, %v9557_v36 }
0x3029   :  { %v6611_v51 = vpop.permute.xlu1 %6610 }
0x302a   :  { %v6613_v60 = vunpack.i.h.bf16 %v6611_v51  ;;  %v6612_v42 = vunpack.i.l.bf16 %v6611_v51  ;;  %v5184_v24 = vsel %vm4145_vm11, %v5183_v39, %v5179_v12 }
0x302c   :  { %v5192_v56 = vrot.slane %v6613_v60, %v9556_v17  ;;  %v5188_v25 = vrot.slane %v6612_v42, %v9557_v36 }
0x302e   :  { %v5193_v5 = vsel %vm4145_vm11, %v5192_v56, %v5188_v25 }
0x3039   :  { %v6616_v43 = vpop.permute.xlu1 %6615 }
0x303a   :  { %v6618_v8 = vunpack.i.h.bf16 %v6616_v43  ;;  %v6617_v20 = vunpack.i.l.bf16 %v6616_v43 }
0x303c   :  { %v5075_v6 = vrot.slane %v6618_v8, %v9556_v17  ;;  %v5071_v3 = vrot.slane %v6617_v20, %v9557_v36 }
0x303e   :  { %v5076_v51 = vsel %vm4145_vm11, %v5075_v6, %v5071_v3  ;;  %v9564_v6 = vld [vmem:[#allocation35_spill] sm:$0xff] }
0x3041   :  { %v6627_v50 = vpop.permute.xlu0 %6626 }
0x3042   :  { %v6629_v26 = vunpack.i.h.bf16 %v6627_v50  ;;  %v6628_v34 = vunpack.i.l.bf16 %v6627_v50 }
0x3044   :  { %v5084_v46 = vrot.slane %v6629_v26, %v9556_v17  ;;  %v5080_v1 = vrot.slane %v6628_v34, %v9557_v36  ;;  %v5222_v34 = vsel %vm403_vm3, %v5184_v24, %v5221_v18 }
0x3045   :  { %v6632_v30 = vpop.permute.xlu0 %6631  ;;  %v5223_v8 = vsel %vm405_vm4, %v5193_v5, %v5222_v34  ;;  %v7117_v34 = vld [vmem:[#allocation3 + $0x8] sm:$0xff] }
0x3046   :  { %v6634_v44 = vunpack.i.h.bf16 %v6632_v30  ;;  %v6633_v4 = vunpack.i.l.bf16 %v6632_v30  ;;  %v5085_v40 = vsel %vm4145_vm11, %v5084_v46, %v5080_v1 }
0x3047   :  { %v5212_v21 = vsel %vm397_vm0, %v5085_v40, %v5076_v51  ;;  %v9566_v40 = vld [vmem:[#allocation37_spill] sm:$0xff] }
0x3048   :  { %v5093_v32 = vrot.slane %v6634_v44, %v9556_v17  ;;  %v5089_v49 = vrot.slane %v6633_v4, %v9557_v36 }
0x304a   :  { %v5094_v30 = vsel %vm4145_vm11, %v5093_v32, %v5089_v49  ;;  %v9559_v49 = vld [vmem:[#allocation30_spill] sm:$0xff] }
0x304b   :  { %v5213_v53 = vsel %vm399_vm1, %v5094_v30, %v5212_v21 }
0x304d   :  { %v6637_v52 = vpop.permute.xlu0 %6636 }
0x304e   :  { %v6639_v62 = vunpack.i.h.bf16 %v6637_v52  ;;  %v6638_v48 = vunpack.i.l.bf16 %v6637_v52 }
0x3050   :  { %v5102_v47 = vrot.slane %v6639_v62, %v9556_v17  ;;  %v5098_v0 = vrot.slane %v6638_v48, %v9557_v36 }
0x3052   :  { %v5103_v58 = vsel %vm4145_vm11, %v5102_v47, %v5098_v0  ;;  %v9565_v47 = vld [vmem:[#allocation36_spill] sm:$0xff] }
0x3053   :  { %v5214_v9 = vsel %vm401_vm2, %v5103_v58, %v5213_v53  ;;  %v7115_v53 = vld [vmem:[#allocation3 + $0x18] sm:$0xff] }
0x3055   :  { %v6642_v28 = vpop.permute.xlu0 %6641 }
0x3056   :  { %v6644_v45 = vunpack.i.h.bf16 %v6642_v28  ;;  %v6643_v31 = vunpack.i.l.bf16 %v6642_v28 }
0x3058   :  { %v5111_v22 = vrot.slane %v6644_v45, %v9556_v17  ;;  %v5107_v35 = vrot.slane %v6643_v31, %v9557_v36 }
0x3059   :  { %v6647_v37 = vpop.permute.xlu0 %6646 }
0x305a   :  { %v6649_v14 = vunpack.i.h.bf16 %v6647_v37  ;;  %v6648_v57 = vunpack.i.l.bf16 %v6647_v37  ;;  %v5112_v63 = vsel %vm4145_vm11, %v5111_v22, %v5107_v35 }
0x305b   :  { %v5215_v39 = vsel %vm403_vm3, %v5112_v63, %v5214_v9 }
0x305c   :  { %v6621_v23 = vpop.permute.xlu1 %6620  ;;  %v5120_v16 = vrot.slane %v6649_v14, %v9556_v17  ;;  %v5116_v13 = vrot.slane %v6648_v57, %v9557_v36  ;;  %v9561_v57 = vld [vmem:[#allocation32_spill] sm:$0xff] }
0x305d   :  { %v6623_v27 = vunpack.i.h.bf16 %v6621_v23  ;;  %v6622_v38 = vunpack.i.l.bf16 %v6621_v23  ;;  %v6652_v2 = vpop.permute.xlu0 %6651  ;;  %v9560_v23 = vld [vmem:[#allocation31_spill] sm:$0xff] }
0x305e   :  { %v6654_v33 = vunpack.i.h.bf16 %v6652_v2  ;;  %v6653_v50 = vunpack.i.l.bf16 %v6652_v2  ;;  %v5121_v54 = vsel %vm4145_vm11, %v5120_v16, %v5116_v13 }
0x305f   :  { %v5201_v19 = vrot.slane %v6623_v27, %v9556_v17  ;;  %v5197_v61 = vrot.slane %v6622_v38, %v9557_v36  ;;  %v5216_v42 = vsel %vm405_vm4, %v5121_v54, %v5215_v39  ;;  %v7119_v39 = vld [vmem:[#allocation3 + $0x28] sm:$0xff] }
0x3060   :  { %v5129_v59 = vrot.slane %v6654_v33, %v9556_v17  ;;  %v5125_v52 = vrot.slane %v6653_v50, %v9557_v36  ;;  %v9563_v33 = vld [vmem:[#allocation34_spill] sm:$0xff] }
0x3061   :  { %v6657_v15 = vpop.permute.xlu0 %6656  ;;  %v5202_v44 = vsel %vm4145_vm11, %v5201_v19, %v5197_v61 }
0x3062   :  { %v6659_v10 = vunpack.i.h.bf16 %v6657_v15  ;;  %v6658_v7 = vunpack.i.l.bf16 %v6657_v15  ;;  %v5130_v4 = vsel %vm4145_vm11, %v5129_v59, %v5125_v52  ;;  %v5224_v46 = vsel %vm407_vm5, %v5202_v44, %v5223_v8  ;;  %v7118_v44 = vld [vmem:[#allocation3] sm:$0xff] }
0x3063   :  { %v5217_v20 = vsel %vm407_vm5, %v5130_v4, %v5216_v42 }
0x3064   :  { %v5138_v55 = vrot.slane %v6659_v10, %v9556_v17  ;;  %v5134_v28 = vrot.slane %v6658_v7, %v9557_v36  ;;  %v6662_v11 = vpop.permute.xlu1 %6661 }
0x3065   :  { %v6664_v43 = vunpack.i.h.bf16 %v6662_v11  ;;  %v6663_v26 = vunpack.i.l.bf16 %v6662_v11 }
0x3066   :  { %v5139_v60 = vsel %vm4145_vm11, %v5138_v55, %v5134_v28 }
0x3067   :  { %v5210_v12 = vrot.slane %v6664_v43, %v9556_v17  ;;  %v5206_v37 = vrot.slane %v6663_v26, %v9557_v36  ;;  %v5218_v1 = vsel %vm409_vm6, %v5139_v60, %v5217_v20  ;;  %v9558_v17 = vld [vmem:[#allocation29_spill] sm:$0xff]  ;;  %v7116_v43 = vld [vmem:[#allocation3 + $0x10] sm:$0xff] }
0x3068   :  { %vm4933_vm0 = vcmp.le.s32.totalorder %v9558_v17, %v9554_v41  ;;  %v9562_v41 = vld [vmem:[#allocation33_spill] sm:$0xff] }
0x3069   :  { %v5211_v18 = vsel %vm4145_vm11, %v5210_v12, %v5206_v37  ;;  %v5870_v36 = vsel %vm4933_vm0, 1.0, %v9555_v29  ;;  %v7120_v37 = vld [vmem:[#allocation3 + $0x20] sm:$0xff] }
0x306a   :  { %v5225_v62 = vsel %vm409_vm6, %v5211_v18, %v5224_v46  ;;  %v7121_v46 = vld [vmem:[#allocation3 + $0x38] sm:$0xff] }
0x306b   :  { %v6499_v48 = vpack.c.bf16 %v5225_v62, %v5218_v1  ;;  %v7122_v62 = vld [vmem:[#allocation3 + $0x30] sm:$0xff] }
0x306d   :  { %6500 = vmatprep.subr.bf16.mxu1 %v6499_v48 }
0x306e   :  { %6502 = vmatpush3.bf16.msra.mxu1 %v6499_v48 }
0x3071   :  { %6349 = vmatmul.mubr.msk.f32.vlgmr.msra.gmra.mrb[62].mxu1 %vm4298_vm10, %v5870_v36 }
0x3144   :  { %v6350_v32 = vpop.f32.mrb[62].mxu1 }
0x3145   :  { %v5400_v45 = vrot.slane %v6350_v32, %v9559_v49  ;;  %v5300_v31 = vpop.f32.mrb[63].mxu1  ;;  %v5411_v14 = vrot.slane %v6350_v32, %v9560_v23  ;;  %v5422_v27 = vrot.slane %v6350_v32, %v9561_v57  ;;  %v5433_v38 = vrot.slane %v6350_v32, %v9562_v41 }
0x3146   :  { %v5312_v29 = vrot.slane %v5300_v31, %v9559_v49  ;;  %v5323_v2 = vrot.slane %v5300_v31, %v9560_v23  ;;  %v5334_v56 = vrot.slane %v5300_v31, %v9561_v57  ;;  %v5345_v25 = vrot.slane %v5300_v31, %v9562_v41  ;;  %v7124_v23 = vld [vmem:[#allocation3 + $0x40] sm:$0xff] }
0x3147   :  { %5406 = vbcast.lane.b32.xlu1 %v5400_v45, 264  ;;  %5402 = vbcast.lane.b32.xlu0 %v5400_v45, 256  ;;  %v5356_v50 = vrot.slane %v5300_v31, %v9563_v33  ;;  %v5367_v3 = vrot.slane %v5300_v31, %v9564_v6  ;;  %v5378_v0 = vrot.slane %v5300_v31, %v9565_v47  ;;  %v7123_v45 = vld [vmem:[#allocation3 + $0x48] sm:$0xff] }
0x3148   :  { %v5389_v30 = vrot.slane %v5300_v31, %v9566_v40  ;;  %v5444_v22 = vrot.slane %v6350_v32, %v9563_v33  ;;  %v5455_v35 = vrot.slane %v6350_v32, %v9564_v6  ;;  %v5466_v16 = vrot.slane %v6350_v32, %v9565_v47  ;;  %v7126_v33 = vld [vmem:[#allocation3 + $0x50] sm:$0xff] }
0x3149   :  { %v5477_v13 = vrot.slane %v6350_v32, %v9566_v40 }
0x314b   :  { %5417 = vbcast.lane.b32.xlu1 %v5411_v14, 264  ;;  %5413 = vbcast.lane.b32.xlu0 %v5411_v14, 256 }
0x314f   :  { %5428 = vbcast.lane.b32.xlu1 %v5422_v27, 264  ;;  %5424 = vbcast.lane.b32.xlu0 %v5422_v27, 256 }
0x3153   :  { %5439 = vbcast.lane.b32.xlu1 %v5433_v38, 264  ;;  %5435 = vbcast.lane.b32.xlu0 %v5433_v38, 256 }
0x3157   :  { %5318 = vbcast.lane.b32.xlu1 %v5312_v29, 264  ;;  %5314 = vbcast.lane.b32.xlu0 %v5312_v29, 256 }
0x315b   :  { %5329 = vbcast.lane.b32.xlu1 %v5323_v2, 264  ;;  %5325 = vbcast.lane.b32.xlu0 %v5323_v2, 256 }
0x315f   :  { %5340 = vbcast.lane.b32.xlu1 %v5334_v56, 264  ;;  %5336 = vbcast.lane.b32.xlu0 %v5334_v56, 256  ;;  %v7125_v56 = vld [vmem:[#allocation3 + $0x58] sm:$0xff] }
0x3163   :  { %5351 = vbcast.lane.b32.xlu1 %v5345_v25, 264  ;;  %5347 = vbcast.lane.b32.xlu0 %v5345_v25, 256 }
0x3167   :  { %5362 = vbcast.lane.b32.xlu1 %v5356_v50, 264  ;;  %5358 = vbcast.lane.b32.xlu0 %v5356_v50, 256 }
0x316b   :  { %5373 = vbcast.lane.b32.xlu1 %v5367_v3, 264  ;;  %5369 = vbcast.lane.b32.xlu0 %v5367_v3, 256 }
0x316f   :  { %5384 = vbcast.lane.b32.xlu1 %v5378_v0, 264  ;;  %5380 = vbcast.lane.b32.xlu0 %v5378_v0, 256 }
0x3173   :  { %5395 = vbcast.lane.b32.xlu1 %v5389_v30, 264  ;;  %5391 = vbcast.lane.b32.xlu0 %v5389_v30, 256 }
0x3177   :  { %5450 = vbcast.lane.b32.xlu1 %v5444_v22, 264  ;;  %5446 = vbcast.lane.b32.xlu0 %v5444_v22, 256 }
0x317b   :  { %5461 = vbcast.lane.b32.xlu1 %v5455_v35, 264  ;;  %5457 = vbcast.lane.b32.xlu0 %v5455_v35, 256 }
0x317f   :  { %5472 = vbcast.lane.b32.xlu1 %v5466_v16, 264  ;;  %5468 = vbcast.lane.b32.xlu0 %v5466_v16, 256 }
0x3183   :  { %5483 = vbcast.lane.b32.xlu1 %v5477_v13, 264  ;;  %5479 = vbcast.lane.b32.xlu0 %v5477_v13, 256 }
0x31b9   :  { %v9410_v19 = vpop.permute.xlu1 %5406  ;;  %v9412_v61 = vpop.permute.xlu0 %5402 }
0x31bd   :  { %v9414_v15 = vpop.permute.xlu1 %5417  ;;  %v9416_v59 = vpop.permute.xlu0 %5413 }
0x31c1   :  { %v9418_v52 = vpop.permute.xlu1 %5428  ;;  %v9420_v10 = vpop.permute.xlu0 %5424 }
0x31c5   :  { %v9422_v7 = vpop.permute.xlu1 %5439  ;;  %v9424_v24 = vpop.permute.xlu0 %5435 }
0x31c9   :  { %v5319_v5 = vpop.permute.xlu1 %5318  ;;  %v5315_v51 = vpop.permute.xlu0 %5314 }
0x31ca   :  { %v5486_v9 = vmul.f32 %v7117_v34, %v5319_v5  ;;  %v5485_v4 = vmul.f32 %v7118_v44, %v5315_v51  ;;  %v7127_v5 = vld [vmem:[#allocation3 + $0x68] sm:$0xff]  ;;  %v7130_v44 = vld [vmem:[#allocation3 + $0x80] sm:$0xff] }
0x31cb   :  { %v7129_v34 = vld [vmem:[#allocation3 + $0x88] sm:$0xff] }
0x31cc   :  { %v5548_v17 = vsel %vm824_vm7, %v5486_v9, 0.0  ;;  %v5517_v36 = vsel %vm824_vm7, %v5485_v4, 0.0  ;;  %v5502_v9 = vmul.f32 %v7129_v34, %v9410_v19  ;;  %v5501_v4 = vmul.f32 %v7130_v44, %v9412_v61 }
0x31cd   :  { %v5330_v58 = vpop.permute.xlu1 %5329  ;;  %v5326_v21 = vpop.permute.xlu0 %5325 }
0x31ce   :  { %v5488_v54 = vmul.f32 %v7115_v53, %v5330_v58  ;;  %v5487_v26 = vmul.f32 %v7116_v43, %v5326_v21  ;;  %v7128_v58 = vld [vmem:[#allocation3 + $0x60] sm:$0xff] }
0x31d0   :  { %v5549_v18 = vsel %vm824_vm7, %v5488_v54, 0.0  ;;  %v5518_v20 = vsel %vm824_vm7, %v5487_v26, 0.0 }
0x31d1   :  { %v5341_v63 = vpop.permute.xlu1 %5340  ;;  %v5337_v55 = vpop.permute.xlu0 %5336  ;;  %v5550_v57 = vadd.f32 %v5549_v18, %v5548_v17  ;;  %v5519_v27 = vadd.f32 %v5518_v20, %v5517_v36  ;;  %v7133_v18 = vld [vmem:[#allocation3 + $0x98] sm:$0xff] }
0x31d2   :  { %v5490_v12 = vmul.f32 %v7119_v39, %v5341_v63  ;;  %v5489_v60 = vmul.f32 %v7120_v37, %v5337_v55  ;;  %v7131_v39 = vld [vmem:[#allocation3 + $0x78] sm:$0xff]  ;;  %v7132_v37 = vld [vmem:[#allocation3 + $0x70] sm:$0xff]  ;;  %v5504_v20 = vmul.f32 %v7133_v18, %v9414_v15 }
0x31d3   :  { %v7146_v18 = vld [vmem:[#allocation3 + $0xf0] sm:$0xff] }
0x31d4   :  { %v5551_v32 = vsel %vm824_vm7, %v5490_v12, 0.0  ;;  %v5520_v49 = vsel %vm824_vm7, %v5489_v60, 0.0 }
0x31d5   :  { %v5352_v28 = vpop.permute.xlu1 %5351  ;;  %v5348_v11 = vpop.permute.xlu0 %5347  ;;  %v5552_v6 = vadd.f32 %v5551_v32, %v5550_v57  ;;  %v5521_v3 = vadd.f32 %v5520_v49, %v5519_v27  ;;  %v5563_v32 = vsel %vm824_vm7, %v5502_v9, 0.0  ;;  %v5532_v49 = vsel %vm824_vm7, %v5501_v4, 0.0 }
0x31d6   :  { %v5492_v1 = vmul.f32 %v7121_v46, %v5352_v28  ;;  %v5491_v48 = vmul.f32 %v7122_v62, %v5348_v11  ;;  %v7134_v46 = vld [vmem:[#allocation3 + $0x90] sm:$0xff]  ;;  %v5565_v57 = vsel %vm824_vm7, %v5504_v20, 0.0 }
0x31d8   :  { %v5553_v29 = vsel %vm824_vm7, %v5492_v1, 0.0  ;;  %v5522_v2 = vsel %vm824_vm7, %v5491_v48, 0.0  ;;  %v5503_v1 = vmul.f32 %v7134_v46, %v9416_v59 }
0x31d9   :  { %v5363_v42 = vpop.permute.xlu1 %5362  ;;  %v5359_v8 = vpop.permute.xlu0 %5358  ;;  %v5554_v40 = vadd.f32 %v5553_v29, %v5552_v6  ;;  %v5523_v30 = vadd.f32 %v5522_v2, %v5521_v3  ;;  %v7138_v29 = vld [vmem:[#allocation3 + $0xb0] sm:$0xff]  ;;  %v7139_v6 = vld [vmem:[#allocation3 + $0xc8] sm:$0xff] }
0x31da   :  { %v5494_v31 = vmul.f32 %v7123_v45, %v5363_v42  ;;  %v5493_v14 = vmul.f32 %v7124_v23, %v5359_v8  ;;  %v7135_v45 = vld [vmem:[#allocation3 + $0xa8] sm:$0xff]  ;;  %v7136_v23 = vld [vmem:[#allocation3 + $0xa0] sm:$0xff]  ;;  %v5534_v27 = vsel %vm824_vm7, %v5503_v1, 0.0  ;;  %v5507_v2 = vmul.f32 %v7138_v29, %v9424_v24 }
0x31db   :  { %v5505_v15 = vmul.f32 %v7136_v23, %v9420_v10 }
0x31dc   :  { %v5555_v47 = vsel %vm824_vm7, %v5494_v31, 0.0  ;;  %v5524_v0 = vsel %vm824_vm7, %v5493_v14, 0.0  ;;  %v5506_v31 = vmul.f32 %v7135_v45, %v9418_v52 }
0x31dd   :  { %v5374_v41 = vpop.permute.xlu1 %5373  ;;  %v5370_v38 = vpop.permute.xlu0 %5369  ;;  %v5556_v63 = vadd.f32 %v5555_v47, %v5554_v40  ;;  %v5525_v55 = vadd.f32 %v5524_v0, %v5523_v30  ;;  %v5536_v10 = vsel %vm824_vm7, %v5505_v15, 0.0  ;;  %v7140_v47 = vld [vmem:[#allocation3 + $0xc0] sm:$0xff] }
0x31de   :  { %v5496_v25 = vmul.f32 %v7125_v56, %v5374_v41  ;;  %v5495_v50 = vmul.f32 %v7126_v33, %v5370_v38  ;;  %v7137_v41 = vld [vmem:[#allocation3 + $0xb8] sm:$0xff]  ;;  %v5567_v52 = vsel %vm824_vm7, %v5506_v31, 0.0 }
0x31df   :  { %v5508_v38 = vmul.f32 %v7137_v41, %v9422_v7  ;;  %v5538_v7 = vsel %vm824_vm7, %v5507_v2, 0.0 }
0x31e0   :  { %v5557_v16 = vsel %vm824_vm7, %v5496_v25, 0.0  ;;  %v5526_v13 = vsel %vm824_vm7, %v5495_v50, 0.0 }
0x31e1   :  { %v5385_v22 = vpop.permute.xlu1 %5384  ;;  %v5381_v35 = vpop.permute.xlu0 %5380  ;;  %v5558_v53 = vadd.f32 %v5557_v16, %v5556_v63  ;;  %v5527_v54 = vadd.f32 %v5526_v13, %v5525_v55  ;;  %v7142_v16 = vld [vmem:[#allocation3 + $0xd0] sm:$0xff] }
0x31e2   :  { %v5498_v51 = vmul.f32 %v7127_v5, %v5385_v22  ;;  %v5497_v21 = vmul.f32 %v7128_v58, %v5381_v35  ;;  %v5569_v22 = vsel %vm824_vm7, %v5508_v38, 0.0  ;;  %v7141_v35 = vld [vmem:[#allocation3 + $0xd8] sm:$0xff] }
0x31e4   :  { %v5559_v28 = vsel %vm824_vm7, %v5498_v51, 0.0  ;;  %v5528_v11 = vsel %vm824_vm7, %v5497_v21, 0.0 }
0x31e5   :  { %v5396_v43 = vpop.permute.xlu1 %5395  ;;  %v5392_v26 = vpop.permute.xlu0 %5391  ;;  %v5560_v42 = vadd.f32 %v5559_v28, %v5558_v53  ;;  %v5529_v8 = vadd.f32 %v5528_v11, %v5527_v54  ;;  %v7143_v28 = vld [vmem:[#allocation3 + $0xe8] sm:$0xff]  ;;  %v7144_v53 = vld [vmem:[#allocation3 + $0xe0] sm:$0xff] }
0x31e6   :  { %v5500_v12 = vmul.f32 %v7131_v39, %v5396_v43  ;;  %v5499_v60 = vmul.f32 %v7132_v37, %v5392_v26 }
0x31e8   :  { %v5561_v62 = vsel %vm824_vm7, %v5500_v12, 0.0  ;;  %v5530_v48 = vsel %vm824_vm7, %v5499_v60, 0.0 }
0x31e9   :  { %v5562_v19 = vadd.f32 %v5561_v62, %v5560_v42  ;;  %v5531_v17 = vadd.f32 %v5530_v48, %v5529_v8  ;;  %v5451_v36 = vpop.permute.xlu1 %5450  ;;  %v5447_v61 = vpop.permute.xlu0 %5446  ;;  %v7145_v42 = vld [vmem:[#allocation3 + $0xf8] sm:$0xff] }
0x31ea   :  { %v5510_v3 = vmul.f32 %v7139_v6, %v5451_v36  ;;  %v5509_v0 = vmul.f32 %v7140_v47, %v5447_v61 }
0x31eb   :  { %v5564_v14 = vadd.f32 %v5563_v32, %v5562_v19  ;;  %v5533_v59 = vadd.f32 %v5532_v49, %v5531_v17 }
0x31ec   :  { %v5571_v63 = vsel %vm824_vm7, %v5510_v3, 0.0  ;;  %v5540_v55 = vsel %vm824_vm7, %v5509_v0, 0.0 }
0x31ed   :  { %v5566_v56 = vadd.f32 %v5565_v57, %v5564_v14  ;;  %v5535_v25 = vadd.f32 %v5534_v27, %v5533_v59  ;;  %v5462_v33 = vpop.permute.xlu1 %5461  ;;  %v5458_v50 = vpop.permute.xlu0 %5457 }
0x31ee   :  { %v5512_v24 = vmul.f32 %v7141_v35, %v5462_v33  ;;  %v5511_v13 = vmul.f32 %v7142_v16, %v5458_v50 }
0x31ef   :  { %v5568_v40 = vadd.f32 %v5567_v52, %v5566_v56  ;;  %v5537_v30 = vadd.f32 %v5536_v10, %v5535_v25 }
0x31f0   :  { %v5573_v34 = vsel %vm824_vm7, %v5512_v24, 0.0  ;;  %v5542_v9 = vsel %vm824_vm7, %v5511_v13, 0.0 }
0x31f1   :  { %v5570_v5 = vadd.f32 %v5569_v22, %v5568_v40  ;;  %v5539_v51 = vadd.f32 %v5538_v7, %v5537_v30  ;;  %v5473_v58 = vpop.permute.xlu1 %5472  ;;  %v5469_v21 = vpop.permute.xlu0 %5468 }
0x31f2   :  { %v5514_v11 = vmul.f32 %v7143_v28, %v5473_v58  ;;  %v5513_v54 = vmul.f32 %v7144_v53, %v5469_v21 }
0x31f3   :  { %v5572_v43 = vadd.f32 %v5571_v63, %v5570_v5  ;;  %v5541_v26 = vadd.f32 %v5540_v55, %v5539_v51 }
0x31f4   :  { %v5575_v37 = vsel %vm824_vm7, %v5514_v11, 0.0  ;;  %v5544_v60 = vsel %vm824_vm7, %v5513_v54, 0.0 }
0x31f5   :  { %v5574_v44 = vadd.f32 %v5573_v34, %v5572_v43  ;;  %v5543_v4 = vadd.f32 %v5542_v9, %v5541_v26  ;;  %v5484_v39 = vpop.permute.xlu1 %5483  ;;  %v5480_v12 = vpop.permute.xlu0 %5479 }
0x31f6   :  { %v5516_v8 = vmul.f32 %v7145_v42, %v5484_v39  ;;  %v5515_v20 = vmul.f32 %v7146_v18, %v5480_v12 }
0x31f7   :  { %v5576_v46 = vadd.f32 %v5575_v37, %v5574_v44  ;;  %v5545_v1 = vadd.f32 %v5544_v60, %v5543_v4 }
0x31f8   :  { %v5577_v62 = vsel %vm824_vm7, %v5516_v8, 0.0  ;;  %v5546_v48 = vsel %vm824_vm7, %v5515_v20, 0.0 }
0x31f9   :  { %v5578_v19 = vadd.f32 %v5577_v62, %v5576_v46  ;;  %v5547_v17 = vadd.f32 %v5546_v48, %v5545_v1 }
0x31fb   :  { %5580 = vst.msk [vmem:[#allocation13 + $0x8] sm:$0xff] %vm824_vm7, %v5578_v19  ;;  %5579 = vst.msk [vmem:[#allocation13] sm:$0xff] %vm824_vm7, %v5547_v17 }
0x31fc   :  { %7268 = shalt.err (!%p7265_p2)
}
0x31fd   :  { %s7269_s11 = scalar_lea.hbm %s9491_s8, 256 }
0x31fe   :  { %p7270_p3 = scmp.ne.s32.totalorder %s9491_s8, %s7269_s11  ;;  %p7273_p4 = scmp.lt.u32.totalorder %s7269_s11, %s9491_s8 }
0x3200   :  { %p7275_p5 = pnand %p7273_p4, %p7270_p3 }
0x3202   :  { %7278 = shalt.err (!%p7275_p5)
}
0x3203   :  { %5592 = dma.vmem_to_hbm [thread:$0]  %s5587_s28, 256, %s9491_s8, [#allocation6], %s7289_s17, %s7289_s17, %s7290_s18  }
0x3204   :  { %7285 = dma.done.wait [#allocation6], 256  }
0x3205   :  { %7286 = vsyncadd [#allocation6], 4294967040 }
0x3206   :  { %5596 = vsyncpa [#allocation5], 1 }
0x3207   :  { %5597 = vsyncpa [#allocation8], 1 }
0x3208   :  { %5598 = vsyncpa [#allocation11], 1 }
0x3209   :  { %5599 = vsyncpa [#allocation6], 1 }

</bundles_post_ra>
